<compile_context>
chip_gen: v5e
topology: v5e:2x2
jax: 0.10.0
libtpu: 0.0.40
codegen_flags: <defaults>
</compile_context>

<pallas_src>
import jax
import jax.numpy as jnp
from jax import lax
from jax.experimental import pallas as pl
from jax.experimental.pallas import tpu as pltpu


def _round_up(a, b):
    return (a + b - 1) // b * b


def discriminator_kernel(x_ref, y_ref, w1_ref, b1_ref, w2_ref, w3_ref, b3_ref, out_ref):
    tn = x_ref.shape[0]

    # --- L1x: Maxout(784 -> 240, pool=5) as ONE wide MXU pass + group max -----------
    z1 = jnp.dot(x_ref[...], w1_ref[...],
                 preferred_element_type=jnp.float32) + b1_ref[...]      # (tn, 5*256) f32
    x1 = z1[:, 0:256]
    for k in range(1, 5):                       # lane-aligned static slices (cheap)
        x1 = jnp.maximum(x1, z1[:, k * 256:(k + 1) * 256])              # (tn, 256) f32

    # --- Label path: one-hot lanes appended to the LHS; the whole y branch
    #     (one-hot -> Maxout(10,50,5) -> y-slice of w2 + b2) lives in the 128
    #     constant-folded extra rows of w2_ref ---------------------------------------
    classes = lax.broadcasted_iota(jnp.int32, (tn, 128), 1)
    onehot = (y_ref[...] == classes).astype(jnp.bfloat16)               # (tn, 128)
    lhs = jnp.concatenate([x1.astype(jnp.bfloat16), onehot], axis=1)    # (tn, 384)

    # --- L2: Dropout (eval identity) + Maxout(290 -> 240, pool=4): ONE MXU pass -----
    z2 = jnp.dot(lhs, w2_ref[...], preferred_element_type=jnp.float32)  # (tn, 4*256)
    h2 = z2[:, 0:256]
    for k in range(1, 4):
        h2 = jnp.maximum(h2, z2[:, k * 256:(k + 1) * 256])              # (tn, 256) f32

    # --- L3: Dropout (eval identity) + Linear(240, 1) + Sigmoid (VPU/XLU reduce) ----
    logits = jnp.sum(h2 * w3_ref[...], axis=-1, keepdims=True) + b3_ref[...]
    out_ref[...] = jax.nn.sigmoid(logits)                               # (tn, 1)


def prepare_params(params):
    """Parameter-only repacking / constant folding for the kernel (math preserving)."""
    w1x, b1x, w1y, b1y, w2, b2, w3, b3 = params

    # L1x: pad K 784 -> 896 (7*128) and out-width 240 -> 256; pack the 5 maxout pieces
    # side by side along the output dim -> one (896, 1280) bf16 matrix + (1, 1280) bias.
    w1 = jnp.pad(w1x, ((0, 0), (0, 112), (0, 16)))                       # (5, 896, 256)
    w1 = jnp.transpose(w1, (1, 0, 2)).reshape(896, 5 * 256).astype(jnp.bfloat16)
    b1 = jnp.pad(b1x, ((0, 0), (0, 0), (0, 16)))                         # (5, 1, 256)
    b1 = jnp.transpose(b1, (1, 0, 2)).reshape(1, 5 * 256).astype(jnp.float32)

    # L2 x-part: rows 0:240 of w2, 4 pieces packed side by side -> (256, 1024).
    w2a = jnp.pad(w2[:, :240, :], ((0, 0), (0, 16), (0, 16)))            # (4, 256, 256)
    w2a = jnp.transpose(w2a, (1, 0, 2)).reshape(256, 4 * 256)            # (256, 1024)

    # Constant-fold the full label path into 128 extra RHS rows (exact f32 math):
    #   y1[c]       = max_p (w1y[p, c, :] + b1y[p, 0, :])                (10, 50)
    #   ycon[c,p,:] = y1[c] @ w2[p, 240:, :] + b2[p, 0, :]               (10, 4, 240)
    y1_all = jnp.max(w1y + b1y, axis=0)                                  # (10, 50)
    ycon = jnp.einsum('co,pon->cpn', y1_all, w2[:, 240:, :]) + b2[:, 0, :][None]
    ycon = jnp.pad(ycon, ((0, 118), (0, 0), (0, 16)))                    # (128, 4, 256)
    ycon = ycon.reshape(128, 4 * 256)                                    # (128, 1024)

    # Augmented RHS for the single L2 matmul: [x1 rows ; one-hot rows].
    w2aug = jnp.concatenate([w2a, ycon], axis=0).astype(jnp.bfloat16)    # (384, 1024)

    # L3: row vector padded to 256 lanes, kept f32 (used on VPU, not MXU).
    w3_p = jnp.pad(w3[:, 0][None, :], ((0, 0), (0, 16))).astype(jnp.float32)  # (1, 256)
    b3_p = b3.astype(jnp.float32)                                        # (1, 1)
    return w1, b1, w2aug, w3_p, b3_p


def _choose_tile(n, tile_n):
    """Batch tile: multiple of 16 (bf16 sublane packing), capped at `tile_n`, and never
    more than half the padded batch when the batch allows >= 2 grid steps (so
    dimension_semantics=('parallel',) can shard tiles across both v7x TensorCores)."""
    n_aligned = _round_up(max(n, 1), 16)
    tn = min(_round_up(tile_n, 16), n_aligned)
    if n_aligned >= 32:
        tn = min(tn, _round_up(pl.cdiv(n_aligned, 2), 16))
    return max(tn, 16)


def discriminator_forward(x, y, params, tile_n=512):
    n = x.shape[0]
    w1, b1, w2aug, w3_p, b3_p = prepare_params(params)

    tn = _choose_tile(n, tile_n)
    n_pad = _round_up(n, tn)
    # Image K padded 784 -> 896 so the MXU K stream is unmasked; pad rows get label -1
    # (all-zero one-hot) and are sliced away after the kernel.
    x_p = jnp.pad(x, ((0, n_pad - n), (0, 896 - x.shape[1]))).astype(jnp.bfloat16)
    y_p = jnp.pad(y.astype(jnp.int32), ((0, n_pad - n), (0, 0)), constant_values=-1)

    # ~15 MB VMEM at tn=512; raise the scoped limit only for bigger tiles (v5e/v6e).
    # Keep tn <= 512 on v7x (64 MiB physical VMEM per TensorCore).
    vmem_limit = (32 if tn <= 512 else 64) * 1024 * 1024

    out = pl.pallas_call(
        discriminator_kernel,
        out_shape=jax.ShapeDtypeStruct((n_pad, 1), jnp.float32),
        grid=(n_pad // tn,),
        in_specs=[
            pl.BlockSpec((tn, 896), lambda i: (i, 0)),      # x tile            (pipelined)
            pl.BlockSpec((tn, 1), lambda i: (i, 0)),        # y tile            (pipelined)
            pl.BlockSpec((896, 1280), lambda i: (0, 0)),    # fused L1x weights (resident)
            pl.BlockSpec((1, 1280), lambda i: (0, 0)),      # fused L1x bias    (resident)
            pl.BlockSpec((384, 1024), lambda i: (0, 0)),    # augmented L2 RHS  (resident)
            pl.BlockSpec((1, 256), lambda i: (0, 0)),       # w3 row            (resident)
            pl.BlockSpec((1, 1), lambda i: (0, 0)),         # b3                (resident)
        ],
        out_specs=pl.BlockSpec((tn, 1), lambda i: (i, 0)),
        compiler_params=pltpu.CompilerParams(
            dimension_semantics=("parallel",),   # shard batch tiles over both v7x TCs
            vmem_limit_bytes=vmem_limit,
        ),
    )(x_p, y_p, w1, b1, w2aug, w3_p, b3_p)
    return out[:n]


def init_params(key):
    ks = jax.random.split(key, 8)
    s = 0.05
    w1x = s * jax.random.normal(ks[0], (5, 784, 240), jnp.float32)
    b1x = s * jax.random.normal(ks[1], (5, 1, 240), jnp.float32)
    w1y = s * jax.random.normal(ks[2], (5, 10, 50), jnp.float32)
    b1y = s * jax.random.normal(ks[3], (5, 1, 50), jnp.float32)
    w2 = s * jax.random.normal(ks[4], (4, 290, 240), jnp.float32)
    b2 = s * jax.random.normal(ks[5], (4, 1, 240), jnp.float32)
    w3 = s * jax.random.normal(ks[6], (240, 1), jnp.float32)
    b3 = s * jax.random.normal(ks[7], (1, 1), jnp.float32)
    return (w1x, b1x, w1y, b1y, w2, b2, w3, b3)


def ref_forward(x, y, params):
    """Pure-JAX f32 reference with the original (unfolded) math, eval-mode dropout."""
    w1x, b1x, w1y, b1y, w2, b2, w3, b3 = params

    def maxout(h, w, b):
        z = jnp.einsum('ni,pio->pno', h, w) + b
        return jnp.max(z, axis=0)

    x1 = maxout(x, w1x, b1x)
    yoh = jax.nn.one_hot(y[:, 0], 10, dtype=jnp.float32)
    y1 = maxout(yoh, w1y, b1y)
    h = jnp.concatenate([x1, y1], axis=1)
    h2 = maxout(h, w2, b2)
    return jax.nn.sigmoid(h2 @ w3 + b3)


if __name__ == "__main__":
    key = jax.random.PRNGKey(0)
    kx, ky, kp = jax.random.split(key, 3)

    N = 20
    x = jax.random.uniform(kx, (N, 784), jnp.float32)              # flattened 28x28 image
    y = jax.random.randint(ky, (N, 1), 0, 10, dtype=jnp.int32)     # class labels
    params = init_params(kp)

    # N=20 -> tile chooser picks tn=16, n_pad=32, grid=(2,): exercises the batch-tiled,
    # resident-weight pipeline (with a padded remainder tile) even at this small shape.
    out = discriminator_forward(x, y, params)
    out = jax.block_until_ready(out)

    ref = jax.block_until_ready(ref_forward(x, y, params))
    assert out.shape == (N, 1)
    assert jnp.allclose(out, ref, atol=2e-2, rtol=2e-2), (out, ref)

    print("KERNEL_OK")
</pallas_src>

<mosaic_0001>
module attributes {stable_mosaic.version = 11 : i64} {
  func.func @discriminator_kernel(%arg0: i32, %arg1: memref<16x896xbf16, #tpu.memory_space<vmem>>, %arg2: memref<16x1xi32, #tpu.memory_space<vmem>>, %arg3: memref<896x1280xbf16, #tpu.memory_space<vmem>>, %arg4: memref<1x1280xf32, #tpu.memory_space<vmem>>, %arg5: memref<384x1024xbf16, #tpu.memory_space<vmem>>, %arg6: memref<1x256xf32, #tpu.memory_space<vmem>>, %arg7: memref<1x1xf32, #tpu.memory_space<vmem>>, %arg8: memref<16x1xf32, #tpu.memory_space<vmem>>) attributes {dimension_semantics = [#tpu.dimension_semantics<parallel>], iteration_bounds = array<i64: 2>, scalar_prefetch = 0 : i64, scratch_operands = 0 : i64, tpu.core_type = #tpu.core_type<tc>, window_params = [{transform_indices = @transform_0, window_bounds = array<i64: 16, 896>}, {transform_indices = @transform_1, window_bounds = array<i64: 16, 1>}, {pipeline_mode = #tpu.pipeline_mode<synchronous>, transform_indices = @transform_2, window_bounds = array<i64: 896, 1280>}, {pipeline_mode = #tpu.pipeline_mode<synchronous>, transform_indices = @transform_3, window_bounds = array<i64: 1, 1280>}, {pipeline_mode = #tpu.pipeline_mode<synchronous>, transform_indices = @transform_4, window_bounds = array<i64: 384, 1024>}, {pipeline_mode = #tpu.pipeline_mode<synchronous>, transform_indices = @transform_5, window_bounds = array<i64: 1, 256>}, {pipeline_mode = #tpu.pipeline_mode<synchronous>, transform_indices = @transform_6, window_bounds = array<i64: 1, 1>}, {transform_indices = @transform_7, window_bounds = array<i64: 16, 1>}]} {
    %c0 = arith.constant 0 : index
    %c0_0 = arith.constant 0 : index
    %0 = vector.load %arg1[%c0, %c0_0] : memref<16x896xbf16, #tpu.memory_space<vmem>>, vector<16x896xbf16>
    %c0_1 = arith.constant 0 : index
    %c0_2 = arith.constant 0 : index
    %1 = vector.load %arg3[%c0_1, %c0_2] : memref<896x1280xbf16, #tpu.memory_space<vmem>>, vector<896x1280xbf16>
    %cst = arith.constant dense<0.000000e+00> : vector<16x1280xf32>
    %2 = tpu.matmul %0, %1, %cst {dimension_numbers = #tpu.dot_dimension_numbers<[1], [0], [0], [1], [0, 0, 1, 1], [], []>} : vector<16x896xbf16>, vector<896x1280xbf16>, vector<16x1280xf32> -> vector<16x1280xf32>
    %c0_3 = arith.constant 0 : index
    %c0_4 = arith.constant 0 : index
    %3 = vector.load %arg4[%c0_3, %c0_4] : memref<1x1280xf32, #tpu.memory_space<vmem>>, vector<1x1280xf32>
    %4 = vector.broadcast %3 : vector<1x1280xf32> to vector<16x1280xf32>
    %5 = arith.addf %2, %4 : vector<16x1280xf32>
    %6 = vector.extract_strided_slice %5 {offsets = [0, 0], sizes = [16, 256], strides = [1, 1]} : vector<16x1280xf32> to vector<16x256xf32>
    %7 = vector.extract_strided_slice %5 {offsets = [0, 256], sizes = [16, 256], strides = [1, 1]} : vector<16x1280xf32> to vector<16x256xf32>
    %8 = arith.maximumf %6, %7 : vector<16x256xf32>
    %9 = vector.extract_strided_slice %5 {offsets = [0, 512], sizes = [16, 256], strides = [1, 1]} : vector<16x1280xf32> to vector<16x256xf32>
    %10 = arith.maximumf %8, %9 : vector<16x256xf32>
    %11 = vector.extract_strided_slice %5 {offsets = [0, 768], sizes = [16, 256], strides = [1, 1]} : vector<16x1280xf32> to vector<16x256xf32>
    %12 = arith.maximumf %10, %11 : vector<16x256xf32>
    %13 = vector.extract_strided_slice %5 {offsets = [0, 1024], sizes = [16, 256], strides = [1, 1]} : vector<16x1280xf32> to vector<16x256xf32>
    %14 = arith.maximumf %12, %13 : vector<16x256xf32>
    %15 = tpu.iota {dimensions = array<i32: 1>} : vector<16x128xi32>
    %c0_5 = arith.constant 0 : index
    %c0_6 = arith.constant 0 : index
    %16 = vector.load %arg2[%c0_5, %c0_6] : memref<16x1xi32, #tpu.memory_space<vmem>>, vector<16x1xi32>
    %17 = vector.broadcast %16 : vector<16x1xi32> to vector<16x128xi32>
    %18 = arith.cmpi eq, %17, %15 : vector<16x128xi32>
    %19 = arith.extui %18 : vector<16x128xi1> to vector<16x128xi32>
    %20 = arith.sitofp %19 : vector<16x128xi32> to vector<16x128xf32>
    %21 = arith.truncf %20 : vector<16x128xf32> to vector<16x128xbf16>
    %22 = arith.truncf %14 : vector<16x256xf32> to vector<16x256xbf16>
    %23 = tpu.concatenate %22, %21 in 1 : vector<16x256xbf16>, vector<16x128xbf16> -> vector<16x384xbf16>
    %c0_7 = arith.constant 0 : index
    %c0_8 = arith.constant 0 : index
    %24 = vector.load %arg5[%c0_7, %c0_8] : memref<384x1024xbf16, #tpu.memory_space<vmem>>, vector<384x1024xbf16>
    %cst_9 = arith.constant dense<0.000000e+00> : vector<16x1024xf32>
    %25 = tpu.matmul %23, %24, %cst_9 {dimension_numbers = #tpu.dot_dimension_numbers<[1], [0], [0], [1], [0, 0, 1, 1], [], []>} : vector<16x384xbf16>, vector<384x1024xbf16>, vector<16x1024xf32> -> vector<16x1024xf32>
    %26 = vector.extract_strided_slice %25 {offsets = [0, 0], sizes = [16, 256], strides = [1, 1]} : vector<16x1024xf32> to vector<16x256xf32>
    %27 = vector.extract_strided_slice %25 {offsets = [0, 256], sizes = [16, 256], strides = [1, 1]} : vector<16x1024xf32> to vector<16x256xf32>
    %28 = arith.maximumf %26, %27 : vector<16x256xf32>
    %29 = vector.extract_strided_slice %25 {offsets = [0, 512], sizes = [16, 256], strides = [1, 1]} : vector<16x1024xf32> to vector<16x256xf32>
    %30 = arith.maximumf %28, %29 : vector<16x256xf32>
    %31 = vector.extract_strided_slice %25 {offsets = [0, 768], sizes = [16, 256], strides = [1, 1]} : vector<16x1024xf32> to vector<16x256xf32>
    %32 = arith.maximumf %30, %31 : vector<16x256xf32>
    %c0_10 = arith.constant 0 : index
    %c0_11 = arith.constant 0 : index
    %33 = vector.load %arg6[%c0_10, %c0_11] : memref<1x256xf32, #tpu.memory_space<vmem>>, vector<1x256xf32>
    %34 = vector.broadcast %33 : vector<1x256xf32> to vector<16x256xf32>
    %35 = arith.mulf %32, %34 : vector<16x256xf32>
    %cst_12 = arith.constant dense<0.000000e+00> : vector<16xf32>
    %36 = vector.multi_reduction <add>, %35, %cst_12 [1] : vector<16x256xf32> to vector<16xf32>
    %37 = vector.shape_cast %36 : vector<16xf32> to vector<16x1xf32>
    %c0_13 = arith.constant 0 : index
    %c0_14 = arith.constant 0 : index
    %38 = vector.load %arg7[%c0_13, %c0_14] : memref<1x1xf32, #tpu.memory_space<vmem>>, vector<1x1xf32>
    %39 = vector.broadcast %38 : vector<1x1xf32> to vector<16x1xf32>
    %40 = arith.addf %37, %39 : vector<16x1xf32>
    %41 = arith.negf %40 : vector<16x1xf32>
    %42 = math.exp %41 : vector<16x1xf32>
    %cst_15 = arith.constant 1.000000e+00 : f32
    %43 = vector.broadcast %cst_15 : f32 to vector<16x1xf32>
    %44 = arith.addf %43, %42 : vector<16x1xf32>
    %45 = arith.divf %43, %44 : vector<16x1xf32>
    %c0_16 = arith.constant 0 : index
    %c0_17 = arith.constant 0 : index
    %46 = vector.load %arg8[%c0_16, %c0_17] : memref<16x1xf32, #tpu.memory_space<vmem>>, vector<16x1xf32>
    tpu.vector_store %arg8[%c0_16, %c0_17], %45 {strides = array<i32>} : memref<16x1xf32, #tpu.memory_space<vmem>>, vector<16x1xf32>,
    return
  }
  func.func @transform_0(%arg0: i32) -> (i32, i32) {
    %c0_i32 = arith.constant 0 : i32
    %c0_i32_0 = arith.constant 0 : i32
    return %arg0, %c0_i32 : i32, i32
  }
  func.func @transform_1(%arg0: i32) -> (i32, i32) {
    %c0_i32 = arith.constant 0 : i32
    %c0_i32_0 = arith.constant 0 : i32
    return %arg0, %c0_i32 : i32, i32
  }
  func.func @transform_2(%arg0: i32) -> (i32, i32) {
    %c0_i32 = arith.constant 0 : i32
    %c0_i32_0 = arith.constant 0 : i32
    %c0_i32_1 = arith.constant 0 : i32
    return %c0_i32, %c0_i32_0 : i32, i32
  }
  func.func @transform_3(%arg0: i32) -> (i32, i32) {
    %c0_i32 = arith.constant 0 : i32
    %c0_i32_0 = arith.constant 0 : i32
    %c0_i32_1 = arith.constant 0 : i32
    return %c0_i32, %c0_i32_0 : i32, i32
  }
  func.func @transform_4(%arg0: i32) -> (i32, i32) {
    %c0_i32 = arith.constant 0 : i32
    %c0_i32_0 = arith.constant 0 : i32
    %c0_i32_1 = arith.constant 0 : i32
    return %c0_i32, %c0_i32_0 : i32, i32
  }
  func.func @transform_5(%arg0: i32) -> (i32, i32) {
    %c0_i32 = arith.constant 0 : i32
    %c0_i32_0 = arith.constant 0 : i32
    %c0_i32_1 = arith.constant 0 : i32
    return %c0_i32, %c0_i32_0 : i32, i32
  }
  func.func @transform_6(%arg0: i32) -> (i32, i32) {
    %c0_i32 = arith.constant 0 : i32
    %c0_i32_0 = arith.constant 0 : i32
    %c0_i32_1 = arith.constant 0 : i32
    return %c0_i32, %c0_i32_0 : i32, i32
  }
  func.func @transform_7(%arg0: i32) -> (i32, i32) {
    %c0_i32 = arith.constant 0 : i32
    %c0_i32_0 = arith.constant 0 : i32
    return %arg0, %c0_i32 : i32, i32
  }
}

</mosaic_0001>

<bundles_post_ra>
// kernel: tpu_custom_call.1
= control target key start
LH: loop header
LB: loop body
LE: loop exit
PB: predicated region body
PF: predicated region fallthrough
CT: control target
= control target key end

     0   :  { %s11305_s0 = inlined_call_operand.hbm [shape: bf16[32,896], index: 0, kind: input, shape index: {}]   ;;  %s11306_s1 = inlined_call_operand.vmem [shape: s32[32,1], index: 1, kind: input, shape index: {}]   ;;  %s11307_s2 = inlined_call_operand.hbm [shape: bf16[896,1280], index: 2, kind: input, shape index: {}]   ;;  %s11308_s3 = inlined_call_operand.hbm [shape: f32[1,1280], index: 3, kind: input, shape index: {}]   ;;  %s11309_s4 = inlined_call_operand.hbm [shape: bf16[384,1024], index: 4, kind: input, shape index: {}]   ;;  %s11310_s5 = inlined_call_operand.hbm [shape: f32[1,256], index: 5, kind: input, shape index: {}]   ;;  %s11311_s6 = inlined_call_operand.<no memory space> [shape: f32[1,1], index: 6, kind: input, shape index: {}]   ;;  %s11312_s7 = inlined_call_operand.vmem [shape: f32[32,1], index: 7, kind: output, shape index: {}]  }
   0x1   :  { %v12_v0 = vstv %s11311_s6 }
   0x2   :  { %13 = vst [vmem:[#allocation2] sm:$0x1] %v12_v0 }
   0x3   :  { %14 = vsyncpa [#allocation4], 0 }
   0x4   :  { %16 = vsyncpa [#allocation4 + $0x1], 0 }
   0x5   :  { %17 = vsyncpa [#allocation6], 0 }
   0x6   :  { %18 = vsyncpa [#allocation9], 0  ;;  %s10703_s26 = smov 0   ;;  %s10705_s27 = smov 0  }
   0x7   :  { %s10707_s28 = smov 0   ;;  %s10709_s29 = smov 0  }
   0x8 LB: > { %s6530_s6 = sadd.s32 4294967295, %s10646_s29   ;;  %p44_p0 = scmp.ne.s32.totalorder %s10638_s27, %s10634_s26  ;;  %s10646_s29 = sphi %s10709_s29, %s11410_s29   ;;  %s10642_s28 = sphi %s10707_s28, %s11409_s28   ;;  %s10638_s27 = sphi %s10705_s27, %s11408_s27   ;;  %s10634_s26 = sphi %s10703_s26, %s11407_s26  }
   0x9   : > { %p10725_p1 = scmp.eq.s32.totalorder %s6530_s6, 0  ;;  %p6532_p2 = scmp.ge.s32.totalorder %s10646_s29, 1 }
   0xa   : > { %p212_p3 = scmp.lt.s32.totalorder %s10646_s29, 3  ;;  %s223_s11 = sshll.u32 %s11307_s2, 4  ;;  %s224_s11 = int_to_ptr.hbm [resolvable:$true] %s223_s11 }
   0xb   : > { %p10733_p4 = por %p10725_p1, %p44_p0  ;;  %s10648_s13 = smov [#allocation5]  }
   0xc   : > { %p10740_p5 = pnand %p6532_p2, %p212_p3  ;;  %s225_s14 = sshll.u32 %s10648_s13, 4  ;;  %s226_s14 = int_to_ptr.vmem [resolvable:$true] %s225_s14 }
   0xd   : > { %s249_s18 = sshll.u32 %s11309_s4, 4  ;;  %s10649_s19 = smov 640   ;;  %s250_s18 = int_to_ptr.hbm [resolvable:$true] %s249_s18 }
   0xe   : > { %p10372_p6 = pneg %p10740_p5  ;;  %s10650_s20 = smov 40  }
   0xf   : > { %s10651_s21 = smov [#allocation8]   ;;  %s10652_s23 = smov 512  }
  0x10   : > { %p10748_p7 = pnand %p10372_p6, %p10725_p1  ;;  %s251_s22 = sshll.u32 %s10651_s21, 4  ;;  %s252_s22 = int_to_ptr.vmem [resolvable:$true] %s251_s22 }
  0x11   : > { %s10653_s24 = smov 32   ;;  %s238_s9 = sshll.u32 %s11308_s3, 4  ;;  %s239_s9 = int_to_ptr.hbm [resolvable:$true] %s238_s9 }
  0x12   : > { %10375 = dma.hbm_to_vmem [thread:$0]  (!%p10748_p7), %s224_s11, 71680, %s226_s14, [#allocation6], %s10649_s19, %s10649_s19, %s10650_s20  }
  0x13   : > { %10381 = dma.hbm_to_vmem [thread:$0]  (!%p10748_p7), %s250_s18, 24576, %s252_s22, [#allocation9], %s10652_s23, %s10652_s23, %s10653_s24  }
  0x14   : > { %s10654_s10 = smov [#allocation7]   ;;  %s264_s16 = sshll.u32 %s11310_s5, 4  ;;  %s265_s16 = int_to_ptr.hbm [resolvable:$true] %s264_s16 }
  0x15   : > { %s240_s11 = sshll.u32 %s10654_s10, 4  ;;  %s10655_s17 = smov [#allocation10]   ;;  %s241_s11 = int_to_ptr.vmem [resolvable:$true] %s240_s11 }
  0x16   : > { %10378 = dma.hbm_to_vmem [thread:$0]  (!%p10748_p7), %s239_s9, 160, %s241_s11, [#allocation6]  }
  0x17   : > { %s266_s18 = sshll.u32 %s10655_s17, 4  ;;  %s10770_s19 = sadd.s32 1, %s10646_s29   ;;  %s267_s18 = int_to_ptr.vmem [resolvable:$true] %s266_s18 }
  0x18   : > { %10384 = dma.hbm_to_vmem [thread:$0]  (!%p10748_p7), %s265_s16, 32, %s267_s18, [#allocation9]  }
  0x19   : > { %s31_s20 = sadd.s32 1, %s10642_s28  ;;  %s28_s21 = ssub.s32 %s10646_s29, %s10770_s19 }
  0x1a   : > { %p38_p8 = scmp.ne.s32.totalorder %s10642_s28, %s10638_s27  ;;  %p29_p9 = scmp.eq.s32.totalorder %s28_s21, 0 }
  0x1b   : > { %p39_p10 = scmp.eq.s32.totalorder %s10646_s29, 0  ;;  %p10393_p11 = scmp.lt.s32.totalorder %s10646_s29, 2 }
  0x1c   : > { %s280_s22 = sand.u32 1, %s10642_s28   ;;  %s10352_s25 = smul.u32 56, %s10646_s29 }
  0x1d   : > { %s10781_s23 = scalar_select %p29_p9, %s10642_s28, %s31_s20  }
  0x1e   : > { %p40_p12 = por %p39_p10, %p38_p8  ;;  %s10351_s24 = smul.u32 56, %s280_s22 }
  0x1f   : > { %s290_s10 = scalar_lea.hbm %s11305_s0, %s10352_s25  ;;  %s281_s16 = scalar_lea.sflag [#allocation4], %s280_s22 }
  0x20   : > { %p10784_p13 = pnand %p10393_p11, %p40_p12  ;;  %s284_s11 = scalar_lea.vmem [#allocation3], %s10351_s24 }
  0x21   : > { %s293_s13 = sshll.u32 %s284_s11, 4  ;;  %s291_s14 = sshll.u32 %s290_s10, 4  ;;  %s294_s13 = int_to_ptr.vmem [resolvable:$true] %s293_s13  ;;  %s292_s14 = int_to_ptr.hbm [resolvable:$true] %s291_s14 }
  0x22   : > { %s10574_s17 = sshra.s32 %s292_s14, 4  ;;  %p10578_p2 = pneg %p10784_p13  ;;  %s10575_s17 = int_to_ptr.hbm [resolvable:$true] %s10574_s17 }
  0x23   : > { %s10576_s18 = scalar_lea.hbm %s10575_s17, 56  ;;  %s10581_s15 = scalar_lea.hbm %s11305_s0, 112 }
  0x24   : > { %p10577_p0 = scmp.ne.s32.totalorder %s10575_s17, %s10576_s18  ;;  %p10582_p7 = scmp.lt.s32.totalorder %s10575_s17, %s11305_s0 }
  0x25   : > { %p10583_p8 = scmp.lt.s32.totalorder %s10581_s15, %s10576_s18 }
  0x26   : > { %p10579_p3 = pnand %p10578_p2, %p10577_p0 }
  0x27   : > { %p10584_p9 = por %p10583_p8, %p10582_p7 }
  0x28   : > { %p10580_p6 = pneg %p10579_p3 }
  0x2a   : > { %p10585_p10 = pnand %p10584_p9, %p10580_p6 }
  0x2c   : > { %10588 = shalt.err (!%p10585_p10)
}
  0x2d   : > { %s10656_s22 = smov 448   ;;  %s10657_s24 = smov 28  }
  0x2e   : > { %10388 = dma.hbm_to_vmem [thread:$0]  (!%p10784_p13), %s292_s14, 896, %s294_s13, %s281_s16, %s10656_s22, %s10656_s22, %s10657_s24  }
  0x2f   : > { %314 = sbr.rel (%p10740_p5) target bundleno = 1211 (0x4bb), region = 48 }
  0x34   : > { %s316_s10 = sand.u32 1, %s10638_s27  }
  0x35   : > { %s10353_s11 = smul.u32 56, %s316_s10  ;;  %s317_s20 = scalar_lea.sflag [#allocation4], %s316_s10 }
  0x37   : > { %s10804_s21 = scalar_lea.vmem [#allocation3], %s10353_s11 }
  0x38   : > { %10621 = dma.done.wait (%p10733_p4), %s317_s20, 896  }
  0x39   : > { %10623 = vsyncadd (%p10733_p4), %s317_s20, 4294966400 }
  0x3a   : > { %10625 = dma.done.wait (%p10725_p1), [#allocation6], 71840  }
  0x3b   : > { %10627 = vsyncadd (%p10725_p1), [#allocation6], 4294895456 }
  0x3c   : > { %10629 = dma.done.wait (%p10725_p1), [#allocation9], 24608  }
  0x3d   : > { %10631 = vsyncadd (%p10725_p1), [#allocation9], 4294942688  ;;  %v6860_v1 = vld [vmem:[#allocation5 + $0x230] sm:$0xf]  ;;  %v9674_v2 = vld [vmem:[#allocation5 + $0x254] sm:$0xf0] }
  0x3e   : > { %v7180_v3 = vld [vmem:[#allocation5 + $0x4b0] sm:$0xf]  ;;  %v6861_v4 = vor.u32 %v9674_v2, %v6860_v1  ;;  %v9754_v5 = vld [vmem:[#allocation5 + $0x4d4] sm:$0xf0]  ;;  %v6820_v12 = vld [vmem:[#allocation5 + $0x1e0] sm:$0xf] }
  0x3f   : > { %v7500_v6 = vld [vmem:[#allocation5 + $0x730] sm:$0xf]  ;;  %v9834_v7 = vld [vmem:[#allocation5 + $0x754] sm:$0xf0]  ;;  %v7181_v8 = vor.u32 %v9754_v5, %v7180_v3  ;;  %v9664_v14 = vld [vmem:[#allocation5 + $0x204] sm:$0xf0] }
  0x40   : > { %v7501_v9 = vor.u32 %v9834_v7, %v7500_v6  ;;  %v7820_v10 = vld [vmem:[#allocation5 + $0x9b0] sm:$0xf]  ;;  %v9914_v11 = vld [vmem:[#allocation5 + $0x9d4] sm:$0xf0]  ;;  %3818 = vmatpush.bf16.msra.mxu0 %v6861_v4  ;;  %v7140_v15 = vld [vmem:[#allocation5 + $0x460] sm:$0xf]  ;;  %v6821_v17 = vor.u32 %v9664_v14, %v6820_v12 }
  0x41   : > { %v7821_v13 = vor.u32 %v9914_v11, %v7820_v10  ;;  %v9744_v16 = vld [vmem:[#allocation5 + $0x484] sm:$0xf0]  ;;  %3832 = vmatpush.bf16.msra.mxu1 %v7181_v8  ;;  %v7460_v19 = vld [vmem:[#allocation5 + $0x6e0] sm:$0xf]  ;;  %v6780_v24 = vld [vmem:[#allocation5 + $0x190] sm:$0xf] }
  0x42   : > { %3846 = vmatpush.bf16.msra.mxu2 %v7501_v9  ;;  %v7141_v18 = vor.u32 %v9744_v16, %v7140_v15  ;;  %v9824_v20 = vld [vmem:[#allocation5 + $0x704] sm:$0xf0]  ;;  %v7780_v21 = vld [vmem:[#allocation5 + $0x960] sm:$0xf]  ;;  %v9654_v25 = vld [vmem:[#allocation5 + $0x1b4] sm:$0xf0] }
  0x43   : > { %3860 = vmatpush.bf16.msra.mxu3 %v7821_v13  ;;  %v7461_v22 = vor.u32 %v9824_v20, %v7460_v19  ;;  %v9904_v23 = vld [vmem:[#allocation5 + $0x984] sm:$0xf0]  ;;  %v7100_v27 = vld [vmem:[#allocation5 + $0x410] sm:$0xf]  ;;  %v9734_v28 = vld [vmem:[#allocation5 + $0x434] sm:$0xf0]  ;;  %v6781_v30 = vor.u32 %v9654_v25, %v6780_v24 }
  0x44   : > { %v7781_v26 = vor.u32 %v9904_v23, %v7780_v21  ;;  %v7420_v29 = vld [vmem:[#allocation5 + $0x690] sm:$0xf]  ;;  %3819 = vmatpush.bf16.msra.mxu0 %v6821_v17  ;;  %v9814_v31 = vld [vmem:[#allocation5 + $0x6b4] sm:$0xf0]  ;;  %v7101_v34 = vor.u32 %v9734_v28, %v7100_v27  ;;  %v6740_v36 = vld [vmem:[#allocation5 + $0x140] sm:$0xf] }
  0x45   : > { %v7740_v32 = vld [vmem:[#allocation5 + $0x910] sm:$0xf]  ;;  %v9894_v33 = vld [vmem:[#allocation5 + $0x934] sm:$0xf0]  ;;  %3833 = vmatpush.bf16.msra.mxu1 %v7141_v18  ;;  %v7421_v35 = vor.u32 %v9814_v31, %v7420_v29  ;;  %v9644_v37 = vld [vmem:[#allocation5 + $0x164] sm:$0xf0] }
  0x46   : > { %3847 = vmatpush.bf16.msra.mxu2 %v7461_v22  ;;  %v7060_v38 = vld [vmem:[#allocation5 + $0x3c0] sm:$0xf]  ;;  %v7741_v39 = vor.u32 %v9894_v33, %v7740_v32  ;;  %v9724_v40 = vld [vmem:[#allocation5 + $0x3e4] sm:$0xf0]  ;;  %v6741_v45 = vor.u32 %v9644_v37, %v6740_v36  ;;  %v6700_v48 = vld [vmem:[#allocation5 + $0xf0] sm:$0xf] }
  0x47   : > { %3861 = vmatpush.bf16.msra.mxu3 %v7781_v26  ;;  %v7380_v41 = vld [vmem:[#allocation5 + $0x640] sm:$0xf]  ;;  %v9804_v42 = vld [vmem:[#allocation5 + $0x664] sm:$0xf0]  ;;  %v7061_v46 = vor.u32 %v9724_v40, %v7060_v38  ;;  %v9634_v49 = vld [vmem:[#allocation5 + $0x114] sm:$0xf0] }
  0x48   : > { %v7700_v43 = vld [vmem:[#allocation5 + $0x8c0] sm:$0xf]  ;;  %v9884_v44 = vld [vmem:[#allocation5 + $0x8e4] sm:$0xf0]  ;;  %3820 = vmatpush.bf16.msra.mxu0 %v6781_v30  ;;  %v7381_v47 = vor.u32 %v9804_v42, %v7380_v41  ;;  %v7020_v50 = vld [vmem:[#allocation5 + $0x370] sm:$0xf]  ;;  %v6701_v57 = vor.u32 %v9634_v49, %v6700_v48 }
  0x49   : > { %3834 = vmatpush.bf16.msra.mxu1 %v7101_v34  ;;  %v7701_v51 = vor.u32 %v9884_v44, %v7700_v43  ;;  %v9714_v52 = vld [vmem:[#allocation5 + $0x394] sm:$0xf0]  ;;  %v7340_v53 = vld [vmem:[#allocation5 + $0x5f0] sm:$0xf]  ;;  %v6660_v60 = vld [vmem:[#allocation5 + $0xa0] sm:$0xf] }
  0x4a   : > { %3848 = vmatpush.bf16.msra.mxu2 %v7421_v35  ;;  %v9794_v54 = vld [vmem:[#allocation5 + $0x614] sm:$0xf0]  ;;  %v7660_v55 = vld [vmem:[#allocation5 + $0x870] sm:$0xf]  ;;  %v7021_v58 = vor.u32 %v9714_v52, %v7020_v50  ;;  %v9624_v61 = vld [vmem:[#allocation5 + $0xc4] sm:$0xf0] }
  0x4b   : > { %3862 = vmatpush.bf16.msra.mxu3 %v7741_v39  ;;  %v9874_v56 = vld [vmem:[#allocation5 + $0x894] sm:$0xf0]  ;;  %v7341_v59 = vor.u32 %v9794_v54, %v7340_v53  ;;  %v6980_v62 = vld [vmem:[#allocation5 + $0x320] sm:$0xf]  ;;  %v9704_v0 = vld [vmem:[#allocation5 + $0x344] sm:$0xf0]  ;;  %v6661_v5 = vor.u32 %v9624_v61, %v6660_v60 }
  0x4c   : > { %3821 = vmatpush.bf16.msra.mxu0 %v6741_v45  ;;  %v7661_v63 = vor.u32 %v9874_v56, %v7660_v55  ;;  %v7300_v1 = vld [vmem:[#allocation5 + $0x5a0] sm:$0xf]  ;;  %v9784_v2 = vld [vmem:[#allocation5 + $0x5c4] sm:$0xf0]  ;;  %v6981_v6 = vor.u32 %v9704_v0, %v6980_v62  ;;  %v6620_v8 = vld [vmem:[#allocation5 + $0x50] sm:$0xf] }
  0x4d   : > { %3835 = vmatpush.bf16.msra.mxu1 %v7061_v46  ;;  %v7620_v3 = vld [vmem:[#allocation5 + $0x820] sm:$0xf]  ;;  %v9864_v4 = vld [vmem:[#allocation5 + $0x844] sm:$0xf0]  ;;  %v7301_v7 = vor.u32 %v9784_v2, %v7300_v1  ;;  %v9614_v9 = vld [vmem:[#allocation5 + $0x74] sm:$0xf0] }
  0x4e   : > { %3849 = vmatpush.bf16.msra.mxu2 %v7381_v47  ;;  %v6940_v10 = vld [vmem:[#allocation5 + $0x2d0] sm:$0xf]  ;;  %v7621_v11 = vor.u32 %v9864_v4, %v7620_v3  ;;  %v9694_v12 = vld [vmem:[#allocation5 + $0x2f4] sm:$0xf0]  ;;  %v6621_v17 = vor.u32 %v9614_v9, %v6620_v8  ;;  %v6580_v18 = vld [vmem:[#allocation5] sm:$0xf] }
  0x4f   : > { %3863 = vmatpush.bf16.msra.mxu3 %v7701_v51  ;;  %v7260_v13 = vld [vmem:[#allocation5 + $0x550] sm:$0xf]  ;;  %v9774_v14 = vld [vmem:[#allocation5 + $0x574] sm:$0xf0]  ;;  %v9604_v19 = vld [vmem:[#allocation5 + $0x24] sm:$0xf0]  ;;  %v6941_v20 = vor.u32 %v9694_v12, %v6940_v10 }
  0x50   : > { %3822 = vmatpush.bf16.msra.mxu0 %v6701_v57  ;;  %v7580_v15 = vld [vmem:[#allocation5 + $0x7d0] sm:$0xf]  ;;  %v9854_v16 = vld [vmem:[#allocation5 + $0x7f4] sm:$0xf0]  ;;  %v7261_v21 = vor.u32 %v9774_v14, %v7260_v13  ;;  %v6900_v22 = vld [vmem:[#allocation5 + $0x280] sm:$0xf]  ;;  %v6581_v32 = vor.u32 %v9604_v19, %v6580_v18 }
  0x51   : > { %3836 = vmatpush.bf16.msra.mxu1 %v7021_v58  ;;  %v9684_v23 = vld [vmem:[#allocation5 + $0x2a4] sm:$0xf0]  ;;  %v7220_v24 = vld [vmem:[#allocation5 + $0x500] sm:$0xf]  ;;  %v7581_v25 = vor.u32 %v9854_v16, %v7580_v15  ;;  %v8140_v27 = vld [vmem:[#allocation5 + $0xc30] sm:$0xf] }
  0x52   : > { %3850 = vmatpush.bf16.msra.mxu2 %v7341_v59  ;;  %v9764_v26 = vld [vmem:[#allocation5 + $0x524] sm:$0xf0]  ;;  %v9994_v28 = vld [vmem:[#allocation5 + $0xc54] sm:$0xf0]  ;;  %v8460_v29 = vld [vmem:[#allocation5 + $0xeb0] sm:$0xf]  ;;  %v6901_v36 = vor.u32 %v9684_v23, %v6900_v22 }
  0x53   : > { %3864 = vmatpush.bf16.msra.mxu3 %v7661_v63  ;;  %v10074_v30 = vld [vmem:[#allocation5 + $0xed4] sm:$0xf0]  ;;  %v8780_v31 = vld [vmem:[#allocation5 + $0x1130] sm:$0xf]  ;;  %v7540_v34 = vld [vmem:[#allocation5 + $0x780] sm:$0xf]  ;;  %v7221_v37 = vor.u32 %v9764_v26, %v7220_v24  ;;  %v8141_v40 = vor.u32 %v9994_v28, %v8140_v27 }
  0x54   : > { %3823 = vmatpush.bf16.msra.mxu0 %v6661_v5  ;;  %v10154_v33 = vld [vmem:[#allocation5 + $0x1154] sm:$0xf0]  ;;  %v9844_v35 = vld [vmem:[#allocation5 + $0x7a4] sm:$0xf0]  ;;  %v9669_v38 = vld [vmem:[#allocation5 + $0x234] sm:$0xf]  ;;  %v8461_v41 = vor.u32 %v10074_v30, %v8460_v29 }
  0x55   : > { %3837 = vmatpush.bf16.msra.mxu1 %v6981_v6  ;;  %v6862_v39 = vld [vmem:[#allocation5 + $0x258] sm:$0xf0]  ;;  %v8100_v42 = vld [vmem:[#allocation5 + $0xbe0] sm:$0xf]  ;;  %v9984_v43 = vld [vmem:[#allocation5 + $0xc04] sm:$0xf0]  ;;  %v8781_v44 = vor.u32 %v10154_v33, %v8780_v31  ;;  %v7541_v45 = vor.u32 %v9844_v35, %v7540_v34 }
  0x56   : > { %3851 = vmatpush.bf16.msra.mxu2 %v7301_v7  ;;  %v8420_v46 = vld [vmem:[#allocation5 + $0xe60] sm:$0xf]  ;;  %v10064_v47 = vld [vmem:[#allocation5 + $0xe84] sm:$0xf0]  ;;  %v6865_v49 = vor.u32 %v9669_v38, %v6862_v39  ;;  %v9659_v51 = vld [vmem:[#allocation5 + $0x1e4] sm:$0xf]  ;;  %v8101_v56 = vor.u32 %v9984_v43, %v8100_v42 }
  0x57   : > { %3865 = vmatpush.bf16.msra.mxu3 %v7621_v11  ;;  %v8740_v48 = vld [vmem:[#allocation5 + $0x10e0] sm:$0xf]  ;;  %v10144_v50 = vld [vmem:[#allocation5 + $0x1104] sm:$0xf0]  ;;  %v6822_v52 = vld [vmem:[#allocation5 + $0x208] sm:$0xf0]  ;;  %v8421_v57 = vor.u32 %v10064_v47, %v8420_v46 }
  0x58   : > { %3824 = vmatpush.bf16.msra.mxu0 %v6621_v17  ;;  %v6552_v53 = vld [vmem:[%s10804_s21] sm:$0xf]  ;;  %v9595_v54 = vld [vmem:[%s10804_s21 + $0x18] sm:$0xf0]  ;;  %v6560_v55 = vld [vmem:[%s10804_s21 + $0x8] sm:$0xf]  ;;  %v8741_v62 = vor.u32 %v10144_v50, %v8740_v48  ;;  %v6825_v3 = vor.u32 %v9659_v51, %v6822_v52 }
  0x59   : > { %3838 = vmatpush.bf16.msra.mxu1 %v6941_v20  ;;  %v8060_v58 = vld [vmem:[#allocation5 + $0xb90] sm:$0xf]  ;;  %v9974_v59 = vld [vmem:[#allocation5 + $0xbb4] sm:$0xf0]  ;;  %v10821_v60 = vor.u32 %v9595_v54, %v6552_v53  ;;  %v9596_v61 = vld [vmem:[%s10804_s21 + $0x20] sm:$0xf0] }
  0x5a   : > { %3852 = vmatpush.bf16.msra.mxu2 %v7261_v21  ;;  %v8380_v63 = vld [vmem:[#allocation5 + $0xe10] sm:$0xf]  ;;  %v10054_v0 = vld [vmem:[#allocation5 + $0xe34] sm:$0xf0]  ;;  %v10824_v2 = vor.u32 %v9596_v61, %v6560_v55  ;;  %v9592_v5 = vld [vmem:[%s10804_s21 + $0x4] sm:$0xf]  ;;  %v8061_v10 = vor.u32 %v9974_v59, %v8060_v58 }
  0x5b   : > { %3866 = vmatpush.bf16.msra.mxu3 %v7581_v25  ;;  %v8700_v1 = vld [vmem:[#allocation5 + $0x1090] sm:$0xf]  ;;  %v10134_v4 = vld [vmem:[#allocation5 + $0x10b4] sm:$0xf0]  ;;  %v9649_v7 = vld [vmem:[#allocation5 + $0x194] sm:$0xf]  ;;  %v8381_v11 = vor.u32 %v10054_v0, %v8380_v63 }
  0x5c   : > { %3825 = vmatpush.bf16.msra.mxu0 %v6581_v32  ;;  %v6554_v6 = vld [vmem:[%s10804_s21 + $0x1c] sm:$0xf0]  ;;  %v6782_v8 = vld [vmem:[#allocation5 + $0x1b8] sm:$0xf0]  ;;  %v8020_v12 = vld [vmem:[#allocation5 + $0xb40] sm:$0xf]  ;;  %v8701_v14 = vor.u32 %v10134_v4, %v8700_v1 }
  0x5d   : > { %3839 = vmatpush.bf16.msra.mxu1 %v6901_v36  ;;  %v10830_v9 = vor.u32 %v9592_v5, %v6554_v6  ;;  %v9964_v13 = vld [vmem:[#allocation5 + $0xb64] sm:$0xf0]  ;;  %v8340_v15 = vld [vmem:[#allocation5 + $0xdc0] sm:$0xf]  ;;  %v9593_v17 = vld [vmem:[%s10804_s21 + $0xc] sm:$0xf]  ;;  %v6785_v18 = vor.u32 %v9649_v7, %v6782_v8 }
  0x5e   : > { %3853 = vmatpush.bf16.msra.mxu2 %v7221_v37  ;;  %v10044_v16 = vld [vmem:[#allocation5 + $0xde4] sm:$0xf0]  ;;  %v8660_v19 = vld [vmem:[#allocation5 + $0x1040] sm:$0xf]  ;;  %v6562_v21 = vld [vmem:[%s10804_s21 + $0x24] sm:$0xf0]  ;;  %v8021_v25 = vor.u32 %v9964_v13, %v8020_v12 }
  0x5f   : > { %3867 = vmatpush.bf16.msra.mxu3 %v7541_v45  ;;  %3826 = vmatmul.bf16.vlgmr.msra.gmra.mxu0 %v10821_v60  ;;  %v10124_v20 = vld [vmem:[#allocation5 + $0x1064] sm:$0xf0]  ;;  %v9639_v22 = vld [vmem:[#allocation5 + $0x144] sm:$0xf]  ;;  %v6742_v23 = vld [vmem:[#allocation5 + $0x168] sm:$0xf0]  ;;  %v10835_v24 = vor.u32 %v9593_v17, %v6562_v21  ;;  %v8341_v26 = vor.u32 %v10044_v16, %v8340_v15 }
  0x60   : > { %3874 = vmatpush.bf16.msrb.mxu0 %v8141_v40  ;;  %3840 = vmatmul.bf16.vlgmr.msra.gmra.mxu1 %v10830_v9  ;;  %v7980_v27 = vld [vmem:[#allocation5 + $0xaf0] sm:$0xf]  ;;  %v8661_v28 = vor.u32 %v10124_v20, %v8660_v19  ;;  %v9954_v29 = vld [vmem:[#allocation5 + $0xb14] sm:$0xf0]  ;;  %v6745_v32 = vor.u32 %v9639_v22, %v6742_v23  ;;  %v9629_v35 = vld [vmem:[#allocation5 + $0xf4] sm:$0xf] }
  0x61   : > { %3888 = vmatpush.bf16.msrb.mxu1 %v8461_v41  ;;  %3854 = vmatmul.bf16.vlgmr.msra.gmra.mxu2 %v10824_v2  ;;  %v8300_v30 = vld [vmem:[#allocation5 + $0xd70] sm:$0xf]  ;;  %v10034_v31 = vld [vmem:[#allocation5 + $0xd94] sm:$0xf0]  ;;  %v6702_v36 = vld [vmem:[#allocation5 + $0x118] sm:$0xf0]  ;;  %v7981_v37 = vor.u32 %v9954_v29, %v7980_v27 }
  0x62   : > { %3902 = vmatpush.bf16.msrb.mxu2 %v8781_v44  ;;  %3868 = vmatmul.bf16.vlgmr.msra.gmra.mxu3 %v10835_v24  ;;  %v8620_v33 = vld [vmem:[#allocation5 + $0xff0] sm:$0xf]  ;;  %v10114_v34 = vld [vmem:[#allocation5 + $0x1014] sm:$0xf0]  ;;  %v8301_v38 = vor.u32 %v10034_v31, %v8300_v30  ;;  %v7940_v39 = vld [vmem:[#allocation5 + $0xaa0] sm:$0xf]  ;;  %v6705_v44 = vor.u32 %v9629_v35, %v6702_v36 }
  0x63   : > { %3916 = vmatpush.bf16.msrb.mxu3 %v6865_v49  ;;  %v8621_v40 = vor.u32 %v10114_v34, %v8620_v33  ;;  %v9944_v41 = vld [vmem:[#allocation5 + $0xac4] sm:$0xf0]  ;;  %v8260_v42 = vld [vmem:[#allocation5 + $0xd20] sm:$0xf]  ;;  %v9619_v47 = vld [vmem:[#allocation5 + $0xa4] sm:$0xf] }
  0x64   : > { %3875 = vmatpush.bf16.msrb.mxu0 %v8101_v56  ;;  %v10024_v43 = vld [vmem:[#allocation5 + $0xd44] sm:$0xf0]  ;;  %v8580_v45 = vld [vmem:[#allocation5 + $0xfa0] sm:$0xf]  ;;  %v6662_v48 = vld [vmem:[#allocation5 + $0xc8] sm:$0xf0]  ;;  %v7941_v49 = vor.u32 %v9944_v41, %v7940_v39 }
  0x65   : > { %3889 = vmatpush.bf16.msrb.mxu1 %v8421_v57  ;;  %v10104_v46 = vld [vmem:[#allocation5 + $0xfc4] sm:$0xf0]  ;;  %v8261_v50 = vor.u32 %v10024_v43, %v8260_v42  ;;  %v7900_v51 = vld [vmem:[#allocation5 + $0xa50] sm:$0xf]  ;;  %v9934_v52 = vld [vmem:[#allocation5 + $0xa74] sm:$0xf0]  ;;  %v6665_v57 = vor.u32 %v9619_v47, %v6662_v48 }
  0x66   : > { %3903 = vmatpush.bf16.msrb.mxu2 %v8741_v62  ;;  %v8581_v53 = vor.u32 %v10104_v46, %v8580_v45  ;;  %v8220_v54 = vld [vmem:[#allocation5 + $0xcd0] sm:$0xf]  ;;  %v10014_v55 = vld [vmem:[#allocation5 + $0xcf4] sm:$0xf0]  ;;  %v9609_v59 = vld [vmem:[#allocation5 + $0x54] sm:$0xf] }
  0x67   : > { %3917 = vmatpush.bf16.msrb.mxu3 %v6825_v3  ;;  %v8540_v56 = vld [vmem:[#allocation5 + $0xf50] sm:$0xf]  ;;  %v10094_v58 = vld [vmem:[#allocation5 + $0xf74] sm:$0xf0]  ;;  %v6622_v61 = vld [vmem:[#allocation5 + $0x78] sm:$0xf0]  ;;  %v7901_v3 = vor.u32 %v9934_v52, %v7900_v51  ;;  %v8221_v4 = vor.u32 %v10014_v55, %v8220_v54 }
  0x68   : > { %3876 = vmatpush.bf16.msrb.mxu0 %v8061_v10  ;;  %v7860_v62 = vld [vmem:[#allocation5 + $0xa00] sm:$0xf]  ;;  %v9924_v63 = vld [vmem:[#allocation5 + $0xa24] sm:$0xf0]  ;;  %v9749_v7 = vld [vmem:[#allocation5 + $0x4b4] sm:$0xf]  ;;  %v8541_v8 = vor.u32 %v10094_v58, %v8540_v56  ;;  %v6625_v13 = vor.u32 %v9609_v59, %v6622_v61 }
  0x69   : > { %3890 = vmatpush.bf16.msrb.mxu1 %v8381_v11  ;;  %v8180_v0 = vld [vmem:[#allocation5 + $0xc80] sm:$0xf]  ;;  %v10004_v1 = vld [vmem:[#allocation5 + $0xca4] sm:$0xf0]  ;;  %v7182_v10 = vld [vmem:[#allocation5 + $0x4d8] sm:$0xf0]  ;;  %v7861_v20 = vor.u32 %v9924_v63, %v7860_v62 }
  0x6a   : > { %3904 = vmatpush.bf16.msrb.mxu2 %v8701_v14  ;;  %v8500_v5 = vld [vmem:[#allocation5 + $0xf00] sm:$0xf]  ;;  %v10084_v6 = vld [vmem:[#allocation5 + $0xf24] sm:$0xf0]  ;;  %v9829_v11 = vld [vmem:[#allocation5 + $0x734] sm:$0xf]  ;;  %v8181_v21 = vor.u32 %v10004_v1, %v8180_v0  ;;  %v7185_v27 = vor.u32 %v9749_v7, %v7182_v10 }
  0x6b   : > { %3918 = vmatpush.bf16.msrb.mxu3 %v6785_v18  ;;  %v7502_v12 = vld [vmem:[#allocation5 + $0x758] sm:$0xf0]  ;;  %v9909_v14 = vld [vmem:[#allocation5 + $0x9b4] sm:$0xf]  ;;  %v9599_v16 = vld [vmem:[#allocation5 + $0x4] sm:$0xf] }
  0x6c   : > { %3877 = vmatpush.bf16.msrb.mxu0 %v8021_v25  ;;  %v7822_v15 = vld [vmem:[#allocation5 + $0x9d8] sm:$0xf0]  ;;  %v6582_v17 = vld [vmem:[#allocation5 + $0x28] sm:$0xf0]  ;;  %v6568_v18 = vld [vmem:[%s10804_s21 + $0x10] sm:$0xf]  ;;  %v7505_v31 = vor.u32 %v9829_v11, %v7502_v12 }
  0x6d   : > { %3891 = vmatpush.bf16.msrb.mxu1 %v8341_v26  ;;  %v9597_v19 = vld [vmem:[%s10804_s21 + $0x28] sm:$0xf0]  ;;  %v6576_v22 = vld [vmem:[%s10804_s21 + $0x18] sm:$0xf]  ;;  %v9598_v23 = vld [vmem:[%s10804_s21 + $0x30] sm:$0xf0]  ;;  %v8501_v26 = vor.u32 %v10084_v6, %v8500_v5  ;;  %v6585_v36 = vor.u32 %v9599_v16, %v6582_v17 }
  0x6e   : > { %3905 = vmatpush.bf16.msrb.mxu2 %v8661_v28  ;;  %v9989_v25 = vld [vmem:[#allocation5 + $0xc34] sm:$0xf]  ;;  %v8142_v28 = vld [vmem:[#allocation5 + $0xc58] sm:$0xf0]  ;;  %v6570_v30 = vld [vmem:[%s10804_s21 + $0x2c] sm:$0xf0]  ;;  %v10846_v41 = vor.u32 %v9598_v23, %v6576_v22 }
  0x6f   : > { %3919 = vmatpush.bf16.msrb.mxu3 %v6745_v32  ;;  %v9594_v29 = vld [vmem:[%s10804_s21 + $0x14] sm:$0xf]  ;;  %v7825_v32 = vor.u32 %v9909_v14, %v7822_v15  ;;  %v7142_v34 = vld [vmem:[#allocation5 + $0x488] sm:$0xf0]  ;;  %v8145_v42 = vor.u32 %v9989_v25, %v8142_v28  ;;  %v9809_v51 = vld [vmem:[#allocation5 + $0x694] sm:$0xf] }
  0x70   : > { %3878 = vmatpush.bf16.msrb.mxu0 %v7981_v37  ;;  %v9739_v33 = vld [vmem:[#allocation5 + $0x464] sm:$0xf]  ;;  %v10844_v37 = vor.u32 %v9597_v19, %v6568_v18  ;;  %v10848_v43 = vor.u32 %v9594_v29, %v6570_v30  ;;  %v8102_v46 = vld [vmem:[#allocation5 + $0xc08] sm:$0xf0]  ;;  %v7422_v52 = vld [vmem:[#allocation5 + $0x6b8] sm:$0xf0] }
  0x71   : > { %3892 = vmatpush.bf16.msrb.mxu1 %v8301_v38  ;;  %v9819_v35 = vld [vmem:[#allocation5 + $0x6e4] sm:$0xf]  ;;  %v7462_v38 = vld [vmem:[#allocation5 + $0x708] sm:$0xf0]  ;;  %v7742_v54 = vld [vmem:[#allocation5 + $0x938] sm:$0xf0]  ;;  %v7425_v59 = vor.u32 %v9809_v51, %v7422_v52 }
  0x72   : > { %3906 = vmatpush.bf16.msrb.mxu2 %v8621_v40  ;;  %v9899_v39 = vld [vmem:[#allocation5 + $0x964] sm:$0xf]  ;;  %v7782_v40 = vld [vmem:[#allocation5 + $0x988] sm:$0xf0]  ;;  %v7465_v47 = vor.u32 %v9819_v35, %v7462_v38  ;;  %v8062_v58 = vld [vmem:[#allocation5 + $0xbb8] sm:$0xf0] }
  0x73   : > { %3920 = vmatpush.bf16.msrb.mxu3 %v6705_v44  ;;  %v7145_v44 = vor.u32 %v9739_v33, %v7142_v34  ;;  %v9979_v45 = vld [vmem:[#allocation5 + $0xbe4] sm:$0xf]  ;;  %v7785_v48 = vor.u32 %v9899_v39, %v7782_v40  ;;  %v7062_v63 = vld [vmem:[#allocation5 + $0x3e8] sm:$0xf0]  ;;  %v9709_v12 = vld [vmem:[#allocation5 + $0x374] sm:$0xf] }
  0x74   : > { %3879 = vmatpush.bf16.msrb.mxu0 %v7941_v49  ;;  %v9729_v49 = vld [vmem:[#allocation5 + $0x414] sm:$0xf]  ;;  %v8105_v55 = vor.u32 %v9979_v45, %v8102_v46  ;;  %v9719_v62 = vld [vmem:[#allocation5 + $0x3c4] sm:$0xf]  ;;  %v7382_v1 = vld [vmem:[#allocation5 + $0x668] sm:$0xf0] }
  0x75   : > { %3893 = vmatpush.bf16.msrb.mxu1 %v8261_v50  ;;  %v7102_v50 = vld [vmem:[#allocation5 + $0x438] sm:$0xf0]  ;;  %v9799_v0 = vld [vmem:[#allocation5 + $0x644] sm:$0xf]  ;;  %v7065_v6 = vor.u32 %v9719_v62, %v7062_v63  ;;  %v9789_v14 = vld [vmem:[#allocation5 + $0x5f4] sm:$0xf] }
  0x76   : > { %3907 = vmatpush.bf16.msrb.mxu2 %v8581_v53  ;;  %v9889_v53 = vld [vmem:[#allocation5 + $0x914] sm:$0xf]  ;;  %v7105_v56 = vor.u32 %v9729_v49, %v7102_v50  ;;  %v9959_v7 = vld [vmem:[#allocation5 + $0xb44] sm:$0xf]  ;;  %v7385_v10 = vor.u32 %v9799_v0, %v7382_v1  ;;  %v7342_v15 = vld [vmem:[#allocation5 + $0x618] sm:$0xf0] }
  0x77   : > { %3921 = vmatpush.bf16.msrb.mxu3 %v6665_v57  ;;  %v9969_v57 = vld [vmem:[#allocation5 + $0xb94] sm:$0xf]  ;;  %v7745_v61 = vor.u32 %v9889_v53, %v7742_v54  ;;  %v7662_v17 = vld [vmem:[#allocation5 + $0x898] sm:$0xf0]  ;;  %v7345_v22 = vor.u32 %v9789_v14, %v7342_v15  ;;  %v9699_v25 = vld [vmem:[#allocation5 + $0x324] sm:$0xf] }
  0x78   : > { %3880 = vmatpush.bf16.msrb.mxu0 %v7901_v3  ;;  %v9879_v3 = vld [vmem:[#allocation5 + $0x8c4] sm:$0xf]  ;;  %v8065_v5 = vor.u32 %v9969_v57, %v8062_v58  ;;  %v9869_v16 = vld [vmem:[#allocation5 + $0x874] sm:$0xf]  ;;  %v7302_v28 = vld [vmem:[#allocation5 + $0x5c8] sm:$0xf0] }
  0x79   : > { %3894 = vmatpush.bf16.msrb.mxu1 %v8221_v4  ;;  %v7702_v4 = vld [vmem:[#allocation5 + $0x8e8] sm:$0xf0]  ;;  %v7665_v23 = vor.u32 %v9869_v16, %v7662_v17  ;;  %v9859_v29 = vld [vmem:[#allocation5 + $0x824] sm:$0xf]  ;;  %v9689_v38 = vld [vmem:[#allocation5 + $0x2d4] sm:$0xf] }
  0x7a   : > { %3908 = vmatpush.bf16.msrb.mxu2 %v8541_v8  ;;  %v8022_v8 = vld [vmem:[#allocation5 + $0xb68] sm:$0xf0]  ;;  %v7705_v11 = vor.u32 %v9879_v3, %v7702_v4  ;;  %v9939_v33 = vld [vmem:[#allocation5 + $0xaa4] sm:$0xf]  ;;  %v6942_v39 = vld [vmem:[#allocation5 + $0x2f8] sm:$0xf0] }
  0x7b   : > { %3922 = vmatpush.bf16.msrb.mxu3 %v6625_v13  ;;  %v7022_v13 = vld [vmem:[#allocation5 + $0x398] sm:$0xf0]  ;;  %v8025_v18 = vor.u32 %v9959_v7, %v8022_v8  ;;  %v7622_v30 = vld [vmem:[#allocation5 + $0x848] sm:$0xf0]  ;;  %v9769_v40 = vld [vmem:[#allocation5 + $0x554] sm:$0xf] }
  0x7c   : > { %3881 = vmatpush.bf16.msrb.mxu0 %v7861_v20  ;;  %v7025_v19 = vor.u32 %v9709_v12, %v7022_v13  ;;  %v9949_v20 = vld [vmem:[#allocation5 + $0xaf4] sm:$0xf]  ;;  %v7942_v34 = vld [vmem:[#allocation5 + $0xac8] sm:$0xf0]  ;;  %v7582_v45 = vld [vmem:[#allocation5 + $0x7f8] sm:$0xf0] }
  0x7d   : > { %3895 = vmatpush.bf16.msrb.mxu1 %v8181_v21  ;;  %v7982_v21 = vld [vmem:[#allocation5 + $0xb18] sm:$0xf0]  ;;  %v7945_v46 = vor.u32 %v9939_v33, %v7942_v34  ;;  %v9679_v50 = vld [vmem:[#allocation5 + $0x284] sm:$0xf]  ;;  %v6902_v51 = vld [vmem:[#allocation5 + $0x2a8] sm:$0xf0] }
  0x7e   : > { %3909 = vmatpush.bf16.msrb.mxu2 %v8501_v26  ;;  %v6982_v26 = vld [vmem:[#allocation5 + $0x348] sm:$0xf0]  ;;  %v7902_v49 = vld [vmem:[#allocation5 + $0xa78] sm:$0xf0]  ;;  %v9759_v54 = vld [vmem:[#allocation5 + $0x504] sm:$0xf]  ;;  %v6905_v1 = vor.u32 %v9679_v50, %v6902_v51 }
  0x7f   : > { %3923 = vmatpush.bf16.msrb.mxu3 %v6585_v36  ;;  %3882 = vmatmul.bf16.vlgmr.msrb.gmra.mxu0 %v10844_v37  ;;  %v7625_v36 = vor.u32 %v9859_v29, %v7622_v30  ;;  %v7542_v57 = vld [vmem:[#allocation5 + $0x7a8] sm:$0xf0]  ;;  %v10069_v58 = vld [vmem:[#allocation5 + $0xeb4] sm:$0xf]  ;;  %v8782_v63 = vld [vmem:[#allocation5 + $0x1158] sm:$0xf0] }
  0x80   : > { %3930 = vmatpush.bf16.msra.mxu0 %v7185_v27  ;;  %3896 = vmatmul.bf16.vlgmr.msrb.gmra.mxu1 %v10848_v43  ;;  %v9779_v27 = vld [vmem:[#allocation5 + $0x5a4] sm:$0xf]  ;;  %v10149_v62 = vld [vmem:[#allocation5 + $0x1134] sm:$0xf]  ;;  %v6868_v0 = vld [vmem:[#allocation5 + $0x238] sm:$0xf] }
  0x81   : > { %3944 = vmatpush.bf16.msra.mxu1 %v7505_v31  ;;  %3910 = vmatmul.bf16.vlgmr.msrb.gmra.mxu2 %v10846_v41  ;;  %v7985_v31 = vor.u32 %v9949_v20, %v7982_v21  ;;  %v7305_v35 = vor.u32 %v9779_v27, %v7302_v28  ;;  %v9675_v3 = vld [vmem:[#allocation5 + $0x25c] sm:$0xf0]  ;;  %v9919_v4 = vld [vmem:[#allocation5 + $0xa04] sm:$0xf]  ;;  %v7188_v8 = vld [vmem:[#allocation5 + $0x4b8] sm:$0xf]  ;;  %v8785_v12 = vor.u32 %v10149_v62, %v8782_v63 }
  0x82   : > { %3958 = vmatpush.bf16.msra.mxu2 %v7825_v32  ;;  %3924 = vmatmul.bf16.vlgmr.msrb.gmra.mxu3 %v10821_v60  ;;  %v6985_v32 = vor.u32 %v9699_v25, %v6982_v26  ;;  %v10059_v13 = vld [vmem:[#allocation5 + $0xe64] sm:$0xf]  ;;  %v6869_v14 = vor.u32 %v9675_v3, %v6868_v0  ;;  %v8422_v16 = vld [vmem:[#allocation5 + $0xe88] sm:$0xf0]  ;;  %v6828_v20 = vld [vmem:[#allocation5 + $0x1e8] sm:$0xf] }
  0x83   : > { %3972 = vmatpush.bf16.msra.mxu3 %v8145_v42  ;;  %v7262_v42 = vld [vmem:[#allocation5 + $0x578] sm:$0xf0]  ;;  %v10139_v17 = vld [vmem:[#allocation5 + $0x10e4] sm:$0xf]  ;;  %v9665_v21 = vld [vmem:[#allocation5 + $0x20c] sm:$0xf0]  ;;  %v8425_v25 = vor.u32 %v10059_v13, %v8422_v16 }
  0x84   : > { %3931 = vmatpush.bf16.msra.mxu0 %v7145_v44  ;;  %v9849_v44 = vld [vmem:[#allocation5 + $0x7d4] sm:$0xf]  ;;  %v7265_v52 = vor.u32 %v9769_v40, %v7262_v42  ;;  %v6829_v28 = vor.u32 %v9665_v21, %v6828_v20  ;;  %v8382_v29 = vld [vmem:[#allocation5 + $0xe38] sm:$0xf0]  ;;  %v6788_v33 = vld [vmem:[#allocation5 + $0x198] sm:$0xf] }
  0x85   : > { %3945 = vmatpush.bf16.msra.mxu1 %v7465_v47  ;;  %v9929_v47 = vld [vmem:[#allocation5 + $0xa54] sm:$0xf]  ;;  %v7585_v53 = vor.u32 %v9849_v44, %v7582_v45  ;;  %v9655_v34 = vld [vmem:[#allocation5 + $0x1bc] sm:$0xf0]  ;;  %v10039_v40 = vld [vmem:[#allocation5 + $0xdc4] sm:$0xf] }
  0x86   : > { %3959 = vmatpush.bf16.msra.mxu2 %v7785_v48  ;;  %v6945_v48 = vor.u32 %v9689_v38, %v6942_v39  ;;  %v10049_v27 = vld [vmem:[#allocation5 + $0xe14] sm:$0xf]  ;;  %v6789_v42 = vor.u32 %v9655_v34, %v6788_v33  ;;  %v8342_v44 = vld [vmem:[#allocation5 + $0xde8] sm:$0xf0]  ;;  %v10119_v45 = vld [vmem:[#allocation5 + $0x1044] sm:$0xf] }
  0x87   : > { %3973 = vmatpush.bf16.msra.mxu3 %v8105_v55  ;;  %v7222_v55 = vld [vmem:[#allocation5 + $0x528] sm:$0xf0]  ;;  %v10129_v30 = vld [vmem:[#allocation5 + $0x1094] sm:$0xf]  ;;  %v8385_v38 = vor.u32 %v10049_v27, %v8382_v29  ;;  %v7068_v50 = vld [vmem:[#allocation5 + $0x3c8] sm:$0xf] }
  0x88   : > { %3932 = vmatpush.bf16.msra.mxu0 %v7105_v56  ;;  %v9839_v56 = vld [vmem:[#allocation5 + $0x784] sm:$0xf]  ;;  %v9725_v51 = vld [vmem:[#allocation5 + $0x3ec] sm:$0xf0]  ;;  %v9635_v62 = vld [vmem:[#allocation5 + $0x11c] sm:$0xf0] }
  0x89   : > { %3946 = vmatpush.bf16.msra.mxu1 %v7425_v59  ;;  %v8462_v59 = vld [vmem:[#allocation5 + $0xed8] sm:$0xf0]  ;;  %v7545_v7 = vor.u32 %v9839_v56, %v7542_v57  ;;  %v10109_v57 = vld [vmem:[#allocation5 + $0xff4] sm:$0xf]  ;;  %v7028_v63 = vld [vmem:[#allocation5 + $0x378] sm:$0xf] }
  0x8a   : > { %3960 = vmatpush.bf16.msra.mxu2 %v7745_v61  ;;  %v7905_v61 = vor.u32 %v9929_v47, %v7902_v49  ;;  %v9645_v49 = vld [vmem:[#allocation5 + $0x16c] sm:$0xf0]  ;;  %v8302_v56 = vld [vmem:[#allocation5 + $0xd98] sm:$0xf0]  ;;  %v9715_v0 = vld [vmem:[#allocation5 + $0x39c] sm:$0xf0] }
  0x8b   : > { %3974 = vmatpush.bf16.msra.mxu3 %v8065_v5  ;;  %v7862_v5 = vld [vmem:[#allocation5 + $0xa28] sm:$0xf0]  ;;  %v6988_v13 = vld [vmem:[#allocation5 + $0x328] sm:$0xf]  ;;  %v10089_v20 = vld [vmem:[#allocation5 + $0xf54] sm:$0xf] }
  0x8c   : > { %3933 = vmatpush.bf16.msra.mxu0 %v7065_v6  ;;  %v7225_v6 = vor.u32 %v9759_v54, %v7222_v55  ;;  %v7865_v15 = vor.u32 %v9919_v4, %v7862_v5  ;;  %v10029_v54 = vld [vmem:[#allocation5 + $0xd74] sm:$0xf]  ;;  %v10019_v4 = vld [vmem:[#allocation5 + $0xd24] sm:$0xf]  ;;  %v8542_v21 = vld [vmem:[#allocation5 + $0xf78] sm:$0xf0] }
  0x8d   : > { %3947 = vmatpush.bf16.msra.mxu1 %v7385_v10  ;;  %v9755_v10 = vld [vmem:[#allocation5 + $0x4dc] sm:$0xf0]  ;;  %v8545_v29 = vor.u32 %v10089_v20, %v8542_v21  ;;  %v8502_v34 = vld [vmem:[#allocation5 + $0xf28] sm:$0xf0]  ;;  %v7388_v21 = vld [vmem:[#allocation5 + $0x648] sm:$0xf] }
  0x8e   : > { %3961 = vmatpush.bf16.msra.mxu2 %v7705_v11  ;;  %v8465_v11 = vor.u32 %v10069_v58, %v8462_v59  ;;  %v8622_v58 = vld [vmem:[#allocation5 + $0x1018] sm:$0xf0]  ;;  %v7069_v59 = vor.u32 %v9725_v51, %v7068_v50  ;;  %v9695_v27 = vld [vmem:[#allocation5 + $0x2fc] sm:$0xf0]  ;;  %v9685_v50 = vld [vmem:[#allocation5 + $0x2ac] sm:$0xf0] }
  0x8f   : > { %3975 = vmatpush.bf16.msra.mxu3 %v8025_v18  ;;  %v8742_v18 = vld [vmem:[#allocation5 + $0x1108] sm:$0xf0]  ;;  %v8625_v3 = vor.u32 %v10109_v57, %v8622_v58  ;;  %v7468_v57 = vld [vmem:[#allocation5 + $0x6e8] sm:$0xf]  ;;  %v9825_v58 = vld [vmem:[#allocation5 + $0x70c] sm:$0xf0] }
  0x90   : > { %3934 = vmatpush.bf16.msra.mxu0 %v7025_v19  ;;  %v7189_v19 = vor.u32 %v9755_v10, %v7188_v8  ;;  %v8745_v26 = vor.u32 %v10139_v17, %v8742_v18  ;;  %v8582_v8 = vld [vmem:[#allocation5 + $0xfc8] sm:$0xf0]  ;;  %v7029_v10 = vor.u32 %v9715_v0, %v7028_v63  ;;  %v10009_v17 = vld [vmem:[#allocation5 + $0xcd4] sm:$0xf]  ;;  %v8108_v63 = vld [vmem:[#allocation5 + $0xbe8] sm:$0xf] }
  0x91   : > { %3948 = vmatpush.bf16.msra.mxu1 %v7345_v22  ;;  %v7148_v22 = vld [vmem:[#allocation5 + $0x468] sm:$0xf]  ;;  %v9985_v0 = vld [vmem:[#allocation5 + $0xc0c] sm:$0xf0]  ;;  %s11060_s30 = sshll.u32 %s6530_s6, 1  ;;  %vm6410_vm4 = vcmask 7168  }
  0x92   : > { %3962 = vmatpush.bf16.msra.mxu2 %v7665_v23  ;;  %v9745_v23 = vld [vmem:[#allocation5 + $0x48c] sm:$0xf0]  ;;  %p379_p1 = scmp.lt.s32.totalorder %s11060_s30, 3 }
  0x93   : > { %3976 = vmatpush.bf16.msra.mxu3 %v7985_v31  ;;  %v8702_v31 = vld [vmem:[#allocation5 + $0x10b8] sm:$0xf0] }
  0x94   : > { %3935 = vmatpush.bf16.msra.mxu0 %v6985_v32  ;;  %v7149_v32 = vor.u32 %v9745_v23, %v7148_v22  ;;  %v8705_v39 = vor.u32 %v10129_v30, %v8702_v31  ;;  %v6628_v23 = vld [vmem:[#allocation5 + $0x58] sm:$0xf]  ;;  %v9999_v30 = vld [vmem:[#allocation5 + $0xc84] sm:$0xf]  ;;  %v8182_v31 = vld [vmem:[#allocation5 + $0xca8] sm:$0xf0] }
  0x95   : > { %3949 = vmatpush.bf16.msra.mxu1 %v7305_v35  ;;  %v7108_v35 = vld [vmem:[#allocation5 + $0x418] sm:$0xf]  ;;  %s11412_s30 = smov (!%p379_p1, %s11060_s30), 3 }
  0x96   : > { %3963 = vmatpush.bf16.msra.mxu2 %v7625_v36  ;;  %v9735_v36 = vld [vmem:[#allocation5 + $0x43c] sm:$0xf0]  ;;  %s6547_s29 = sshll.u32 %s11412_s30, 3 }
  0x97   : > { %3977 = vmatpush.bf16.msra.mxu3 %v7945_v46  ;;  %v8662_v46 = vld [vmem:[#allocation5 + $0x1068] sm:$0xf0]  ;;  %v7109_v47 = vor.u32 %v9735_v36, %v7108_v35  ;;  %v6588_v35 = vld [vmem:[#allocation5 + $0x8] sm:$0xf]  ;;  %v9605_v36 = vld [vmem:[#allocation5 + $0x2c] sm:$0xf0]  ;;  %s11085_s12 = scalar_lea.vmem %s11306_s1, %s6547_s29  ;;  %s388_s14 = scalar_lea.vmem %s11312_s7, %s6547_s29 }
  0x98   : > { %3936 = vmatpush.bf16.msra.mxu0 %v6945_v48  ;;  %v6748_v48 = vld [vmem:[#allocation5 + $0x148] sm:$0xf]  ;;  %v6589_v51 = vor.u32 %v9605_v36, %v6588_v35  ;;  %v9795_v35 = vld [vmem:[#allocation5 + $0x61c] sm:$0xf0]  ;;  %v7668_v36 = vld [vmem:[#allocation5 + $0x878] sm:$0xf] }
  0x99   : > { %3950 = vmatpush.bf16.msra.mxu1 %v7265_v52  ;;  %v8345_v52 = vor.u32 %v10039_v40, %v8342_v44  ;;  %v6749_v55 = vor.u32 %v9645_v49, %v6748_v48  ;;  %v9835_v40 = vld [vmem:[#allocation5 + $0x75c] sm:$0xf0]  ;;  %v6908_v49 = vld [vmem:[#allocation5 + $0x288] sm:$0xf] }
  0x9a   : > { %3964 = vmatpush.bf16.msra.mxu2 %v7585_v53  ;;  %v8665_v53 = vor.u32 %v10119_v45, %v8662_v46  ;;  %v9915_v44 = vld [vmem:[#allocation5 + $0x9dc] sm:$0xf0]  ;;  %v8148_v45 = vld [vmem:[#allocation5 + $0xc38] sm:$0xf] }
  0x9b   : > { %3978 = vmatpush.bf16.msra.mxu3 %v7905_v61  ;;  %v6708_v61 = vld [vmem:[#allocation5 + $0xf8] sm:$0xf]  ;;  %v9995_v46 = vld [vmem:[#allocation5 + $0xc5c] sm:$0xf0] }
  0x9c   : > { %3937 = vmatpush.bf16.msra.mxu0 %v6905_v1  ;;  %v8305_v1 = vor.u32 %v10029_v54, %v8302_v56  ;;  %v6709_v5 = vor.u32 %v9635_v62, %v6708_v61  ;;  %v10075_v54 = vld [vmem:[#allocation5 + $0xedc] sm:$0xf0]  ;;  %v8149_v56 = vor.u32 %v9995_v46, %v8148_v45  ;;  %v6909_v61 = vor.u32 %v9685_v50, %v6908_v49  ;;  %v9905_v62 = vld [vmem:[#allocation5 + $0x98c] sm:$0xf0]  ;;  %v8308_v45 = vld [vmem:[#allocation5 + $0xd78] sm:$0xf] }
  0x9d   : > { %3951 = vmatpush.bf16.msra.mxu1 %v7225_v6  ;;  %v8262_v6 = vld [vmem:[#allocation5 + $0xd48] sm:$0xf0]  ;;  %v10035_v46 = vld [vmem:[#allocation5 + $0xd9c] sm:$0xf0]  ;;  %v7308_v49 = vld [vmem:[#allocation5 + $0x5a8] sm:$0xf] }
  0x9e   : > { %3965 = vmatpush.bf16.msra.mxu2 %v7545_v7  ;;  %v10099_v7 = vld [vmem:[#allocation5 + $0xfa4] sm:$0xf]  ;;  %v9785_v50 = vld [vmem:[#allocation5 + $0x5cc] sm:$0xf0] }
  0x9f   : > { %3979 = vmatpush.bf16.msra.mxu3 %v7865_v15  ;;  %3938 = vmatmul.bf16.vlgmr.msra.gmra.mxu0 %v10830_v9  ;;  %v8265_v15 = vor.u32 %v10019_v4, %v8262_v6  ;;  %v8585_v16 = vor.u32 %v10099_v7, %v8582_v8  ;;  %v8428_v4 = vld [vmem:[#allocation5 + $0xe68] sm:$0xf]  ;;  %v8109_v7 = vor.u32 %v9985_v0, %v8108_v63  ;;  %v7428_v8 = vld [vmem:[#allocation5 + $0x698] sm:$0xf]  ;;  %v9775_v63 = vld [vmem:[#allocation5 + $0x57c] sm:$0xf0] }
  0xa0   : > { %3986 = vmatpush.bf16.msrb.mxu0 %v8465_v11  ;;  %3952 = vmatmul.bf16.vlgmr.msra.gmra.mxu1 %v10824_v2  ;;  %v6668_v11 = vld [vmem:[#allocation5 + $0xa8] sm:$0xf]  ;;  %v7588_v0 = vld [vmem:[#allocation5 + $0x7d8] sm:$0xf] }
  0xa1   : > { %4000 = vmatpush.bf16.msrb.mxu1 %v8785_v12  ;;  %3966 = vmatmul.bf16.vlgmr.msra.gmra.mxu2 %v10835_v24  ;;  %v9625_v12 = vld [vmem:[#allocation5 + $0xcc] sm:$0xf0] }
  0xa2   : > { %4014 = vmatpush.bf16.msrb.mxu2 %v6869_v14  ;;  %3980 = vmatmul.bf16.vlgmr.msra.gmra.mxu3 %v10844_v37  ;;  %v9705_v14 = vld [vmem:[#allocation5 + $0x34c] sm:$0xf0]  ;;  %v6669_v18 = vor.u32 %v9625_v12, %v6668_v11  ;;  %v7748_v11 = vld [vmem:[#allocation5 + $0x918] sm:$0xf]  ;;  %v9895_v12 = vld [vmem:[#allocation5 + $0x93c] sm:$0xf0] }
  0xa3   : > { %4028 = vmatpush.bf16.msrb.mxu3 %v7189_v19  ;;  %v8222_v19 = vld [vmem:[#allocation5 + $0xcf8] sm:$0xf0]  ;;  %v6989_v22 = vor.u32 %v9705_v14, %v6988_v13  ;;  %v8068_v13 = vld [vmem:[#allocation5 + $0xb98] sm:$0xf]  ;;  %v9975_v14 = vld [vmem:[#allocation5 + $0xbbc] sm:$0xf0] }
  0xa4   : > { %3987 = vmatpush.bf16.msrb.mxu0 %v8425_v25  ;;  %v9615_v25 = vld [vmem:[#allocation5 + $0x7c] sm:$0xf0]  ;;  %v8069_v20 = vor.u32 %v9975_v14, %v8068_v13  ;;  %v7548_v14 = vld [vmem:[#allocation5 + $0x788] sm:$0xf] }
  0xa5   : > { %4001 = vmatpush.bf16.msrb.mxu1 %v8745_v26  ;;  %v6948_v26 = vld [vmem:[#allocation5 + $0x2d8] sm:$0xf]  ;;  %v6629_v33 = vor.u32 %v9615_v25, %v6628_v23  ;;  %v7708_v23 = vld [vmem:[#allocation5 + $0x8c8] sm:$0xf]  ;;  %v9885_v25 = vld [vmem:[#allocation5 + $0x8ec] sm:$0xf0] }
  0xa6   : > { %4015 = vmatpush.bf16.msrb.mxu2 %v6829_v28  ;;  %v8225_v28 = vor.u32 %v10009_v17, %v8222_v19  ;;  %v8388_v17 = vld [vmem:[#allocation5 + $0xe18] sm:$0xf]  ;;  %v7749_v19 = vor.u32 %v9895_v12, %v7748_v11  ;;  %v9765_v11 = vld [vmem:[#allocation5 + $0x52c] sm:$0xf0] }
  0xa7   : > { %4029 = vmatpush.bf16.msrb.mxu3 %v7149_v32  ;;  %v10079_v32 = vld [vmem:[#allocation5 + $0xf04] sm:$0xf] }
  0xa8   : > { %3988 = vmatpush.bf16.msrb.mxu0 %v8385_v38  ;;  %v6949_v38 = vor.u32 %v9695_v27, %v6948_v26  ;;  %v8505_v48 = vor.u32 %v10079_v32, %v8502_v34  ;;  %v8028_v26 = vld [vmem:[#allocation5 + $0xb48] sm:$0xf]  ;;  %v9965_v27 = vld [vmem:[#allocation5 + $0xb6c] sm:$0xf0]  ;;  %v7709_v32 = vor.u32 %v9885_v25, %v7708_v23  ;;  %v7348_v34 = vld [vmem:[#allocation5 + $0x5f8] sm:$0xf] }
  0xa9   : > { %4002 = vmatpush.bf16.msrb.mxu1 %v8705_v39  ;;  %v7508_v39 = vld [vmem:[#allocation5 + $0x738] sm:$0xf]  ;;  %v9750_v23 = vld [vmem:[#allocation5 + $0x4bc] sm:$0xf] }
  0xaa   : > { %4016 = vmatpush.bf16.msrb.mxu2 %v6789_v42  ;;  %v7828_v42 = vld [vmem:[#allocation5 + $0x9b8] sm:$0xf] }
  0xab   : > { %4030 = vmatpush.bf16.msrb.mxu3 %v7109_v47  ;;  %v8185_v47 = vor.u32 %v9999_v30, %v8182_v31  ;;  %v8348_v30 = vld [vmem:[#allocation5 + $0xdc8] sm:$0xf]  ;;  %v10045_v31 = vld [vmem:[#allocation5 + $0xdec] sm:$0xf0] }
  0xac   : > { %3989 = vmatpush.bf16.msrb.mxu0 %v8345_v52  ;;  %v7509_v52 = vor.u32 %v9835_v40, %v7508_v39  ;;  %v7988_v39 = vld [vmem:[#allocation5 + $0xaf8] sm:$0xf]  ;;  %v9955_v40 = vld [vmem:[#allocation5 + $0xb1c] sm:$0xf0] }
  0xad   : > { %4003 = vmatpush.bf16.msrb.mxu1 %v8665_v53  ;;  %v8468_v53 = vld [vmem:[#allocation5 + $0xeb8] sm:$0xf] }
  0xae   : > { %4017 = vmatpush.bf16.msrb.mxu2 %v6749_v55  ;;  %v7829_v55 = vor.u32 %v9915_v44, %v7828_v42  ;;  %v8349_v42 = vor.u32 %v10045_v31, %v8348_v30  ;;  %v7349_v44 = vor.u32 %v9795_v35, %v7348_v34  ;;  %v9830_v31 = vld [vmem:[#allocation5 + $0x73c] sm:$0xf]  ;;  %v8748_v35 = vld [vmem:[#allocation5 + $0x10e8] sm:$0xf] }
  0xaf   : > { %4031 = vmatpush.bf16.msrb.mxu3 %v7069_v59  ;;  %v7788_v59 = vld [vmem:[#allocation5 + $0x968] sm:$0xf] }
  0xb0   : > { %3990 = vmatpush.bf16.msrb.mxu0 %v8305_v1  ;;  %v8469_v1 = vor.u32 %v10075_v54, %v8468_v53  ;;  %v7789_v6 = vor.u32 %v9905_v62, %v7788_v59  ;;  %v7948_v53 = vld [vmem:[#allocation5 + $0xaa8] sm:$0xf]  ;;  %v9945_v54 = vld [vmem:[#allocation5 + $0xacc] sm:$0xf0]  ;;  %v7268_v62 = vld [vmem:[#allocation5 + $0x558] sm:$0xf] }
  0xb1   : > { %4004 = vmatpush.bf16.msrb.mxu1 %v8625_v3  ;;  %v7469_v3 = vor.u32 %v9825_v58, %v7468_v57  ;;  %v8268_v57 = vld [vmem:[#allocation5 + $0xd28] sm:$0xf]  ;;  %v10025_v58 = vld [vmem:[#allocation5 + $0xd4c] sm:$0xf0] }
  0xb2   : > { %4018 = vmatpush.bf16.msrb.mxu2 %v6709_v5  ;;  %v10065_v5 = vld [vmem:[#allocation5 + $0xe8c] sm:$0xf0] }
  0xb3   : > { %4032 = vmatpush.bf16.msrb.mxu3 %v7029_v10  ;;  %v9815_v10 = vld [vmem:[#allocation5 + $0x6bc] sm:$0xf0] }
  0xb4   : > { %3991 = vmatpush.bf16.msrb.mxu0 %v8265_v15  ;;  %v8429_v15 = vor.u32 %v10065_v5, %v8428_v4  ;;  %v9935_v4 = vld [vmem:[#allocation5 + $0xa7c] sm:$0xf0]  ;;  %v8269_v5 = vor.u32 %v10025_v58, %v8268_v57  ;;  %v9730_v57 = vld [vmem:[#allocation5 + $0x41c] sm:$0xf]  ;;  %v7110_v58 = vld [vmem:[#allocation5 + $0x440] sm:$0xf0] }
  0xb5   : > { %4005 = vmatpush.bf16.msrb.mxu1 %v8585_v16  ;;  %v7429_v16 = vor.u32 %v9815_v10, %v7428_v8  ;;  %v10015_v8 = vld [vmem:[#allocation5 + $0xcfc] sm:$0xf0]  ;;  %v7228_v10 = vld [vmem:[#allocation5 + $0x508] sm:$0xf] }
  0xb6   : > { %4019 = vmatpush.bf16.msrb.mxu2 %v6669_v18  ;;  %v10055_v18 = vld [vmem:[#allocation5 + $0xe3c] sm:$0xf0]  ;;  %v7229_v25 = vor.u32 %v9765_v11, %v7228_v10  ;;  %v7070_v10 = vld [vmem:[#allocation5 + $0x3f0] sm:$0xf0] }
  0xb7   : > { %4033 = vmatpush.bf16.msrb.mxu3 %v6989_v22  ;;  %v9805_v22 = vld [vmem:[#allocation5 + $0x66c] sm:$0xf0] }
  0xb8   : > { %3992 = vmatpush.bf16.msrb.mxu0 %v8225_v28  ;;  %v8389_v28 = vor.u32 %v10055_v18, %v8388_v17  ;;  %v9925_v17 = vld [vmem:[#allocation5 + $0xa2c] sm:$0xf0]  ;;  %v8788_v18 = vld [vmem:[#allocation5 + $0x1138] sm:$0xf] }
  0xb9   : > { %4006 = vmatpush.bf16.msrb.mxu1 %v8545_v29  ;;  %v7389_v29 = vor.u32 %v9805_v22, %v7388_v21  ;;  %v9670_v21 = vld [vmem:[#allocation5 + $0x23c] sm:$0xf]  ;;  %v6870_v22 = vld [vmem:[#allocation5 + $0x260] sm:$0xf0] }
  0xba   : > { %4020 = vmatpush.bf16.msrb.mxu2 %v6629_v33  ;;  %v8029_v33 = vor.u32 %v9965_v27, %v8028_v26  ;;  %v7190_v26 = vld [vmem:[#allocation5 + $0x4e0] sm:$0xf0]  ;;  %v8188_v27 = vld [vmem:[#allocation5 + $0xc88] sm:$0xf]  ;;  %v6873_v34 = vor.u32 %v9670_v21, %v6870_v22 }
  0xbb   : > { %4034 = vmatpush.bf16.msrb.mxu3 %v6949_v38  ;;  %v9875_v38 = vld [vmem:[#allocation5 + $0x89c] sm:$0xf0] }
  0xbc   : > { %3993 = vmatpush.bf16.msrb.mxu0 %v8185_v47  ;;  %v7669_v47 = vor.u32 %v9875_v38, %v7668_v36  ;;  %v7193_v36 = vor.u32 %v9750_v23, %v7190_v26  ;;  %v9710_v23 = vld [vmem:[#allocation5 + $0x37c] sm:$0xf] }
  0xbd   : > { %4007 = vmatpush.bf16.msrb.mxu1 %v8505_v48  ;;  %v7989_v48 = vor.u32 %v9955_v40, %v7988_v39  ;;  %v10145_v39 = vld [vmem:[#allocation5 + $0x110c] sm:$0xf0]  ;;  %v9660_v40 = vld [vmem:[#allocation5 + $0x1ec] sm:$0xf] }
  0xbe   : > { %4021 = vmatpush.bf16.msrb.mxu2 %v6589_v51  ;;  %v7628_v51 = vld [vmem:[#allocation5 + $0x828] sm:$0xf] }
  0xbf   : > { %4035 = vmatpush.bf16.msrb.mxu3 %v6909_v61  ;;  %3994 = vmatmul.bf16.vlgmr.msrb.gmra.mxu0 %v10848_v43  ;;  %v7949_v61 = vor.u32 %v9945_v54, %v7948_v53  ;;  %v10135_v53 = vld [vmem:[#allocation5 + $0x10bc] sm:$0xf0]  ;;  %v9650_v54 = vld [vmem:[#allocation5 + $0x19c] sm:$0xf] }
  0xc0   : > { %4042 = vmatpush.bf16.msra.mxu0 %v7509_v52  ;;  %4008 = vmatmul.bf16.vlgmr.msrb.gmra.mxu1 %v10846_v41  ;;  %v9865_v52 = vld [vmem:[#allocation5 + $0x84c] sm:$0xf0] }
  0xc1   : > { %4056 = vmatpush.bf16.msra.mxu1 %v7829_v55  ;;  %4022 = vmatmul.bf16.vlgmr.msrb.gmra.mxu2 %v10821_v60  ;;  %v8309_v55 = vor.u32 %v10035_v46, %v8308_v45  ;;  %v7629_v59 = vor.u32 %v9865_v52, %v7628_v51  ;;  %v9740_v45 = vld [vmem:[#allocation5 + $0x46c] sm:$0xf]  ;;  %v7150_v46 = vld [vmem:[#allocation5 + $0x490] sm:$0xf0]  ;;  %v8708_v51 = vld [vmem:[#allocation5 + $0x1098] sm:$0xf] }
  0xc2   : > { %4070 = vmatpush.bf16.msra.mxu2 %v8149_v56  ;;  %4036 = vmatmul.bf16.vlgmr.msrb.gmra.mxu3 %v10830_v9  ;;  %v7309_v56 = vor.u32 %v9785_v50, %v7308_v49  ;;  %v8749_v49 = vor.u32 %v10145_v39, %v8748_v35  ;;  %v7153_v52 = vor.u32 %v9740_v45, %v7150_v46  ;;  %v9620_v35 = vld [vmem:[#allocation5 + $0xac] sm:$0xf]  ;;  %v7310_v45 = vld [vmem:[#allocation5 + $0x5d0] sm:$0xf0] }
  0xc3   : > { %4084 = vmatpush.bf16.msra.mxu3 %v8469_v1  ;;  %v9855_v1 = vld [vmem:[#allocation5 + $0x7fc] sm:$0xf0] }
  0xc4   : > { %4043 = vmatpush.bf16.msra.mxu0 %v7469_v3  ;;  %v7908_v3 = vld [vmem:[#allocation5 + $0xa58] sm:$0xf]  ;;  %v7589_v12 = vor.u32 %v9855_v1, %v7588_v0  ;;  %v8668_v1 = vld [vmem:[#allocation5 + $0x1048] sm:$0xf] }
  0xc5   : > { %4057 = vmatpush.bf16.msra.mxu1 %v7789_v6  ;;  %v8228_v6 = vld [vmem:[#allocation5 + $0xcd8] sm:$0xf]  ;;  %v7909_v13 = vor.u32 %v9935_v4, %v7908_v3  ;;  %v7113_v3 = vor.u32 %v9730_v57, %v7110_v58  ;;  %v10125_v4 = vld [vmem:[#allocation5 + $0x106c] sm:$0xf0]  ;;  %v6950_v57 = vld [vmem:[#allocation5 + $0x300] sm:$0xf0] }
  0xc6   : > { %4071 = vmatpush.bf16.msra.mxu2 %v8109_v7  ;;  %v7269_v7 = vor.u32 %v9775_v63, %v7268_v62  ;;  %v10865_v62 = vld [vmem:[#allocation7] sm:$0xff]  ;;  %v8709_v63 = vor.u32 %v10135_v53, %v8708_v51  ;;  %v9770_v58 = vld [vmem:[#allocation5 + $0x55c] sm:$0xf] }
  0xc7   : > { %4085 = vmatpush.bf16.msra.mxu3 %v8429_v15  ;;  %v9845_v15 = vld [vmem:[#allocation5 + $0x7ac] sm:$0xf0]  ;;  %v11315_v11 = vperm.slane %v10865_v62, 0  ;;  %v10095_v51 = vld [vmem:[#allocation5 + $0xf7c] sm:$0xf0] }
  0xc8   : > { %4044 = vmatpush.bf16.msra.mxu0 %v7429_v16  ;;  %v7868_v16 = vld [vmem:[#allocation5 + $0xa08] sm:$0xf]  ;;  %v6630_v53 = vld [vmem:[#allocation5 + $0x80] sm:$0xf0] }
  0xc9   : > { %4058 = vmatpush.bf16.msra.mxu1 %v7749_v19  ;;  %v10155_v19 = vld [vmem:[#allocation5 + $0x115c] sm:$0xf0]  ;;  %v7869_v30 = vor.u32 %v9925_v17, %v7868_v16  ;;  %v8628_v16 = vld [vmem:[#allocation5 + $0xff8] sm:$0xf] }
  0xca   : > { %4072 = vmatpush.bf16.msra.mxu2 %v8069_v20  ;;  %v8229_v20 = vor.u32 %v10015_v8, %v8228_v6  ;;  %v6750_v6 = vld [vmem:[#allocation5 + $0x170] sm:$0xf0]  ;;  %v9720_v8 = vld [vmem:[#allocation5 + $0x3cc] sm:$0xf] }
  0xcb   : > { %4086 = vmatpush.bf16.msra.mxu3 %v8389_v28  ;;  %v10005_v28 = vld [vmem:[#allocation5 + $0xcac] sm:$0xf0]  ;;  %v7073_v17 = vor.u32 %v9720_v8, %v7070_v10  ;;  %v9910_v10 = vld [vmem:[#allocation5 + $0x9bc] sm:$0xf] }
  0xcc   : > { %4045 = vmatpush.bf16.msra.mxu0 %v7389_v29  ;;  %v7549_v29 = vor.u32 %v9845_v15, %v7548_v14  ;;  %v8189_v38 = vor.u32 %v10005_v28, %v8188_v27  ;;  %v8669_v14 = vor.u32 %v10125_v4, %v8668_v1  ;;  %v9790_v27 = vld [vmem:[#allocation5 + $0x5fc] sm:$0xf]  ;;  %v7350_v28 = vld [vmem:[#allocation5 + $0x620] sm:$0xf0]  ;;  %v10085_v1 = vld [vmem:[#allocation5 + $0xf2c] sm:$0xf0] }
  0xcd   : > { %4059 = vmatpush.bf16.msra.mxu1 %v7709_v32  ;;  %v7510_v32 = vld [vmem:[#allocation5 + $0x760] sm:$0xf0]  ;;  %v7353_v39 = vor.u32 %v9790_v27, %v7350_v28 }
  0xce   : > { %4073 = vmatpush.bf16.msra.mxu2 %v8029_v33  ;;  %v8789_v33 = vor.u32 %v10155_v19, %v8788_v18  ;;  %v10115_v18 = vld [vmem:[#allocation5 + $0x101c] sm:$0xf0]  ;;  %v9630_v19 = vld [vmem:[#allocation5 + $0xfc] sm:$0xf]  ;;  %v8790_v27 = vld [vmem:[#allocation5 + $0x1160] sm:$0xf0] }
  0xcf   : > { %4087 = vmatpush.bf16.msra.mxu3 %v8349_v42  ;;  %v6830_v42 = vld [vmem:[#allocation5 + $0x210] sm:$0xf0] }
  0xd0   : > { %4046 = vmatpush.bf16.msra.mxu0 %v7349_v44  ;;  %v7513_v44 = vor.u32 %v9830_v31, %v7510_v32  ;;  %v6833_v50 = vor.u32 %v9660_v40, %v6830_v42  ;;  %v8588_v31 = vld [vmem:[#allocation5 + $0xfa8] sm:$0xf]  ;;  %v9700_v40 = vld [vmem:[#allocation5 + $0x32c] sm:$0xf]  ;;  %v6990_v42 = vld [vmem:[#allocation5 + $0x350] sm:$0xf0] }
  0xd1   : > { %4060 = vmatpush.bf16.msra.mxu1 %v7669_v47  ;;  %v9820_v47 = vld [vmem:[#allocation5 + $0x6ec] sm:$0xf] }
  0xd2   : > { %4074 = vmatpush.bf16.msra.mxu2 %v7989_v48  ;;  %v7470_v48 = vld [vmem:[#allocation5 + $0x710] sm:$0xf0] }
  0xd3   : > { %4088 = vmatpush.bf16.msra.mxu3 %v8309_v55  ;;  %v6790_v55 = vld [vmem:[#allocation5 + $0x1c0] sm:$0xf0] }
  0xd4   : > { %4047 = vmatpush.bf16.msra.mxu0 %v7309_v56  ;;  %v7473_v56 = vor.u32 %v9820_v47, %v7470_v48  ;;  %v6793_v0 = vor.u32 %v9650_v54, %v6790_v55  ;;  %v8548_v48 = vld [vmem:[#allocation5 + $0xf58] sm:$0xf] }
  0xd5   : > { %4061 = vmatpush.bf16.msra.mxu1 %v7629_v59  ;;  %v9810_v59 = vld [vmem:[#allocation5 + $0x69c] sm:$0xf] }
  0xd6   : > { %4075 = vmatpush.bf16.msra.mxu2 %v7949_v61  ;;  %v7430_v61 = vld [vmem:[#allocation5 + $0x6c0] sm:$0xf0] }
  0xd7   : > { %4089 = vmatpush.bf16.msra.mxu3 %v8269_v5  ;;  %v9640_v5 = vld [vmem:[#allocation5 + $0x14c] sm:$0xf] }
  0xd8   : > { %4048 = vmatpush.bf16.msra.mxu0 %v7269_v7  ;;  %v7433_v7 = vor.u32 %v9810_v59, %v7430_v61  ;;  %v6753_v15 = vor.u32 %v9640_v5, %v6750_v6  ;;  %v7270_v59 = vld [vmem:[#allocation5 + $0x580] sm:$0xf0]  ;;  %v8549_v61 = vor.u32 %v10095_v51, %v8548_v48  ;;  %v6590_v5 = vld [vmem:[#allocation5 + $0x30] sm:$0xf0]  ;;  %v9680_v6 = vld [vmem:[#allocation5 + $0x28c] sm:$0xf] }
  0xd9   : > { %4062 = vmatpush.bf16.msra.mxu1 %v7589_v12  ;;  %v9800_v12 = vld [vmem:[#allocation5 + $0x64c] sm:$0xf]  ;;  %v7273_v8 = vor.u32 %v9770_v58, %v7270_v59  ;;  %v9890_v48 = vld [vmem:[#allocation5 + $0x91c] sm:$0xf]  ;;  %v8070_v51 = vld [vmem:[#allocation5 + $0xbc0] sm:$0xf0] }
  0xda   : > { %4076 = vmatpush.bf16.msra.mxu2 %v7909_v13  ;;  %v7390_v13 = vld [vmem:[#allocation5 + $0x670] sm:$0xf0] }
  0xdb   : > { %4090 = vmatpush.bf16.msra.mxu3 %v8229_v20  ;;  %v6710_v20 = vld [vmem:[#allocation5 + $0x120] sm:$0xf0]  ;;  %v7393_v22 = vor.u32 %v9800_v12, %v7390_v13  ;;  %v9990_v13 = vld [vmem:[#allocation5 + $0xc3c] sm:$0xf] }
  0xdc   : > { %4049 = vmatpush.bf16.msra.mxu0 %v7229_v25  ;;  %v3827_v21 = vpop.f32.mrf.mxu0  ;;  %v7030_v25 = vld [vmem:[#allocation5 + $0x3a0] sm:$0xf0] }
  0xdd   : > { %4063 = vmatpush.bf16.msra.mxu1 %v7549_v29  ;;  %v3828_v26 = vadd.f32 %v3827_v21, %v11315_v11  ;;  %v8629_v29 = vor.u32 %v10115_v18, %v8628_v16  ;;  %v3841_v32 = vpop.f32.mrf.mxu1  ;;  %v7830_v12 = vld [vmem:[#allocation5 + $0x9e0] sm:$0xf0]  ;;  %v10070_v16 = vld [vmem:[#allocation5 + $0xebc] sm:$0xf]  ;;  %v9760_v21 = vld [vmem:[#allocation5 + $0x50c] sm:$0xf] }
  0xde   : > { %4077 = vmatpush.bf16.msra.mxu2 %v7869_v30  ;;  %v6713_v30 = vor.u32 %v9630_v19, %v6710_v20  ;;  %v7804_v11 = vld [vmem:[#allocation5 + $0x978] sm:$0xf] }
  0xdf   : > { %4091 = vmatpush.bf16.msra.mxu3 %v8189_v38  ;;  %4050 = vmatmul.bf16.vlgmr.msra.gmra.mxu0 %v10824_v2  ;;  %v3842_v38 = vadd.f32 %v3841_v32, %v3828_v26  ;;  %v10150_v26 = vld [vmem:[#allocation5 + $0x113c] sm:$0xf]  ;;  %v9980_v32 = vld [vmem:[#allocation5 + $0xbec] sm:$0xf] }
  0xe0   : > { %4098 = vmatpush.bf16.msrb.mxu0 %v8789_v33  ;;  %4064 = vmatmul.bf16.vlgmr.msra.gmra.mxu1 %v10835_v24  ;;  %v7033_v33 = vor.u32 %v9710_v23, %v7030_v25  ;;  %v7833_v25 = vor.u32 %v9910_v10, %v7830_v12  ;;  %v8670_v10 = vld [vmem:[#allocation5 + $0x1070] sm:$0xf0] }
  0xe1   : > { %4112 = vmatpush.bf16.msrb.mxu1 %v6873_v34  ;;  %4078 = vmatmul.bf16.vlgmr.msra.gmra.mxu2 %v10844_v37  ;;  %v10105_v34 = vld [vmem:[#allocation5 + $0xfcc] sm:$0xf0] }
  0xe2   : > { %4126 = vmatpush.bf16.msrb.mxu2 %v7193_v36  ;;  %4092 = vmatmul.bf16.vlgmr.msra.gmra.mxu3 %v10848_v43  ;;  %v6670_v36 = vld [vmem:[#allocation5 + $0xd0] sm:$0xf0]  ;;  %v8589_v46 = vor.u32 %v10105_v34, %v8588_v31 }
  0xe3   : > { %4140 = vmatpush.bf16.msrb.mxu3 %v7513_v44  ;;  %v9780_v44 = vld [vmem:[#allocation5 + $0x5ac] sm:$0xf]  ;;  %v6673_v47 = vor.u32 %v9620_v35, %v6670_v36  ;;  %v7790_v31 = vld [vmem:[#allocation5 + $0x990] sm:$0xf0] }
  0xe4   : > { %4099 = vmatpush.bf16.msrb.mxu0 %v8749_v49  ;;  %v3855_v49 = vpop.f32.mrf.mxu2  ;;  %v7313_v55 = vor.u32 %v9780_v44, %v7310_v45  ;;  %v8110_v34 = vld [vmem:[#allocation5 + $0xc10] sm:$0xf0]  ;;  %v10060_v35 = vld [vmem:[#allocation5 + $0xe6c] sm:$0xf] }
  0xe5   : > { %4113 = vmatpush.bf16.msrb.mxu1 %v6833_v50  ;;  %v6993_v50 = vor.u32 %v9700_v40, %v6990_v42  ;;  %v3856_v54 = vadd.f32 %v3855_v49, %v3842_v38  ;;  %v8430_v36 = vld [vmem:[#allocation5 + $0xe90] sm:$0xf0]  ;;  %v8793_v38 = vor.u32 %v10150_v26, %v8790_v27  ;;  %v10140_v42 = vld [vmem:[#allocation5 + $0x10ec] sm:$0xf]  ;;  %v8113_v45 = vor.u32 %v9980_v32, %v8110_v34  ;;  %v7750_v49 = vld [vmem:[#allocation5 + $0x940] sm:$0xf0] }
  0xe6   : > { %4127 = vmatpush.bf16.msrb.mxu2 %v7153_v52  ;;  %v9610_v52 = vld [vmem:[#allocation5 + $0x5c] sm:$0xf]  ;;  %v8750_v44 = vld [vmem:[#allocation5 + $0x1110] sm:$0xf0]  ;;  %v9860_v32 = vld [vmem:[#allocation5 + $0x82c] sm:$0xf] }
  0xe7   : > { %4141 = vmatpush.bf16.msrb.mxu3 %v7473_v56  ;;  %v9690_v56 = vld [vmem:[#allocation5 + $0x2dc] sm:$0xf]  ;;  %v9940_v34 = vld [vmem:[#allocation5 + $0xaac] sm:$0xf] }
  0xe8   : > { %4100 = vmatpush.bf16.msrb.mxu0 %v8709_v63  ;;  %v6633_v63 = vor.u32 %v9610_v52, %v6630_v53  ;;  %v6953_v4 = vor.u32 %v9690_v56, %v6950_v57  ;;  %v10050_v52 = vld [vmem:[#allocation5 + $0xe1c] sm:$0xf]  ;;  %v8390_v53 = vld [vmem:[#allocation5 + $0xe40] sm:$0xf0] }
  0xe9   : > { %4114 = vmatpush.bf16.msrb.mxu1 %v6793_v0  ;;  %v8508_v0 = vld [vmem:[#allocation5 + $0xf08] sm:$0xf]  ;;  %v10130_v56 = vld [vmem:[#allocation5 + $0x109c] sm:$0xf]  ;;  %v8710_v57 = vld [vmem:[#allocation5 + $0x10c0] sm:$0xf0]  ;;  %v8393_v59 = vor.u32 %v10050_v52, %v8390_v53 }
  0xea   : > { %4128 = vmatpush.bf16.msrb.mxu2 %v7113_v3  ;;  %v9600_v3 = vld [vmem:[#allocation5 + $0xc] sm:$0xf]  ;;  %v8509_v19 = vor.u32 %v10085_v1, %v8508_v0  ;;  %v9930_v52 = vld [vmem:[#allocation5 + $0xa5c] sm:$0xf]  ;;  %v7910_v53 = vld [vmem:[#allocation5 + $0xa80] sm:$0xf0] }
  0xeb   : > { %4142 = vmatpush.bf16.msrb.mxu3 %v7433_v7  ;;  %v6910_v7 = vld [vmem:[#allocation5 + $0x2b0] sm:$0xf0]  ;;  %v6593_v20 = vor.u32 %v9600_v3, %v6590_v5  ;;  %v9960_v0 = vld [vmem:[#allocation5 + $0xb4c] sm:$0xf] }
  0xec   : > { %4101 = vmatpush.bf16.msrb.mxu0 %v8669_v14  ;;  %v3869_v14 = vpop.f32.mrf.mxu3  ;;  %v6913_v23 = vor.u32 %v9680_v6, %v6910_v7  ;;  %v10880_v1 = vpop.f32.mrf.mxu2  ;;  %v8030_v3 = vld [vmem:[#allocation5 + $0xb70] sm:$0xf0]  ;;  %v8713_v6 = vor.u32 %v10130_v56, %v8710_v57  ;;  %v10090_v57 = vld [vmem:[#allocation5 + $0xf5c] sm:$0xf] }
  0xed   : > { %4115 = vmatpush.bf16.msrb.mxu1 %v6753_v15  ;;  %v8150_v15 = vld [vmem:[#allocation5 + $0xc60] sm:$0xf0]  ;;  %v10871_v18 = vadd.f32 %v3869_v14, %v3856_v54  ;;  %v8753_v54 = vor.u32 %v10140_v42, %v8750_v44  ;;  %v8350_v5 = vld [vmem:[#allocation5 + $0xdf0] sm:$0xf0]  ;;  %v10100_v44 = vld [vmem:[#allocation5 + $0xfac] sm:$0xf] }
  0xee   : > { %4129 = vmatpush.bf16.msrb.mxu2 %v7073_v17  ;;  %v8470_v17 = vld [vmem:[#allocation5 + $0xee0] sm:$0xf0]  ;;  %v8153_v28 = vor.u32 %v9990_v13, %v8150_v15  ;;  %v8033_v13 = vor.u32 %v9960_v0, %v8030_v3  ;;  %v9870_v15 = vld [vmem:[#allocation5 + $0x87c] sm:$0xf]  ;;  %v7550_v0 = vld [vmem:[#allocation5 + $0x7b0] sm:$0xf0]  ;;  %v7913_v3 = vor.u32 %v9930_v52, %v7910_v53 }
  0xef   : > { %4143 = vmatpush.bf16.msrb.mxu3 %v7393_v22  ;;  %v7230_v22 = vld [vmem:[#allocation5 + $0x530] sm:$0xf0]  ;;  %v7116_v52 = vld [vmem:[#allocation5 + $0x420] sm:$0xf]  ;;  %v9736_v53 = vld [vmem:[#allocation5 + $0x444] sm:$0xf0] }
  0xf0   : > { %4102 = vmatpush.bf16.msrb.mxu0 %v8629_v29  ;;  %v8473_v29 = vor.u32 %v10070_v16, %v8470_v17  ;;  %v7670_v16 = vld [vmem:[#allocation5 + $0x8a0] sm:$0xf0]  ;;  %v9950_v17 = vld [vmem:[#allocation5 + $0xafc] sm:$0xf] }
  0xf1   : > { %4116 = vmatpush.bf16.msrb.mxu1 %v6713_v30  ;;  %v9900_v30 = vld [vmem:[#allocation5 + $0x96c] sm:$0xf]  ;;  %v7673_v27 = vor.u32 %v9870_v15, %v7670_v16  ;;  %v9756_v15 = vld [vmem:[#allocation5 + $0x4e4] sm:$0xf0]  ;;  %v7516_v16 = vld [vmem:[#allocation5 + $0x740] sm:$0xf] }
  0xf2   : > { %4130 = vmatpush.bf16.msrb.mxu2 %v7033_v33  ;;  %v7233_v33 = vor.u32 %v9760_v21, %v7230_v22  ;;  %v7793_v40 = vor.u32 %v9900_v30, %v7790_v31  ;;  %v10030_v21 = vld [vmem:[#allocation5 + $0xd7c] sm:$0xf]  ;;  %v8310_v22 = vld [vmem:[#allocation5 + $0xda0] sm:$0xf0] }
  0xf3   : > { %4144 = vmatpush.bf16.msrb.mxu3 %v7353_v39  ;;  %v10873_v39 = vpop.f32.mrf.mxu0  ;;  %v8313_v31 = vor.u32 %v10030_v21, %v8310_v22  ;;  %v8510_v21 = vld [vmem:[#allocation5 + $0xf30] sm:$0xf0] }
  0xf4   : > { %4103 = vmatpush.bf16.msrb.mxu0 %v8589_v46  ;;  %v8433_v46 = vor.u32 %v10060_v35, %v8430_v36  ;;  %v7950_v35 = vld [vmem:[#allocation5 + $0xad0] sm:$0xf0] }
  0xf5   : > { %4117 = vmatpush.bf16.msrb.mxu1 %v6673_v47  ;;  %v10875_v47 = vpop.f32.mrf.mxu1  ;;  %v8270_v36 = vld [vmem:[#allocation5 + $0xd50] sm:$0xf0] }
  0xf6   : > { %4131 = vmatpush.bf16.msrb.mxu2 %v6993_v50  ;;  %v9970_v50 = vld [vmem:[#allocation5 + $0xb9c] sm:$0xf] }
  0xf7   : > { %4145 = vmatpush.bf16.msrb.mxu3 %v7313_v55  ;;  %v7753_v55 = vor.u32 %v9890_v48, %v7750_v49  ;;  %v8073_v58 = vor.u32 %v9970_v50, %v8070_v51  ;;  %v7953_v48 = vor.u32 %v9940_v34, %v7950_v35  ;;  %v9850_v50 = vld [vmem:[#allocation5 + $0x7dc] sm:$0xf]  ;;  %v7590_v51 = vld [vmem:[#allocation5 + $0x800] sm:$0xf0]  ;;  %v9746_v34 = vld [vmem:[#allocation5 + $0x494] sm:$0xf0] }
  0xf8   : > { %4104 = vmatpush.bf16.msrb.mxu0 %v8549_v61  ;;  %v9880_v61 = vld [vmem:[#allocation5 + $0x8cc] sm:$0xf]  ;;  %v7476_v35 = vld [vmem:[#allocation5 + $0x6f0] sm:$0xf] }
  0xf9   : > { %4118 = vmatpush.bf16.msrb.mxu1 %v6633_v63  ;;  %v7710_v63 = vld [vmem:[#allocation5 + $0x8f0] sm:$0xf0] }
  0xfa   : > { %4132 = vmatpush.bf16.msrb.mxu2 %v6953_v4  ;;  %v10040_v4 = vld [vmem:[#allocation5 + $0xdcc] sm:$0xf]  ;;  %v7713_v7 = vor.u32 %v9880_v61, %v7710_v63  ;;  %v8550_v61 = vld [vmem:[#allocation5 + $0xf80] sm:$0xf0] }
  0xfb   : > { %4146 = vmatpush.bf16.msrb.mxu3 %v7273_v8  ;;  %v10120_v8 = vld [vmem:[#allocation5 + $0x104c] sm:$0xf]  ;;  %v8353_v14 = vor.u32 %v10040_v4, %v8350_v5 }
  0xfc   : > { %4105 = vmatpush.bf16.msrb.mxu0 %v8509_v19  ;;  %v3883_v12 = vpop.f32.mrf.mxu0  ;;  %v9840_v63 = vld [vmem:[#allocation5 + $0x78c] sm:$0xf] }
  0xfd   : > { %4119 = vmatpush.bf16.msrb.mxu1 %v6593_v20  ;;  %v3884_v19 = vadd.f32 %v3883_v12, %v10871_v18  ;;  %v7990_v20 = vld [vmem:[#allocation5 + $0xb20] sm:$0xf0]  ;;  %v10020_v18 = vld [vmem:[#allocation5 + $0xd2c] sm:$0xf]  ;;  %v9676_v12 = vld [vmem:[#allocation5 + $0x264] sm:$0xf0] }
  0xfe   : > { %4133 = vmatpush.bf16.msrb.mxu2 %v6913_v23  ;;  %v3897_v23 = vpop.f32.mrf.mxu1  ;;  %v7993_v30 = vor.u32 %v9950_v17, %v7990_v20  ;;  %v8273_v49 = vor.u32 %v10020_v18, %v8270_v36  ;;  %v9920_v5 = vld [vmem:[#allocation5 + $0xa0c] sm:$0xf]  ;;  %v7553_v17 = vor.u32 %v9840_v63, %v7550_v0  ;;  %v9826_v18 = vld [vmem:[#allocation5 + $0x714] sm:$0xf0]  ;;  %v7756_v63 = vld [vmem:[#allocation5 + $0x920] sm:$0xf] }
  0xff   : > { %4147 = vmatpush.bf16.msrb.mxu3 %v7233_v33  ;;  %4106 = vmatmul.bf16.vlgmr.msrb.gmra.mxu0 %v10846_v41  ;;  %v3898_v26 = vadd.f32 %v3897_v23, %v3884_v19  ;;  %v7630_v33 = vld [vmem:[#allocation5 + $0x850] sm:$0xf0]  ;;  %v9836_v19 = vld [vmem:[#allocation5 + $0x764] sm:$0xf0]  ;;  %v10080_v20 = vld [vmem:[#allocation5 + $0xf0c] sm:$0xf] }
 0x100   : > { %4154 = vmatpush.bf16.msra.mxu0 %v7833_v25  ;;  %4120 = vmatmul.bf16.vlgmr.msrb.gmra.mxu1 %v10821_v60  ;;  %v8673_v25 = vor.u32 %v10120_v8, %v8670_v10  ;;  %v7633_v42 = vor.u32 %v9860_v32, %v7630_v33  ;;  %v8190_v8 = vld [vmem:[#allocation5 + $0xcb0] sm:$0xf0]  ;;  %v6876_v10 = vld [vmem:[#allocation5 + $0x240] sm:$0xf]  ;;  %v9666_v32 = vld [vmem:[#allocation5 + $0x214] sm:$0xf0] }
 0x101   : > { %4168 = vmatpush.bf16.msra.mxu1 %v8153_v28  ;;  %4134 = vmatmul.bf16.vlgmr.msrb.gmra.mxu2 %v10830_v9  ;;  %v10110_v28 = vld [vmem:[#allocation5 + $0xffc] sm:$0xf]  ;;  %v7156_v33 = vld [vmem:[#allocation5 + $0x470] sm:$0xf]  ;;  %v9896_v0 = vld [vmem:[#allocation5 + $0x944] sm:$0xf0] }
 0x102   : > { %4182 = vmatpush.bf16.msra.mxu2 %v8473_v29  ;;  %4148 = vmatmul.bf16.vlgmr.msrb.gmra.mxu3 %v10824_v2  ;;  %v8630_v29 = vld [vmem:[#allocation5 + $0x1020] sm:$0xf0] }
 0x103   : > { %4196 = vmatpush.bf16.msra.mxu3 %v8793_v38  ;;  %v8633_v38 = vor.u32 %v10110_v28, %v8630_v29  ;;  %v9916_v28 = vld [vmem:[#allocation5 + $0x9e4] sm:$0xf0]  ;;  %v7517_v29 = vor.u32 %v9836_v19, %v7516_v16  ;;  %v9886_v19 = vld [vmem:[#allocation5 + $0x8f4] sm:$0xf0] }
 0x104   : > { %4155 = vmatpush.bf16.msra.mxu0 %v7793_v40  ;;  %v3911_v40 = vpop.f32.mrf.mxu2 }
 0x105   : > { %4169 = vmatpush.bf16.msra.mxu1 %v8113_v45  ;;  %v8590_v45 = vld [vmem:[#allocation5 + $0xfd0] sm:$0xf0] }
 0x106   : > { %4183 = vmatpush.bf16.msra.mxu2 %v8433_v46  ;;  %v10884_v46 = vadd.f32 %v3911_v40, %v3898_v26  ;;  %v8593_v56 = vor.u32 %v10100_v44, %v8590_v45  ;;  %v9906_v44 = vld [vmem:[#allocation5 + $0x994] sm:$0xf0]  ;;  %v6796_v45 = vld [vmem:[#allocation5 + $0x1a0] sm:$0xf] }
 0x107   : > { %4197 = vmatpush.bf16.msra.mxu3 %v8753_v54  ;;  %v10010_v54 = vld [vmem:[#allocation5 + $0xcdc] sm:$0xf] }
 0x108   : > { %4156 = vmatpush.bf16.msra.mxu0 %v7753_v55  ;;  %v8230_v55 = vld [vmem:[#allocation5 + $0xd00] sm:$0xf0] }
 0x109   : > { %4170 = vmatpush.bf16.msra.mxu1 %v8073_v58  ;;  %v10886_v58 = vpop.f32.mrf.mxu3  ;;  %v8233_v4 = vor.u32 %v10010_v54, %v8230_v55  ;;  %v7436_v54 = vld [vmem:[#allocation5 + $0x6a0] sm:$0xf]  ;;  %v9816_v55 = vld [vmem:[#allocation5 + $0x6c4] sm:$0xf0] }
 0x10a   : > { %4184 = vmatpush.bf16.msra.mxu2 %v8393_v59  ;;  %11332 = vst [vmem:[#allocation14_spill] sm:$0xff] %v10886_v58  ;;  %v7593_v59 = vor.u32 %v9850_v50, %v7590_v51  ;;  %v7477_v50 = vor.u32 %v9826_v18, %v7476_v35  ;;  %v9656_v51 = vld [vmem:[#allocation5 + $0x1c4] sm:$0xf0]  ;;  %v7676_v35 = vld [vmem:[#allocation5 + $0x880] sm:$0xf] }
 0x10b   : > { %4198 = vmatpush.bf16.msra.mxu3 %v8713_v6  ;;  %v7870_v6 = vld [vmem:[#allocation5 + $0xa30] sm:$0xf0]  ;;  %v9876_v18 = vld [vmem:[#allocation5 + $0x8a4] sm:$0xf0] }
 0x10c   : > { %4157 = vmatpush.bf16.msra.mxu0 %v7713_v7  ;;  %v10000_v7 = vld [vmem:[#allocation5 + $0xc8c] sm:$0xf]  ;;  %v7873_v22 = vor.u32 %v9920_v5, %v7870_v6  ;;  %v6756_v5 = vld [vmem:[#allocation5 + $0x150] sm:$0xf]  ;;  %v9646_v6 = vld [vmem:[#allocation5 + $0x174] sm:$0xf0] }
 0x10d   : > { %4171 = vmatpush.bf16.msra.mxu1 %v8033_v13  ;;  %v8553_v13 = vor.u32 %v10090_v57, %v8550_v61  ;;  %v8193_v23 = vor.u32 %v10000_v7, %v8190_v8  ;;  %v10893_v57 = vpop.f32.mrf.mxu1  ;;  %v6797_v61 = vor.u32 %v9656_v51, %v6796_v45  ;;  %v7076_v7 = vld [vmem:[#allocation5 + $0x3d0] sm:$0xf]  ;;  %v9726_v8 = vld [vmem:[#allocation5 + $0x3f4] sm:$0xf0]  ;;  %v6757_v16 = vor.u32 %v9646_v6, %v6756_v5  ;;  %v9696_v6 = vld [vmem:[#allocation5 + $0x304] sm:$0xf0] }
 0x10e   : > { %4185 = vmatpush.bf16.msra.mxu2 %v8353_v14  ;;  %v7196_v14 = vld [vmem:[#allocation5 + $0x4c0] sm:$0xf]  ;;  %11334 = vst [vmem:[#allocation16_spill] sm:$0xff] %v10893_v57  ;;  %v6996_v45 = vld [vmem:[#allocation5 + $0x330] sm:$0xf] }
 0x10f   : > { %4199 = vmatpush.bf16.msra.mxu3 %v8673_v25  ;;  %v6877_v25 = vor.u32 %v9676_v12, %v6876_v10  ;;  %v7197_v26 = vor.u32 %v9756_v15, %v7196_v14  ;;  %v7396_v10 = vld [vmem:[#allocation5 + $0x650] sm:$0xf]  ;;  %v9806_v12 = vld [vmem:[#allocation5 + $0x674] sm:$0xf0]  ;;  %v7757_v14 = vor.u32 %v9896_v0, %v7756_v63  ;;  %v10899_v15 = vpop.f32.mrf.mxu2  ;;  %v6636_v0 = vld [vmem:[#allocation5 + $0x60] sm:$0xf] }
 0x110   : > { %4158 = vmatpush.bf16.msra.mxu0 %v7673_v27  ;;  %v7836_v27 = vld [vmem:[#allocation5 + $0x9c0] sm:$0xf]  ;;  %11335 = vst [vmem:[#allocation17_spill] sm:$0xff] %v10899_v15  ;;  %v9786_v51 = vld [vmem:[#allocation5 + $0x5d4] sm:$0xf0] }
 0x111   : > { %4172 = vmatpush.bf16.msra.mxu1 %v7993_v30  ;;  %v8513_v30 = vor.u32 %v10080_v20, %v8510_v21  ;;  %v3925_v36 = vpop.f32.mrf.mxu3  ;;  %v7077_v21 = vor.u32 %v9726_v8, %v7076_v7  ;;  %v7276_v7 = vld [vmem:[#allocation5 + $0x560] sm:$0xf]  ;;  %v9776_v8 = vld [vmem:[#allocation5 + $0x584] sm:$0xf0]  ;;  %v8764_v15 = vld [vmem:[#allocation5 + $0x10f8] sm:$0xf] }
 0x112   : > { %4186 = vmatpush.bf16.msra.mxu2 %v8313_v31  ;;  %v6836_v31 = vld [vmem:[#allocation5 + $0x1f0] sm:$0xf]  ;;  %v6846_v57 = vld [vmem:[#allocation5 + $0x220] sm:$0xf0]  ;;  %v10068_v58 = vld [vmem:[#allocation5 + $0xea4] sm:$0xf0] }
 0x113   : > { %4200 = vmatpush.bf16.msra.mxu3 %v8633_v38  ;;  %v7837_v38 = vor.u32 %v9916_v28, %v7836_v27  ;;  %v6837_v40 = vor.u32 %v9666_v32, %v6836_v31  ;;  %v9716_v28 = vld [vmem:[#allocation5 + $0x3a4] sm:$0xf0] }
 0x114   : > { %4159 = vmatpush.bf16.msra.mxu0 %v7633_v42  ;;  %v7796_v42 = vld [vmem:[#allocation5 + $0x970] sm:$0xf] }
 0x115   : > { %4173 = vmatpush.bf16.msra.mxu1 %v7953_v48  ;;  %v10888_v48 = vpop.f32.mrf.mxu0 }
 0x116   : > { %4187 = vmatpush.bf16.msra.mxu2 %v8273_v49  ;;  %11333 = vst [vmem:[#allocation15_spill] sm:$0xff] %v10888_v48  ;;  %v7157_v49 = vor.u32 %v9746_v34, %v7156_v33  ;;  %v10062_v48 = vld [vmem:[#allocation5 + $0xe7c] sm:$0xf] }
 0x117   : > { %4201 = vmatpush.bf16.msra.mxu3 %v8593_v56  ;;  %v11314_v56 = vperm.slane %v10865_v62, 1 }
 0x118   : > { %4160 = vmatpush.bf16.msra.mxu0 %v7593_v59  ;;  %v7797_v59 = vor.u32 %v9906_v44, %v7796_v42  ;;  %v6676_v42 = vld [vmem:[#allocation5 + $0xb0] sm:$0xf]  ;;  %v9626_v44 = vld [vmem:[#allocation5 + $0xd4] sm:$0xf0] }
 0x119   : > { %4174 = vmatpush.bf16.msra.mxu1 %v7913_v3  ;;  %v7117_v3 = vor.u32 %v9736_v53, %v7116_v52  ;;  %v10901_v20 = vpop.f32.mrf.mxu3  ;;  %v7677_v52 = vor.u32 %v9876_v18, %v7676_v35  ;;  %v6677_v53 = vor.u32 %v9626_v44, %v6676_v42  ;;  %v10156_v18 = vld [vmem:[#allocation5 + $0x1164] sm:$0xf0]  ;;  %v9671_v44 = vld [vmem:[#allocation5 + $0x244] sm:$0xf] }
 0x11a   : > { %4188 = vmatpush.bf16.msra.mxu2 %v8233_v4  ;;  %v7437_v4 = vor.u32 %v9816_v55, %v7436_v54  ;;  %v7636_v54 = vld [vmem:[#allocation5 + $0x830] sm:$0xf]  ;;  %v9866_v55 = vld [vmem:[#allocation5 + $0x854] sm:$0xf0] }
 0x11b   : > { %4202 = vmatpush.bf16.msra.mxu3 %v8553_v13  ;;  %v3926_v13 = vadd.f32 %v3925_v36, %v11314_v56 }
 0x11c   : > { %4161 = vmatpush.bf16.msra.mxu0 %v7553_v17  ;;  %v7716_v17 = vld [vmem:[#allocation5 + $0x8d0] sm:$0xf] }
 0x11d   : > { %4175 = vmatpush.bf16.msra.mxu1 %v7873_v22  ;;  %v7397_v22 = vor.u32 %v9806_v12, %v7396_v10  ;;  %v3939_v27 = vpop.f32.mrf.mxu0  ;;  %v7717_v32 = vor.u32 %v9886_v19, %v7716_v17  ;;  %v3953_v33 = vpop.f32.mrf.mxu1  ;;  %v7637_v12 = vor.u32 %v9866_v55, %v7636_v54  ;;  %v9856_v17 = vld [vmem:[#allocation5 + $0x804] sm:$0xf0]  ;;  %v6596_v19 = vld [vmem:[#allocation5 + $0x10] sm:$0xf]  ;;  %v9986_v54 = vld [vmem:[#allocation5 + $0xc14] sm:$0xf0] }
 0x11e   : > { %4189 = vmatpush.bf16.msra.mxu2 %v8193_v23  ;;  %v6716_v23 = vld [vmem:[#allocation5 + $0x100] sm:$0xf]  ;;  %v3940_v31 = vadd.f32 %v3939_v27, %v3926_v13  ;;  %v7236_v27 = vld [vmem:[#allocation5 + $0x510] sm:$0xf] }
 0x11f   : > { %4203 = vmatpush.bf16.msra.mxu3 %v8513_v30  ;;  %4162 = vmatmul.bf16.vlgmr.msra.gmra.mxu0 %v10835_v24  ;;  %v9796_v30 = vld [vmem:[#allocation5 + $0x624] sm:$0xf0]  ;;  %v7596_v13 = vld [vmem:[#allocation5 + $0x7e0] sm:$0xf]  ;;  %v8436_v55 = vld [vmem:[#allocation5 + $0xe70] sm:$0xf] }
 0x120   : > { %4210 = vmatpush.bf16.msrb.mxu0 %v6877_v25  ;;  %4176 = vmatmul.bf16.vlgmr.msra.gmra.mxu1 %v10844_v37  ;;  %v9636_v25 = vld [vmem:[#allocation5 + $0x124] sm:$0xf0]  ;;  %v3954_v36 = vadd.f32 %v3953_v33, %v3940_v31  ;;  %v7597_v31 = vor.u32 %v9856_v17, %v7596_v13 }
 0x121   : > { %4224 = vmatpush.bf16.msrb.mxu1 %v7197_v26  ;;  %4190 = vmatmul.bf16.vlgmr.msra.gmra.mxu2 %v10848_v43  ;;  %v7036_v26 = vld [vmem:[#allocation5 + $0x380] sm:$0xf]  ;;  %v6717_v34 = vor.u32 %v9636_v25, %v6716_v23  ;;  %v7277_v23 = vor.u32 %v9776_v8, %v7276_v7  ;;  %v6916_v25 = vld [vmem:[#allocation5 + $0x290] sm:$0xf]  ;;  %v10076_v33 = vld [vmem:[#allocation5 + $0xee4] sm:$0xf0] }
 0x122   : > { %4238 = vmatpush.bf16.msrb.mxu2 %v7517_v29  ;;  %4204 = vmatmul.bf16.vlgmr.msra.gmra.mxu3 %v10846_v41  ;;  %v7356_v29 = vld [vmem:[#allocation5 + $0x600] sm:$0xf]  ;;  %v9976_v13 = vld [vmem:[#allocation5 + $0xbc4] sm:$0xf0] }
 0x123   : > { %4252 = vmatpush.bf16.msrb.mxu3 %v7837_v38  ;;  %v7037_v38 = vor.u32 %v9716_v28, %v7036_v26  ;;  %v9686_v26 = vld [vmem:[#allocation5 + $0x2b4] sm:$0xf0]  ;;  %v10056_v17 = vld [vmem:[#allocation5 + $0xe44] sm:$0xf0] }
 0x124   : > { %4211 = vmatpush.bf16.msrb.mxu0 %v6837_v40  ;;  %v7357_v40 = vor.u32 %v9796_v30, %v7356_v29  ;;  %v9766_v28 = vld [vmem:[#allocation5 + $0x534] sm:$0xf0]  ;;  %v8156_v29 = vld [vmem:[#allocation5 + $0xc40] sm:$0xf]  ;;  %v9996_v30 = vld [vmem:[#allocation5 + $0xc64] sm:$0xf0] }
 0x125   : > { %4225 = vmatpush.bf16.msrb.mxu1 %v7157_v49  ;;  %v9706_v49 = vld [vmem:[#allocation5 + $0x354] sm:$0xf0]  ;;  %v3981_v10 = vpop.f32.mrf.mxu3  ;;  %v7237_v42 = vor.u32 %v9766_v28, %v7236_v27  ;;  %v10907_v8 = vpop.f32.mrf.mxu1  ;;  %v8036_v28 = vld [vmem:[#allocation5 + $0xb50] sm:$0xf] }
 0x126   : > { %4239 = vmatpush.bf16.msrb.mxu2 %v7477_v50  ;;  %v7316_v50 = vld [vmem:[#allocation5 + $0x5b0] sm:$0xf] }
 0x127   : > { %4253 = vmatpush.bf16.msrb.mxu3 %v7797_v59  ;;  %v3967_v59 = vpop.f32.mrf.mxu2  ;;  %v7317_v63 = vor.u32 %v9786_v51, %v7316_v50  ;;  %v8116_v51 = vld [vmem:[#allocation5 + $0xbf0] sm:$0xf] }
 0x128   : > { %4212 = vmatpush.bf16.msrb.mxu0 %v6797_v61  ;;  %v6997_v61 = vor.u32 %v9706_v49, %v6996_v45  ;;  %v3968_v5 = vadd.f32 %v3967_v59, %v3954_v36  ;;  %v7556_v36 = vld [vmem:[#allocation5 + $0x790] sm:$0xf]  ;;  %v6878_v45 = vld [vmem:[#allocation5 + $0x268] sm:$0xf0]  ;;  %v8157_v49 = vor.u32 %v9996_v30, %v8156_v29  ;;  %v10066_v59 = vld [vmem:[#allocation5 + $0xe94] sm:$0xf0] }
 0x129   : > { %4226 = vmatpush.bf16.msrb.mxu1 %v7117_v3  ;;  %v9616_v3 = vld [vmem:[#allocation5 + $0x84] sm:$0xf0]  ;;  %v8437_v7 = vor.u32 %v10066_v59, %v8436_v55  ;;  %v9966_v30 = vld [vmem:[#allocation5 + $0xb74] sm:$0xf0] }
 0x12a   : > { %4240 = vmatpush.bf16.msrb.mxu2 %v7437_v4  ;;  %v6956_v4 = vld [vmem:[#allocation5 + $0x2e0] sm:$0xf] }
 0x12b   : > { %4254 = vmatpush.bf16.msrb.mxu3 %v7757_v14  ;;  %v10903_v14 = vadd.f32 %v3981_v10, %v3968_v5  ;;  %v6838_v5 = vld [vmem:[#allocation5 + $0x218] sm:$0xf0]  ;;  %v8076_v10 = vld [vmem:[#allocation5 + $0xba0] sm:$0xf] }
 0x12c   : > { %4213 = vmatpush.bf16.msrb.mxu0 %v6757_v16  ;;  %v6637_v16 = vor.u32 %v9616_v3, %v6636_v0  ;;  %v8756_v0 = vld [vmem:[#allocation5 + $0x10f0] sm:$0xf]  ;;  %v10146_v3 = vld [vmem:[#allocation5 + $0x1114] sm:$0xf0] }
 0x12d   : > { %4227 = vmatpush.bf16.msrb.mxu1 %v7077_v21  ;;  %v9606_v21 = vld [vmem:[#allocation5 + $0x34] sm:$0xf0]  ;;  %v10916_v59 = vpop.f32.mrf.mxu3 }
 0x12e   : > { %4241 = vmatpush.bf16.msrb.mxu2 %v7397_v22  ;;  %v6957_v22 = vor.u32 %v9696_v6, %v6956_v4  ;;  %v6597_v35 = vor.u32 %v9606_v21, %v6596_v19  ;;  %v9661_v4 = vld [vmem:[#allocation5 + $0x1f4] sm:$0xf]  ;;  %v8117_v6 = vor.u32 %v9986_v54, %v8116_v51  ;;  %v8716_v21 = vld [vmem:[#allocation5 + $0x10a0] sm:$0xf]  ;;  %v9956_v51 = vld [vmem:[#allocation5 + $0xb24] sm:$0xf0] }
 0x12f   : > { %4255 = vmatpush.bf16.msrb.mxu3 %v7717_v32  ;;  %v8476_v32 = vld [vmem:[#allocation5 + $0xec0] sm:$0xf]  ;;  %v6841_v19 = vor.u32 %v9661_v4, %v6838_v5  ;;  %11337 = vst [vmem:[#allocation19_spill] sm:$0xff] %v10916_v59  ;;  %v9631_v4 = vld [vmem:[#allocation5 + $0x104] sm:$0xf] }
 0x130   : > { %4214 = vmatpush.bf16.msrb.mxu0 %v6717_v34  ;;  %v8796_v34 = vld [vmem:[#allocation5 + $0x1140] sm:$0xf]  ;;  %v8477_v50 = vor.u32 %v10076_v33, %v8476_v32  ;;  %v10046_v32 = vld [vmem:[#allocation5 + $0xdf4] sm:$0xf0]  ;;  %v6718_v5 = vld [vmem:[#allocation5 + $0x128] sm:$0xf0] }
 0x131   : > { %4228 = vmatpush.bf16.msrb.mxu1 %v7037_v38  ;;  %v9846_v38 = vld [vmem:[#allocation5 + $0x7b4] sm:$0xf0]  ;;  %v8126_v59 = vld [vmem:[#allocation5 + $0xc20] sm:$0xf0] }
 0x132   : > { %4242 = vmatpush.bf16.msrb.mxu2 %v7357_v40  ;;  %v6917_v40 = vor.u32 %v9686_v26, %v6916_v25  ;;  %v6798_v25 = vld [vmem:[#allocation5 + $0x1c8] sm:$0xf0]  ;;  %v8077_v26 = vor.u32 %v9976_v13, %v8076_v10  ;;  %v8276_v13 = vld [vmem:[#allocation5 + $0xd30] sm:$0xf] }
 0x133   : > { %4256 = vmatpush.bf16.msrb.mxu3 %v7677_v52  ;;  %v8797_v52 = vor.u32 %v10156_v18, %v8796_v34  ;;  %v8676_v34 = vld [vmem:[#allocation5 + $0x1050] sm:$0xf]  ;;  %v9641_v18 = vld [vmem:[#allocation5 + $0x154] sm:$0xf] }
 0x134   : > { %4215 = vmatpush.bf16.msrb.mxu0 %v6677_v53  ;;  %v7557_v53 = vor.u32 %v9846_v38, %v7556_v36  ;;  %v6758_v36 = vld [vmem:[#allocation5 + $0x178] sm:$0xf0] }
 0x135   : > { %4229 = vmatpush.bf16.msrb.mxu1 %v6997_v61  ;;  %v6881_v61 = vor.u32 %v9671_v44, %v6878_v45  ;;  %v10913_v44 = vpop.f32.mrf.mxu2  ;;  %v7996_v45 = vld [vmem:[#allocation5 + $0xb00] sm:$0xf]  ;;  %v6761_v55 = vor.u32 %v9641_v18, %v6758_v36  ;;  %v10096_v36 = vld [vmem:[#allocation5 + $0xf84] sm:$0xf0] }
 0x136   : > { %4243 = vmatpush.bf16.msrb.mxu2 %v7317_v63  ;;  %v10905_v63 = vpop.f32.mrf.mxu0  ;;  %11336 = vst [vmem:[#allocation18_spill] sm:$0xff] %v10913_v44  ;;  %v8556_v18 = vld [vmem:[#allocation5 + $0xf60] sm:$0xf]  ;;  %v10143_v44 = vld [vmem:[#allocation5 + $0x1104] sm:$0xf] }
 0x137   : > { %4257 = vmatpush.bf16.msrb.mxu3 %v7637_v12  ;;  %v8757_v12 = vor.u32 %v10146_v3, %v8756_v0  ;;  %v10116_v0 = vld [vmem:[#allocation5 + $0x1024] sm:$0xf0] }
 0x138   : > { %4216 = vmatpush.bf16.msrb.mxu0 %v6637_v16  ;;  %v8396_v16 = vld [vmem:[#allocation5 + $0xe20] sm:$0xf] }
 0x139   : > { %4230 = vmatpush.bf16.msrb.mxu1 %v6957_v22  ;;  %v10136_v22 = vld [vmem:[#allocation5 + $0x10c4] sm:$0xf0]  ;;  %v8397_v27 = vor.u32 %v10056_v17, %v8396_v16  ;;  %v10026_v16 = vld [vmem:[#allocation5 + $0xd54] sm:$0xf0]  ;;  %v6721_v17 = vor.u32 %v9631_v4, %v6718_v5  ;;  %v9751_v5 = vld [vmem:[#allocation5 + $0x4c4] sm:$0xf] }
 0x13a   : > { %4244 = vmatpush.bf16.msrb.mxu2 %v7277_v23  ;;  %v9651_v23 = vld [vmem:[#allocation5 + $0x1a4] sm:$0xf]  ;;  %v8717_v29 = vor.u32 %v10136_v22, %v8716_v21  ;;  %v10106_v21 = vld [vmem:[#allocation5 + $0xfd4] sm:$0xf0]  ;;  %v11316_v22 = vperm.slane %v10865_v62, 2 }
 0x13b   : > { %4258 = vmatpush.bf16.msrb.mxu3 %v7597_v31  ;;  %v8356_v31 = vld [vmem:[#allocation5 + $0xdd0] sm:$0xf]  ;;  %v6801_v33 = vor.u32 %v9651_v23, %v6798_v25  ;;  %v9621_v23 = vld [vmem:[#allocation5 + $0xb4] sm:$0xf]  ;;  %v6678_v25 = vld [vmem:[#allocation5 + $0xd8] sm:$0xf0] }
 0x13c   : > { %4217 = vmatpush.bf16.msrb.mxu0 %v6597_v35  ;;  %v10126_v35 = vld [vmem:[#allocation5 + $0x1074] sm:$0xf0] }
 0x13d   : > { %4231 = vmatpush.bf16.msrb.mxu1 %v6917_v40  ;;  %v8037_v40 = vor.u32 %v9966_v30, %v8036_v28  ;;  %v4009_v54 = vpop.f32.mrf.mxu1  ;;  %v7916_v28 = vld [vmem:[#allocation5 + $0xa60] sm:$0xf] }
 0x13e   : > { %4245 = vmatpush.bf16.msrb.mxu2 %v7237_v42  ;;  %v3995_v38 = vpop.f32.mrf.mxu0  ;;  %v8357_v42 = vor.u32 %v10046_v32, %v8356_v31  ;;  %v9936_v31 = vld [vmem:[#allocation5 + $0xa84] sm:$0xf0]  ;;  %v8236_v32 = vld [vmem:[#allocation5 + $0xce0] sm:$0xf] }
 0x13f   : > { %4259 = vmatpush.bf16.msrb.mxu3 %v7557_v53  ;;  %4218 = vmatmul.bf16.vlgmr.msrb.gmra.mxu0 %v10821_v60  ;;  %v10036_v53 = vld [vmem:[#allocation5 + $0xda4] sm:$0xf0] }
 0x140   : > { %4266 = vmatpush.bf16.msra.mxu0 %v8157_v49  ;;  %4232 = vmatmul.bf16.vlgmr.msrb.gmra.mxu1 %v10830_v9  ;;  %v3996_v49 = vadd.f32 %v3995_v38, %v10903_v14  ;;  %v7956_v14 = vld [vmem:[#allocation5 + $0xab0] sm:$0xf] }
 0x141   : > { %4280 = vmatpush.bf16.msra.mxu1 %v8477_v50  ;;  %4246 = vmatmul.bf16.vlgmr.msrb.gmra.mxu2 %v10824_v2  ;;  %v8677_v50 = vor.u32 %v10126_v35, %v8676_v34  ;;  %v6681_v35 = vor.u32 %v9621_v23, %v6678_v25  ;;  %v9991_v25 = vld [vmem:[#allocation5 + $0xc44] sm:$0xf] }
 0x142   : > { %4294 = vmatpush.bf16.msra.mxu2 %v8797_v52  ;;  %4260 = vmatmul.bf16.vlgmr.msrb.gmra.mxu3 %v10835_v24  ;;  %v8316_v52 = vld [vmem:[#allocation5 + $0xd80] sm:$0xf]  ;;  %v10918_v3 = vadd.f32 %v4009_v54, %v3996_v49  ;;  %v7917_v49 = vor.u32 %v9936_v31, %v7916_v28  ;;  %v8557_v54 = vor.u32 %v10096_v36, %v8556_v18  ;;  %v9821_v31 = vld [vmem:[#allocation5 + $0x6f4] sm:$0xf] }
 0x143   : > { %4308 = vmatpush.bf16.msra.mxu3 %v6881_v61  ;;  %v8636_v61 = vld [vmem:[#allocation5 + $0x1000] sm:$0xf] }
 0x144   : > { %4267 = vmatpush.bf16.msra.mxu0 %v8117_v6  ;;  %v7997_v6 = vor.u32 %v9956_v51, %v7996_v45  ;;  %v8637_v10 = vor.u32 %v10116_v0, %v8636_v61  ;;  %v7876_v51 = vld [vmem:[#allocation5 + $0xa10] sm:$0xf]  ;;  %v10086_v0 = vld [vmem:[#allocation5 + $0xf34] sm:$0xf0] }
 0x145   : > { %4281 = vmatpush.bf16.msra.mxu1 %v8437_v7  ;;  %v8317_v7 = vor.u32 %v10036_v53, %v8316_v52  ;;  %v4037_v38 = vpop.f32.mrf.mxu3  ;;  %v9926_v52 = vld [vmem:[#allocation5 + $0xa34] sm:$0xf0]  ;;  %v8196_v53 = vld [vmem:[#allocation5 + $0xc90] sm:$0xf] }
 0x146   : > { %4295 = vmatpush.bf16.msra.mxu2 %v8757_v12  ;;  %v9946_v12 = vld [vmem:[#allocation5 + $0xad4] sm:$0xf0]  ;;  %v8516_v61 = vld [vmem:[#allocation5 + $0xf10] sm:$0xf] }
 0x147   : > { %4309 = vmatpush.bf16.msra.mxu3 %v6841_v19  ;;  %v8596_v19 = vld [vmem:[#allocation5 + $0xfb0] sm:$0xf] }
 0x148   : > { %4268 = vmatpush.bf16.msra.mxu0 %v8077_v26  ;;  %v7957_v26 = vor.u32 %v9946_v12, %v7956_v14  ;;  %v8597_v30 = vor.u32 %v10106_v21, %v8596_v19  ;;  %v7518_v14 = vld [vmem:[#allocation5 + $0x768] sm:$0xf0]  ;;  %v6598_v19 = vld [vmem:[#allocation5 + $0x38] sm:$0xf0]  ;;  %v8517_v21 = vor.u32 %v10086_v0, %v8516_v61  ;;  %v10928_v0 = vpop.f32.mrf.mxu1 }
 0x149   : > { %4282 = vmatpush.bf16.msra.mxu1 %v8397_v27  ;;  %v8277_v27 = vor.u32 %v10026_v16, %v8276_v13  ;;  %v7838_v12 = vld [vmem:[#allocation5 + $0x9e8] sm:$0xf0]  ;;  %v7877_v13 = vor.u32 %v9926_v52, %v7876_v51  ;;  %v9731_v51 = vld [vmem:[#allocation5 + $0x424] sm:$0xf]  ;;  %11339 = vst [vmem:[#allocation21_spill] sm:$0xff] %v10928_v0 }
 0x14a   : > { %4296 = vmatpush.bf16.msra.mxu2 %v8717_v29  ;;  %v4023_v29 = vpop.f32.mrf.mxu2  ;;  %v7118_v52 = vld [vmem:[#allocation5 + $0x448] sm:$0xf0]  ;;  %v8124_v0 = vld [vmem:[#allocation5 + $0xbf8] sm:$0xf] }
 0x14b   : > { %4310 = vmatpush.bf16.msra.mxu3 %v6801_v33  ;;  %v10016_v33 = vld [vmem:[#allocation5 + $0xd04] sm:$0xf0]  ;;  %v4024_v34 = vadd.f32 %v4023_v29, %v11316_v22  ;;  %v9741_v29 = vld [vmem:[#allocation5 + $0x474] sm:$0xf]  ;;  %v7758_v61 = vld [vmem:[#allocation5 + $0x948] sm:$0xf0] }
 0x14c   : > { %4269 = vmatpush.bf16.msra.mxu0 %v8037_v40  ;;  %v9611_v40 = vld [vmem:[#allocation5 + $0x64] sm:$0xf] }
 0x14d   : > { %4283 = vmatpush.bf16.msra.mxu1 %v8357_v42  ;;  %v6638_v42 = vld [vmem:[#allocation5 + $0x88] sm:$0xf0]  ;;  %v10923_v45 = vadd.f32 %v4037_v38, %v4024_v34  ;;  %v9901_v34 = vld [vmem:[#allocation5 + $0x974] sm:$0xf] }
 0x14e   : > { %4297 = vmatpush.bf16.msra.mxu2 %v8677_v50  ;;  %v8237_v50 = vor.u32 %v10016_v33, %v8236_v32  ;;  %v6641_v4 = vor.u32 %v9611_v40, %v6638_v42  ;;  %v7478_v33 = vld [vmem:[#allocation5 + $0x718] sm:$0xf0]  ;;  %v9981_v38 = vld [vmem:[#allocation5 + $0xbf4] sm:$0xf]  ;;  %v10925_v42 = vpop.f32.mrf.mxu0 }
 0x14f   : > { %4311 = vmatpush.bf16.msra.mxu3 %v6761_v55  ;;  %v10006_v55 = vld [vmem:[#allocation5 + $0xcb4] sm:$0xf0]  ;;  %v8118_v40 = vld [vmem:[#allocation5 + $0xc18] sm:$0xf0]  ;;  %11338 = vst [vmem:[#allocation20_spill] sm:$0xff] %v10925_v42 }
 0x150   : > { %4270 = vmatpush.bf16.msra.mxu0 %v7997_v6  ;;  %v7198_v6 = vld [vmem:[#allocation5 + $0x4e8] sm:$0xf0]  ;;  %v8197_v16 = vor.u32 %v10006_v55, %v8196_v53  ;;  %v9811_v53 = vld [vmem:[#allocation5 + $0x6a4] sm:$0xf]  ;;  %v9982_v42 = vld [vmem:[#allocation5 + $0xbfc] sm:$0xf] }
 0x151   : > { %4284 = vmatpush.bf16.msra.mxu1 %v8317_v7  ;;  %v9831_v7 = vld [vmem:[#allocation5 + $0x744] sm:$0xf]  ;;  %v7201_v23 = vor.u32 %v9751_v5, %v7198_v6  ;;  %v7121_v5 = vor.u32 %v9731_v51, %v7118_v52 }
 0x152   : > { %4298 = vmatpush.bf16.msra.mxu2 %v8637_v10  ;;  %v9911_v10 = vld [vmem:[#allocation5 + $0x9c4] sm:$0xf] }
 0x153   : > { %4312 = vmatpush.bf16.msra.mxu3 %v6721_v17  ;;  %v9601_v17 = vld [vmem:[#allocation5 + $0x14] sm:$0xf]  ;;  %v7841_v28 = vor.u32 %v9911_v10, %v7838_v12  ;;  %v9891_v55 = vld [vmem:[#allocation5 + $0x924] sm:$0xf] }
 0x154   : > { %4271 = vmatpush.bf16.msra.mxu0 %v7957_v26  ;;  %v8158_v26 = vld [vmem:[#allocation5 + $0xc68] sm:$0xf0]  ;;  %v6601_v32 = vor.u32 %v9601_v17, %v6598_v19  ;;  %v9971_v6 = vld [vmem:[#allocation5 + $0xba4] sm:$0xf]  ;;  %v7761_v10 = vor.u32 %v9891_v55, %v7758_v61  ;;  %v9721_v12 = vld [vmem:[#allocation5 + $0x3d4] sm:$0xf] }
 0x155   : > { %4285 = vmatpush.bf16.msra.mxu1 %v8277_v27  ;;  %v7521_v27 = vor.u32 %v9831_v7, %v7518_v14  ;;  %v8161_v18 = vor.u32 %v9991_v25, %v8158_v26  ;;  %v8078_v7 = vld [vmem:[#allocation5 + $0xbc8] sm:$0xf0]  ;;  %v7398_v17 = vld [vmem:[#allocation5 + $0x678] sm:$0xf0]  ;;  %v9881_v19 = vld [vmem:[#allocation5 + $0x8d4] sm:$0xf] }
 0x156   : > { %4299 = vmatpush.bf16.msra.mxu2 %v8597_v30  ;;  %v7158_v30 = vld [vmem:[#allocation5 + $0x498] sm:$0xf0]  ;;  %v8081_v25 = vor.u32 %v9971_v6, %v8078_v7  ;;  %v9951_v52 = vld [vmem:[#allocation5 + $0xb04] sm:$0xf]  ;;  %v9781_v6 = vld [vmem:[#allocation5 + $0x5b4] sm:$0xf] }
 0x157   : > { %4313 = vmatpush.bf16.msra.mxu3 %v6681_v35  ;;  %v7798_v35 = vld [vmem:[#allocation5 + $0x998] sm:$0xf0]  ;;  %v7161_v36 = vor.u32 %v9741_v29, %v7158_v30  ;;  %v10935_v29 = vpop.f32.mrf.mxu3 }
 0x158   : > { %4272 = vmatpush.bf16.msra.mxu0 %v7917_v49  ;;  %v7481_v49 = vor.u32 %v9821_v31, %v7478_v33  ;;  %v7038_v33 = vld [vmem:[#allocation5 + $0x3a8] sm:$0xf0]  ;;  %v7318_v7 = vld [vmem:[#allocation5 + $0x5d8] sm:$0xf0] }
 0x159   : > { %4286 = vmatpush.bf16.msra.mxu1 %v8237_v50  ;;  %v7801_v50 = vor.u32 %v9901_v34, %v7798_v35  ;;  %v9791_v34 = vld [vmem:[#allocation5 + $0x604] sm:$0xf] }
 0x15a   : > { %4300 = vmatpush.bf16.msra.mxu2 %v8557_v54  ;;  %v7438_v54 = vld [vmem:[#allocation5 + $0x6c8] sm:$0xf0] }
 0x15b   : > { %4314 = vmatpush.bf16.msra.mxu3 %v6641_v4  ;;  %v8121_v4 = vor.u32 %v9981_v38, %v8118_v40  ;;  %v7441_v14 = vor.u32 %v9811_v53, %v7438_v54  ;;  %v7678_v38 = vld [vmem:[#allocation5 + $0x8a8] sm:$0xf0] }
 0x15c   : > { %4273 = vmatpush.bf16.msra.mxu0 %v7877_v13  ;;  %v7078_v13 = vld [vmem:[#allocation5 + $0x3f8] sm:$0xf0]  ;;  %v4051_v35 = vpop.f32.mrf.mxu0  ;;  %v7998_v53 = vld [vmem:[#allocation5 + $0xb28] sm:$0xf0] }
 0x15d   : > { %4287 = vmatpush.bf16.msra.mxu1 %v8197_v16  ;;  %v9801_v16 = vld [vmem:[#allocation5 + $0x654] sm:$0xf]  ;;  %v7081_v26 = vor.u32 %v9721_v12, %v7078_v13  ;;  %v4052_v40 = vadd.f32 %v4051_v35, %v10923_v45  ;;  %v8001_v45 = vor.u32 %v9951_v52, %v7998_v53  ;;  %v9931_v35 = vld [vmem:[#allocation5 + $0xa64] sm:$0xf]  ;;  %v7238_v53 = vld [vmem:[#allocation5 + $0x538] sm:$0xf0] }
 0x15e   : > { %4301 = vmatpush.bf16.msra.mxu2 %v8517_v21  ;;  %v7718_v21 = vld [vmem:[#allocation5 + $0x8f8] sm:$0xf0]  ;;  %v7401_v30 = vor.u32 %v9801_v16, %v7398_v17  ;;  %v9941_v13 = vld [vmem:[#allocation5 + $0xab4] sm:$0xf] }
 0x15f   : > { %4315 = vmatpush.bf16.msra.mxu3 %v6601_v32  ;;  %4274 = vmatmul.bf16.vlgmr.msra.gmra.mxu0 %v10844_v37  ;;  %v7721_v31 = vor.u32 %v9881_v19, %v7718_v21  ;;  %v9711_v32 = vld [vmem:[#allocation5 + $0x384] sm:$0xf]  ;;  %v7958_v16 = vld [vmem:[#allocation5 + $0xad8] sm:$0xf0]  ;;  %v7321_v19 = vor.u32 %v9781_v6, %v7318_v7  ;;  %v9761_v52 = vld [vmem:[#allocation5 + $0x514] sm:$0xf] }
 0x160   : > { %4322 = vmatpush.bf16.msrb.mxu0 %v7201_v23  ;;  %4288 = vmatmul.bf16.vlgmr.msra.gmra.mxu1 %v10848_v43  ;;  %v10932_v23 = vpop.f32.mrf.mxu2  ;;  %v7041_v51 = vor.u32 %v9711_v32, %v7038_v33  ;;  %v7598_v32 = vld [vmem:[#allocation5 + $0x808] sm:$0xf0]  ;;  %v10151_v6 = vld [vmem:[#allocation5 + $0x1144] sm:$0xf] }
 0x161   : > { %4336 = vmatpush.bf16.msrb.mxu1 %v7521_v27  ;;  %4302 = vmatmul.bf16.vlgmr.msra.gmra.mxu2 %v10846_v41  ;;  %v9961_v27 = vld [vmem:[#allocation5 + $0xb54] sm:$0xf]  ;;  %v8798_v7 = vld [vmem:[#allocation5 + $0x1168] sm:$0xf0] }
 0x162   : > { %4350 = vmatpush.bf16.msrb.mxu2 %v7841_v28  ;;  %4316 = vmatmul.bf16.vlgmr.msra.gmra.mxu3 %v10821_v60  ;;  %v8038_v28 = vld [vmem:[#allocation5 + $0xb78] sm:$0xf0] }
 0x163   : > { %4364 = vmatpush.bf16.msrb.mxu3 %v8161_v18  ;;  %v7358_v18 = vld [vmem:[#allocation5 + $0x628] sm:$0xf0] }
 0x164   : > { %4323 = vmatpush.bf16.msrb.mxu0 %v7161_v36  ;;  %v9871_v36 = vld [vmem:[#allocation5 + $0x884] sm:$0xf]  ;;  %v7361_v55 = vor.u32 %v9791_v34, %v7358_v18  ;;  %v7961_v34 = vor.u32 %v9941_v13, %v7958_v16  ;;  %v7878_v13 = vld [vmem:[#allocation5 + $0xa38] sm:$0xf0]  ;;  %v7241_v16 = vor.u32 %v9761_v52, %v7238_v53 }
 0x165   : > { %4337 = vmatpush.bf16.msrb.mxu1 %v7481_v49  ;;  %v8041_v49 = vor.u32 %v9961_v27, %v8038_v28  ;;  %v7681_v61 = vor.u32 %v9871_v36, %v7678_v38  ;;  %v9771_v27 = vld [vmem:[#allocation5 + $0x564] sm:$0xf]  ;;  %v4093_v33 = vpop.f32.mrf.mxu3  ;;  %v7918_v38 = vld [vmem:[#allocation5 + $0xa88] sm:$0xf0] }
 0x166   : > { %4351 = vmatpush.bf16.msrb.mxu2 %v7801_v50  ;;  %v4065_v50 = vpop.f32.mrf.mxu1  ;;  %v10051_v52 = vld [vmem:[#allocation5 + $0xe24] sm:$0xf] }
 0x167   : > { %4365 = vmatpush.bf16.msrb.mxu3 %v8121_v4  ;;  %v4066_v54 = vadd.f32 %v4065_v50, %v4052_v40  ;;  %v9701_v4 = vld [vmem:[#allocation5 + $0x334] sm:$0xf] }
 0x168   : > { %4324 = vmatpush.bf16.msrb.mxu0 %v7121_v5  ;;  %v6998_v5 = vld [vmem:[#allocation5 + $0x358] sm:$0xf0]  ;;  %v4079_v17 = vpop.f32.mrf.mxu2  ;;  %v9681_v40 = vld [vmem:[#allocation5 + $0x294] sm:$0xf] }
 0x169   : > { %4338 = vmatpush.bf16.msrb.mxu1 %v7441_v14  ;;  %v9861_v14 = vld [vmem:[#allocation5 + $0x834] sm:$0xf]  ;;  %v7001_v12 = vor.u32 %v9701_v4, %v6998_v5  ;;  %v4080_v28 = vadd.f32 %v4079_v17, %v4066_v54  ;;  %v8478_v4 = vld [vmem:[#allocation5 + $0xee8] sm:$0xf0]  ;;  %v7921_v5 = vor.u32 %v9931_v35, %v7918_v38  ;;  %v10940_v35 = vpop.f32.mrf.mxu0  ;;  %v9667_v38 = vld [vmem:[#allocation5 + $0x21c] sm:$0xf0] }
 0x16a   : > { %4352 = vmatpush.bf16.msrb.mxu2 %v7761_v10  ;;  %v7638_v10 = vld [vmem:[#allocation5 + $0x858] sm:$0xf0]  ;;  %v9841_v54 = vld [vmem:[#allocation5 + $0x794] sm:$0xf] }
 0x16b   : > { %4366 = vmatpush.bf16.msrb.mxu3 %v8081_v25  ;;  %v7641_v21 = vor.u32 %v9861_v14, %v7638_v10  ;;  %v9691_v25 = vld [vmem:[#allocation5 + $0x2e4] sm:$0xf]  ;;  %v10938_v18 = vadd.f32 %v4093_v33, %v4080_v28  ;;  %v6884_v14 = vld [vmem:[#allocation5 + $0x248] sm:$0xf]  ;;  %v8758_v33 = vld [vmem:[#allocation5 + $0x1118] sm:$0xf0] }
 0x16c   : > { %4325 = vmatpush.bf16.msrb.mxu0 %v7081_v26  ;;  %v6958_v26 = vld [vmem:[#allocation5 + $0x308] sm:$0xf0] }
 0x16d   : > { %4339 = vmatpush.bf16.msrb.mxu1 %v7401_v30  ;;  %v7278_v30 = vld [vmem:[#allocation5 + $0x588] sm:$0xf0]  ;;  %v6961_v36 = vor.u32 %v9691_v25, %v6958_v26  ;;  %v8801_v26 = vor.u32 %v10151_v6, %v8798_v7  ;;  %v9657_v6 = vld [vmem:[#allocation5 + $0x1cc] sm:$0xf0]  ;;  %v7124_v7 = vld [vmem:[#allocation5 + $0x428] sm:$0xf] }
 0x16e   : > { %4353 = vmatpush.bf16.msrb.mxu2 %v7721_v31  ;;  %v9851_v31 = vld [vmem:[#allocation5 + $0x7e4] sm:$0xf]  ;;  %v7281_v50 = vor.u32 %v9771_v27, %v7278_v30  ;;  %v10061_v27 = vld [vmem:[#allocation5 + $0xe74] sm:$0xf] }
 0x16f   : > { %4367 = vmatpush.bf16.msrb.mxu3 %v8041_v49  ;;  %v6918_v49 = vld [vmem:[#allocation5 + $0x2b8] sm:$0xf0] }
 0x170   : > { %4326 = vmatpush.bf16.msrb.mxu0 %v7041_v51  ;;  %v7601_v51 = vor.u32 %v9851_v31, %v7598_v32  ;;  %v6921_v10 = vor.u32 %v9681_v40, %v6918_v49  ;;  %v8438_v31 = vld [vmem:[#allocation5 + $0xe98] sm:$0xf0]  ;;  %v10141_v32 = vld [vmem:[#allocation5 + $0x10f4] sm:$0xf]  ;;  %v7164_v40 = vld [vmem:[#allocation5 + $0x478] sm:$0xf] }
 0x171   : > { %4340 = vmatpush.bf16.msrb.mxu1 %v7361_v55  ;;  %v7558_v55 = vld [vmem:[#allocation5 + $0x7b8] sm:$0xf0]  ;;  %v9747_v49 = vld [vmem:[#allocation5 + $0x49c] sm:$0xf0] }
 0x172   : > { %4354 = vmatpush.bf16.msrb.mxu2 %v7681_v61  ;;  %v10071_v61 = vld [vmem:[#allocation5 + $0xec4] sm:$0xf]  ;;  %v7561_v17 = vor.u32 %v9841_v54, %v7558_v55  ;;  %v8398_v54 = vld [vmem:[#allocation5 + $0xe48] sm:$0xf0] }
 0x173   : > { %4368 = vmatpush.bf16.msrb.mxu3 %v8001_v45  ;;  %v9677_v45 = vld [vmem:[#allocation5 + $0x26c] sm:$0xf0]  ;;  %v8481_v25 = vor.u32 %v10071_v61, %v8478_v4  ;;  %v10131_v55 = vld [vmem:[#allocation5 + $0x10a4] sm:$0xf]  ;;  %v8718_v61 = vld [vmem:[#allocation5 + $0x10c8] sm:$0xf0]  ;;  %v7165_v4 = vor.u32 %v9747_v49, %v7164_v40 }
 0x174   : > { %4327 = vmatpush.bf16.msrb.mxu0 %v7001_v12  ;;  %v9921_v12 = vld [vmem:[#allocation5 + $0xa14] sm:$0xf]  ;;  %v6885_v28 = vor.u32 %v9677_v45, %v6884_v14  ;;  %v9737_v14 = vld [vmem:[#allocation5 + $0x44c] sm:$0xf0]  ;;  %v8401_v45 = vor.u32 %v10051_v52, %v8398_v54  ;;  %v10111_v52 = vld [vmem:[#allocation5 + $0x1004] sm:$0xf] }
 0x175   : > { %4341 = vmatpush.bf16.msrb.mxu1 %v7321_v19  ;;  %v7204_v19 = vld [vmem:[#allocation5 + $0x4c8] sm:$0xf]  ;;  %v7881_v30 = vor.u32 %v9921_v12, %v7878_v13  ;;  %v8721_v12 = vor.u32 %v10131_v55, %v8718_v61  ;;  %v10041_v13 = vld [vmem:[#allocation5 + $0xdd4] sm:$0xf]  ;;  %v10956_v55 = vpop.f32.mrf.mxu3 }
 0x176   : > { %4355 = vmatpush.bf16.msrb.mxu2 %v7641_v21  ;;  %v9757_v21 = vld [vmem:[#allocation5 + $0x4ec] sm:$0xf0]  ;;  %11341 = vst [vmem:[#allocation23_spill] sm:$0xff] %v10956_v55  ;;  %v6724_v61 = vld [vmem:[#allocation5 + $0x108] sm:$0xf] }
 0x177   : > { %4369 = vmatpush.bf16.msrb.mxu3 %v7961_v34  ;;  %v7205_v34 = vor.u32 %v9757_v21, %v7204_v19  ;;  %v10121_v19 = vld [vmem:[#allocation5 + $0x1054] sm:$0xf]  ;;  %v8678_v21 = vld [vmem:[#allocation5 + $0x1078] sm:$0xf0] }
 0x178   : > { %4328 = vmatpush.bf16.msrb.mxu0 %v6961_v36  ;;  %v6844_v36 = vld [vmem:[#allocation5 + $0x1f8] sm:$0xf] }
 0x179   : > { %4342 = vmatpush.bf16.msrb.mxu1 %v7281_v50  ;;  %v8441_v50 = vor.u32 %v10061_v27, %v8438_v31  ;;  %v6845_v53 = vor.u32 %v9667_v38, %v6844_v36  ;;  %v9647_v27 = vld [vmem:[#allocation5 + $0x17c] sm:$0xf0]  ;;  %v10031_v36 = vld [vmem:[#allocation5 + $0xd84] sm:$0xf] }
 0x17a   : > { %4356 = vmatpush.bf16.msrb.mxu2 %v7601_v51  ;;  %v8761_v51 = vor.u32 %v10141_v32, %v8758_v33  ;;  %v9727_v31 = vld [vmem:[#allocation5 + $0x3fc] sm:$0xf0] }
 0x17b   : > { %4370 = vmatpush.bf16.msrb.mxu3 %v7921_v5  ;;  %v6804_v5 = vld [vmem:[#allocation5 + $0x1a8] sm:$0xf]  ;;  %v10950_v38 = vld [vmem:[#allocation7] sm:$0xff] }
 0x17c   : > { %4329 = vmatpush.bf16.msrb.mxu0 %v6921_v10  ;;  %v10943_v10 = vpop.f32.mrf.mxu1  ;;  %v4107_v32 = vpop.f32.mrf.mxu0  ;;  %v11313_v40 = vperm.slane %v10950_v38, 3 }
 0x17d   : > { %4343 = vmatpush.bf16.msrb.mxu1 %v7241_v16  ;;  %v6805_v16 = vor.u32 %v9657_v6, %v6804_v5  ;;  %v10954_v49 = vadd.f32 %v4107_v32, %v10938_v18  ;;  %v7044_v6 = vld [vmem:[#allocation5 + $0x388] sm:$0xf]  ;;  %v9907_v5 = vld [vmem:[#allocation5 + $0x99c] sm:$0xf0] }
 0x17e   : > { %4357 = vmatpush.bf16.msrb.mxu2 %v7561_v17  ;;  %v8358_v17 = vld [vmem:[#allocation5 + $0xdf8] sm:$0xf0] }
 0x17f   : > { %4371 = vmatpush.bf16.msrb.mxu3 %v7881_v30  ;;  %4330 = vmatmul.bf16.vlgmr.msrb.gmra.mxu0 %v10830_v9  ;;  %v7084_v30 = vld [vmem:[#allocation5 + $0x3d8] sm:$0xf]  ;;  %v8361_v33 = vor.u32 %v10041_v13, %v8358_v17  ;;  %v8278_v17 = vld [vmem:[#allocation5 + $0xd58] sm:$0xf0] }
 0x180   : > { %4378 = vmatpush.bf16.msra.mxu0 %v8481_v25  ;;  %4344 = vmatmul.bf16.vlgmr.msrb.gmra.mxu1 %v10824_v2  ;;  %v7125_v25 = vor.u32 %v9737_v14, %v7124_v7  ;;  %v7085_v54 = vor.u32 %v9727_v31, %v7084_v30  ;;  %v9717_v7 = vld [vmem:[#allocation5 + $0x3ac] sm:$0xf0]  ;;  %v7004_v30 = vld [vmem:[#allocation5 + $0x338] sm:$0xf]  ;;  %v9707_v31 = vld [vmem:[#allocation5 + $0x35c] sm:$0xf0] }
 0x181   : > { %4392 = vmatpush.bf16.msra.mxu1 %v8801_v26  ;;  %4358 = vmatmul.bf16.vlgmr.msrb.gmra.mxu2 %v10835_v24  ;;  %v6764_v26 = vld [vmem:[#allocation5 + $0x158] sm:$0xf] }
 0x182   : > { %4406 = vmatpush.bf16.msra.mxu2 %v6885_v28  ;;  %4372 = vmatmul.bf16.vlgmr.msrb.gmra.mxu3 %v10844_v37  ;;  %v10948_v28 = vpop.f32.mrf.mxu2 }
 0x183   : > { %4420 = vmatpush.bf16.msra.mxu3 %v7205_v34  ;;  %11340 = vst [vmem:[#allocation22_spill] sm:$0xff] %v10948_v28  ;;  %v8681_v34 = vor.u32 %v10121_v19, %v8678_v21  ;;  %v10101_v19 = vld [vmem:[#allocation5 + $0xfb4] sm:$0xf]  ;;  %v8598_v21 = vld [vmem:[#allocation5 + $0xfd8] sm:$0xf0] }
 0x184   : > { %4379 = vmatpush.bf16.msra.mxu0 %v8441_v50  ;;  %v6765_v50 = vor.u32 %v9647_v27, %v6764_v26  ;;  %v4121_v14 = vpop.f32.mrf.mxu1  ;;  %v6684_v26 = vld [vmem:[#allocation5 + $0xb8] sm:$0xf]  ;;  %v9627_v27 = vld [vmem:[#allocation5 + $0xdc] sm:$0xf0] }
 0x185   : > { %4393 = vmatpush.bf16.msra.mxu1 %v8761_v51  ;;  %v8318_v51 = vld [vmem:[#allocation5 + $0xda8] sm:$0xf0]  ;;  %v4122_v13 = vadd.f32 %v4121_v14, %v11313_v40  ;;  %v6964_v14 = vld [vmem:[#allocation5 + $0x2e8] sm:$0xf]  ;;  %v9697_v40 = vld [vmem:[#allocation5 + $0x30c] sm:$0xf0] }
 0x186   : > { %4407 = vmatpush.bf16.msra.mxu2 %v6845_v53  ;;  %v8638_v53 = vld [vmem:[#allocation5 + $0x1028] sm:$0xf0]  ;;  %v8321_v18 = vor.u32 %v10031_v36, %v8318_v51  ;;  %v10011_v36 = vld [vmem:[#allocation5 + $0xce4] sm:$0xf]  ;;  %v8452_v28 = vld [vmem:[#allocation5 + $0xe80] sm:$0xf] }
 0x187   : > { %4421 = vmatpush.bf16.msra.mxu3 %v7165_v4  ;;  %v9637_v4 = vld [vmem:[#allocation5 + $0x12c] sm:$0xf0] }
 0x188   : > { %4380 = vmatpush.bf16.msra.mxu0 %v8401_v45  ;;  %v8641_v45 = vor.u32 %v10111_v52, %v8638_v53  ;;  %v6685_v52 = vor.u32 %v9627_v27, %v6684_v26  ;;  %v10091_v53 = vld [vmem:[#allocation5 + $0xf64] sm:$0xf]  ;;  %v6965_v26 = vor.u32 %v9697_v40, %v6964_v14  ;;  %v7524_v27 = vld [vmem:[#allocation5 + $0x748] sm:$0xf]  ;;  %v9827_v14 = vld [vmem:[#allocation5 + $0x71c] sm:$0xf0] }
 0x189   : > { %4394 = vmatpush.bf16.msra.mxu1 %v8721_v12  ;;  %v10021_v12 = vld [vmem:[#allocation5 + $0xd34] sm:$0xf] }
 0x18a   : > { %4408 = vmatpush.bf16.msra.mxu2 %v6805_v16  ;;  %v6725_v16 = vor.u32 %v9637_v4, %v6724_v61  ;;  %v4135_v32 = vpop.f32.mrf.mxu2  ;;  %v8558_v61 = vld [vmem:[#allocation5 + $0xf88] sm:$0xf0]  ;;  %v7005_v4 = vor.u32 %v9707_v31, %v7004_v30  ;;  %v9837_v30 = vld [vmem:[#allocation5 + $0x76c] sm:$0xf0]  ;;  %v7844_v31 = vld [vmem:[#allocation5 + $0x9c8] sm:$0xf] }
 0x18b   : > { %4422 = vmatpush.bf16.msra.mxu3 %v7125_v25  ;;  %v7045_v25 = vor.u32 %v9717_v7, %v7044_v6  ;;  %v4136_v51 = vadd.f32 %v4135_v32, %v4122_v13  ;;  %v9617_v6 = vld [vmem:[#allocation5 + $0x8c] sm:$0xf0]  ;;  %v4149_v7 = vpop.f32.mrf.mxu3  ;;  %v8198_v13 = vld [vmem:[#allocation5 + $0xcb8] sm:$0xf0] }
 0x18c   : > { %4381 = vmatpush.bf16.msra.mxu0 %v8361_v33  ;;  %v8281_v33 = vor.u32 %v10021_v12, %v8278_v17  ;;  %v10001_v12 = vld [vmem:[#allocation5 + $0xc94] sm:$0xf]  ;;  %v9917_v32 = vld [vmem:[#allocation5 + $0x9ec] sm:$0xf0] }
 0x18d   : > { %4395 = vmatpush.bf16.msra.mxu1 %v8681_v34  ;;  %v8601_v34 = vor.u32 %v10101_v19, %v8598_v21  ;;  %v10962_v56 = vadd.f32 %v4149_v7, %v4136_v51  ;;  %v8518_v19 = vld [vmem:[#allocation5 + $0xf38] sm:$0xf0]  ;;  %v6604_v21 = vld [vmem:[#allocation5 + $0x18] sm:$0xf]  ;;  %v8164_v51 = vld [vmem:[#allocation5 + $0xc48] sm:$0xf] }
 0x18e   : > { %4409 = vmatpush.bf16.msra.mxu2 %v6765_v50  ;;  %v8238_v50 = vld [vmem:[#allocation5 + $0xd08] sm:$0xf0]  ;;  %v9997_v7 = vld [vmem:[#allocation5 + $0xc6c] sm:$0xf0] }
 0x18f   : > { %4423 = vmatpush.bf16.msra.mxu3 %v7085_v54  ;;  %v6644_v54 = vld [vmem:[#allocation5 + $0x68] sm:$0xf]  ;;  %v8165_v40 = vor.u32 %v9997_v7, %v8164_v51  ;;  %v9977_v51 = vld [vmem:[#allocation5 + $0xbcc] sm:$0xf0] }
 0x190   : > { %4382 = vmatpush.bf16.msra.mxu0 %v8321_v18  ;;  %v8241_v18 = vor.u32 %v10011_v36, %v8238_v50  ;;  %v6645_v17 = vor.u32 %v9617_v6, %v6644_v54  ;;  %v6924_v36 = vld [vmem:[#allocation5 + $0x298] sm:$0xf]  ;;  %v9687_v50 = vld [vmem:[#allocation5 + $0x2bc] sm:$0xf0]  ;;  %v10077_v54 = vld [vmem:[#allocation5 + $0xeec] sm:$0xf0] }
 0x191   : > { %4396 = vmatpush.bf16.msra.mxu1 %v8641_v45  ;;  %v8561_v45 = vor.u32 %v10091_v53, %v8558_v61  ;;  %v7525_v53 = vor.u32 %v9837_v30, %v7524_v27  ;;  %v8484_v61 = vld [vmem:[#allocation5 + $0xec8] sm:$0xf]  ;;  %v7484_v6 = vld [vmem:[#allocation5 + $0x6f8] sm:$0xf]  ;;  %v6925_v22 = vor.u32 %v9687_v50, %v6924_v36  ;;  %v9817_v27 = vld [vmem:[#allocation5 + $0x6cc] sm:$0xf0] }
 0x192   : > { %4410 = vmatpush.bf16.msra.mxu2 %v6725_v16  ;;  %v10081_v16 = vld [vmem:[#allocation5 + $0xf14] sm:$0xf]  ;;  %v7764_v30 = vld [vmem:[#allocation5 + $0x928] sm:$0xf]  ;;  %v7404_v36 = vld [vmem:[#allocation5 + $0x658] sm:$0xf] }
 0x193   : > { %4424 = vmatpush.bf16.msra.mxu3 %v7045_v25  ;;  %v9607_v25 = vld [vmem:[#allocation5 + $0x3c] sm:$0xf0] }
 0x194   : > { %4383 = vmatpush.bf16.msra.mxu0 %v8281_v33  ;;  %v8201_v33 = vor.u32 %v10001_v12, %v8198_v13  ;;  %v7485_v12 = vor.u32 %v9827_v14, %v7484_v6  ;;  %v8444_v13 = vld [vmem:[#allocation5 + $0xe78] sm:$0xf]  ;;  %v9807_v50 = vld [vmem:[#allocation5 + $0x67c] sm:$0xf0] }
 0x195   : > { %4397 = vmatpush.bf16.msra.mxu1 %v8601_v34  ;;  %v8521_v34 = vor.u32 %v10081_v16, %v8518_v19  ;;  %v10067_v16 = vld [vmem:[#allocation5 + $0xe9c] sm:$0xf0]  ;;  %v7805_v19 = vor.u32 %v9907_v5, %v7804_v11  ;;  %v10057_v11 = vld [vmem:[#allocation5 + $0xe4c] sm:$0xf0]  ;;  %v7405_v6 = vor.u32 %v9807_v50, %v7404_v36  ;;  %v8364_v14 = vld [vmem:[#allocation5 + $0xdd8] sm:$0xf] }
 0x196   : > { %4411 = vmatpush.bf16.msra.mxu2 %v6685_v52  ;;  %v6605_v52 = vor.u32 %v9607_v25, %v6604_v21  ;;  %v10966_v25 = vpop.f32.mrf.mxu1  ;;  %v8445_v7 = vor.u32 %v10067_v16, %v8444_v13  ;;  %v7364_v16 = vld [vmem:[#allocation5 + $0x608] sm:$0xf]  ;;  %v7324_v36 = vld [vmem:[#allocation5 + $0x5b8] sm:$0xf]  ;;  %v9787_v50 = vld [vmem:[#allocation5 + $0x5dc] sm:$0xf0] }
 0x197   : > { %4425 = vmatpush.bf16.msra.mxu3 %v7005_v4  ;;  %v7845_v4 = vor.u32 %v9917_v32, %v7844_v31  ;;  %v9897_v31 = vld [vmem:[#allocation5 + $0x94c] sm:$0xf0]  ;;  %v8084_v32 = vld [vmem:[#allocation5 + $0xba8] sm:$0xf] }
 0x198   : > { %4384 = vmatpush.bf16.msra.mxu0 %v8241_v18  ;;  %v9987_v18 = vld [vmem:[#allocation5 + $0xc1c] sm:$0xf0]  ;;  %v8085_v5 = vor.u32 %v9977_v51, %v8084_v32 }
 0x199   : > { %4398 = vmatpush.bf16.msra.mxu1 %v8561_v45  ;;  %v8485_v45 = vor.u32 %v10077_v54, %v8484_v61  ;;  %v8125_v21 = vor.u32 %v9987_v18, %v8124_v0  ;;  %v7765_v0 = vor.u32 %v9897_v31, %v7764_v30  ;;  %v8044_v61 = vld [vmem:[#allocation5 + $0xb58] sm:$0xf]  ;;  %v9967_v54 = vld [vmem:[#allocation5 + $0xb7c] sm:$0xf0]  ;;  %v8004_v30 = vld [vmem:[#allocation5 + $0xb08] sm:$0xf] }
 0x19a   : > { %4412 = vmatpush.bf16.msra.mxu2 %v6645_v17  ;;  %v10964_v17 = vpop.f32.mrf.mxu0  ;;  %v10047_v18 = vld [vmem:[#allocation5 + $0xdfc] sm:$0xf0]  ;;  %v8045_v13 = vor.u32 %v9967_v54, %v8044_v61  ;;  %v9957_v31 = vld [vmem:[#allocation5 + $0xb2c] sm:$0xf0] }
 0x19b   : > { %4426 = vmatpush.bf16.msra.mxu3 %v6965_v26  ;;  %11342 = vst [vmem:[#allocation24_spill] sm:$0xff] %v10964_v17  ;;  %v7444_v26 = vld [vmem:[#allocation5 + $0x6a8] sm:$0xf]  ;;  %v8365_v51 = vor.u32 %v10047_v18, %v8364_v14  ;;  %v9947_v61 = vld [vmem:[#allocation5 + $0xadc] sm:$0xf0] }
 0x19c   : > { %4385 = vmatpush.bf16.msra.mxu0 %v8201_v33  ;;  %v7445_v33 = vor.u32 %v9817_v27, %v7444_v26  ;;  %v9877_v27 = vld [vmem:[#allocation5 + $0x8ac] sm:$0xf0]  ;;  %v8284_v18 = vld [vmem:[#allocation5 + $0xd38] sm:$0xf]  ;;  %v9662_v17 = vld [vmem:[#allocation5 + $0x1fc] sm:$0xf] }
 0x19d   : > { %4399 = vmatpush.bf16.msra.mxu1 %v8521_v34  ;;  %v8404_v34 = vld [vmem:[#allocation5 + $0xe28] sm:$0xf] }
 0x19e   : > { %4413 = vmatpush.bf16.msra.mxu2 %v6605_v52  ;;  %v7724_v52 = vld [vmem:[#allocation5 + $0x8d8] sm:$0xf]  ;;  %v4177_v32 = vpop.f32.mrf.mxu1 }
 0x19f   : > { %4427 = vmatpush.bf16.msra.mxu3 %v6925_v22  ;;  %4386 = vmatmul.bf16.vlgmr.msra.gmra.mxu0 %v10848_v43  ;;  %v10971_v22 = vpop.f32.mrf.mxu2 }
 0x1a0   : > { %4434 = vmatpush.bf16.msrb.mxu0 %v7525_v53  ;;  %4400 = vmatmul.bf16.vlgmr.msra.gmra.mxu1 %v10846_v41  ;;  %v9887_v53 = vld [vmem:[#allocation5 + $0x8fc] sm:$0xf0] }
 0x1a1   : > { %4448 = vmatpush.bf16.msrb.mxu1 %v7845_v4  ;;  %4414 = vmatmul.bf16.vlgmr.msra.gmra.mxu2 %v10821_v60  ;;  %v8405_v4 = vor.u32 %v10057_v11, %v8404_v34  ;;  %v8324_v34 = vld [vmem:[#allocation5 + $0xd88] sm:$0xf]  ;;  %v10037_v11 = vld [vmem:[#allocation5 + $0xdac] sm:$0xf0] }
 0x1a2   : > { %4462 = vmatpush.bf16.msrb.mxu2 %v8165_v40  ;;  %4428 = vmatmul.bf16.vlgmr.msra.gmra.mxu3 %v10830_v9  ;;  %v10974_v40 = vpop.f32.mrf.mxu3 }
 0x1a3   : > { %4476 = vmatpush.bf16.msrb.mxu3 %v8485_v45  ;;  %v4163_v45 = vpop.f32.mrf.mxu0 }
 0x1a4   : > { %4435 = vmatpush.bf16.msrb.mxu0 %v7485_v12  ;;  %v7725_v12 = vor.u32 %v9887_v53, %v7724_v52  ;;  %v4164_v26 = vadd.f32 %v4163_v45, %v10962_v56  ;;  %v7644_v52 = vld [vmem:[#allocation5 + $0x838] sm:$0xf]  ;;  %v9867_v53 = vld [vmem:[#allocation5 + $0x85c] sm:$0xf0] }
 0x1a5   : > { %4449 = vmatpush.bf16.msrb.mxu1 %v7805_v19  ;;  %v9797_v19 = vld [vmem:[#allocation5 + $0x62c] sm:$0xf0]  ;;  %v7964_v56 = vld [vmem:[#allocation5 + $0xab8] sm:$0xf]  ;;  %v10027_v45 = vld [vmem:[#allocation5 + $0xd5c] sm:$0xf0] }
 0x1a6   : > { %4463 = vmatpush.bf16.msrb.mxu2 %v8125_v21  ;;  %v7684_v21 = vld [vmem:[#allocation5 + $0x888] sm:$0xf] }
 0x1a7   : > { %4477 = vmatpush.bf16.msrb.mxu3 %v8445_v7  ;;  %v4178_v7 = vadd.f32 %v4177_v32, %v4164_v26  ;;  %v4191_v54 = vpop.f32.mrf.mxu2  ;;  %v7604_v26 = vld [vmem:[#allocation5 + $0x7e8] sm:$0xf]  ;;  %v9937_v32 = vld [vmem:[#allocation5 + $0xa8c] sm:$0xf0] }
 0x1a8   : > { %4436 = vmatpush.bf16.msrb.mxu0 %v7445_v33  ;;  %v7365_v33 = vor.u32 %v9797_v19, %v7364_v16  ;;  %v7965_v16 = vor.u32 %v9947_v61, %v7964_v56  ;;  %v7284_v19 = vld [vmem:[#allocation5 + $0x568] sm:$0xf]  ;;  %v7884_v56 = vld [vmem:[#allocation5 + $0xa18] sm:$0xf]  ;;  %v9927_v61 = vld [vmem:[#allocation5 + $0xa3c] sm:$0xf0] }
 0x1a9   : > { %4450 = vmatpush.bf16.msrb.mxu1 %v7765_v0  ;;  %v7685_v0 = vor.u32 %v9877_v27, %v7684_v21  ;;  %v4192_v14 = vadd.f32 %v4191_v54, %v4178_v7  ;;  %v9777_v21 = vld [vmem:[#allocation5 + $0x58c] sm:$0xf0]  ;;  %v8804_v54 = vld [vmem:[#allocation5 + $0x1148] sm:$0xf]  ;;  %v10007_v7 = vld [vmem:[#allocation5 + $0xcbc] sm:$0xf0] }
 0x1aa   : > { %4464 = vmatpush.bf16.msrb.mxu2 %v8085_v5  ;;  %v8005_v5 = vor.u32 %v9957_v31, %v8004_v30  ;;  %v9857_v30 = vld [vmem:[#allocation5 + $0x80c] sm:$0xf0]  ;;  %v7924_v31 = vld [vmem:[#allocation5 + $0xa68] sm:$0xf] }
 0x1ab   : > { %4478 = vmatpush.bf16.msrb.mxu3 %v8405_v4  ;;  %v8325_v4 = vor.u32 %v10037_v11, %v8324_v34  ;;  %v7285_v34 = vor.u32 %v9777_v21, %v7284_v19  ;;  %v10017_v11 = vld [vmem:[#allocation5 + $0xd0c] sm:$0xf0]  ;;  %v7206_v19 = vld [vmem:[#allocation5 + $0x4f0] sm:$0xf0]  ;;  %v8204_v21 = vld [vmem:[#allocation5 + $0xc98] sm:$0xf] }
 0x1ac   : > { %4437 = vmatpush.bf16.msrb.mxu0 %v7405_v6  ;;  %v7325_v6 = vor.u32 %v9787_v50, %v7324_v36  ;;  %v7605_v36 = vor.u32 %v9857_v30, %v7604_v26  ;;  %v7925_v50 = vor.u32 %v9937_v32, %v7924_v31  ;;  %v9832_v26 = vld [vmem:[#allocation5 + $0x74c] sm:$0xf]  ;;  %v7526_v30 = vld [vmem:[#allocation5 + $0x770] sm:$0xf0] }
 0x1ad   : > { %4451 = vmatpush.bf16.msrb.mxu1 %v7725_v12  ;;  %v4205_v12 = vpop.f32.mrf.mxu3 }
 0x1ae   : > { %4465 = vmatpush.bf16.msrb.mxu2 %v8045_v13  ;;  %v7645_v13 = vor.u32 %v9867_v53, %v7644_v52  ;;  %v10977_v27 = vadd.f32 %v4205_v12, %v4192_v14  ;;  %v7564_v52 = vld [vmem:[#allocation5 + $0x798] sm:$0xf]  ;;  %v9847_v53 = vld [vmem:[#allocation5 + $0x7bc] sm:$0xf0]  ;;  %v9752_v12 = vld [vmem:[#allocation5 + $0x4cc] sm:$0xf] }
 0x1af   : > { %4479 = vmatpush.bf16.msrb.mxu3 %v8365_v51  ;;  %v8285_v51 = vor.u32 %v10027_v45, %v8284_v18  ;;  %v9672_v18 = vld [vmem:[#allocation5 + $0x24c] sm:$0xf]  ;;  %v6886_v45 = vld [vmem:[#allocation5 + $0x270] sm:$0xf0] }
 0x1b0   : > { %4438 = vmatpush.bf16.msrb.mxu0 %v7365_v33  ;;  %v8244_v33 = vld [vmem:[#allocation5 + $0xce8] sm:$0xf]  ;;  %v6889_v32 = vor.u32 %v9672_v18, %v6886_v45  ;;  %v9732_v45 = vld [vmem:[#allocation5 + $0x42c] sm:$0xf] }
 0x1b1   : > { %4452 = vmatpush.bf16.msrb.mxu1 %v7685_v0  ;;  %v7244_v0 = vld [vmem:[#allocation5 + $0x518] sm:$0xf]  ;;  %v8245_v14 = vor.u32 %v10017_v11, %v8244_v33  ;;  %v8205_v33 = vor.u32 %v10007_v7, %v8204_v21  ;;  %v10147_v11 = vld [vmem:[#allocation5 + $0x111c] sm:$0xf0] }
 0x1b2   : > { %4466 = vmatpush.bf16.msrb.mxu2 %v8005_v5  ;;  %v9767_v5 = vld [vmem:[#allocation5 + $0x53c] sm:$0xf0]  ;;  %v8684_v21 = vld [vmem:[#allocation5 + $0x1058] sm:$0xf] }
 0x1b3   : > { %4480 = vmatpush.bf16.msrb.mxu3 %v8325_v4  ;;  %v10157_v4 = vld [vmem:[#allocation5 + $0x116c] sm:$0xf0] }
 0x1b4   : > { %4439 = vmatpush.bf16.msrb.mxu0 %v7325_v6  ;;  %v7245_v6 = vor.u32 %v9767_v5, %v7244_v0  ;;  %v8805_v31 = vor.u32 %v10157_v4, %v8804_v54  ;;  %v9742_v0 = vld [vmem:[#allocation5 + $0x47c] sm:$0xf]  ;;  %v7166_v5 = vld [vmem:[#allocation5 + $0x4a0] sm:$0xf0]  ;;  %v10137_v54 = vld [vmem:[#allocation5 + $0x10cc] sm:$0xf0] }
 0x1b5   : > { %4453 = vmatpush.bf16.msrb.mxu1 %v7645_v13  ;;  %v7565_v13 = vor.u32 %v9847_v53, %v7564_v52  ;;  %v8765_v52 = vor.u32 %v10147_v11, %v8764_v15  ;;  %v6849_v53 = vor.u32 %v9662_v17, %v6846_v57  ;;  %v7169_v7 = vor.u32 %v9742_v0, %v7166_v5  ;;  %v9652_v4 = vld [vmem:[#allocation5 + $0x1ac] sm:$0xf]  ;;  %v7446_v15 = vld [vmem:[#allocation5 + $0x6d0] sm:$0xf0]  ;;  %v9802_v11 = vld [vmem:[#allocation5 + $0x65c] sm:$0xf]  ;;  %v10990_v0 = vpop.f32.mrf.mxu2 }
 0x1b6   : > { %4467 = vmatpush.bf16.msrb.mxu2 %v7965_v16  ;;  %v7885_v16 = vor.u32 %v9927_v61, %v7884_v56  ;;  %v8724_v56 = vld [vmem:[#allocation5 + $0x10a8] sm:$0xf]  ;;  %v10981_v61 = vpop.f32.mrf.mxu0  ;;  %11344 = vst [vmem:[#allocation26_spill] sm:$0xff] %v10990_v0 }
 0x1b7   : > { %4481 = vmatpush.bf16.msrb.mxu3 %v8285_v51  ;;  %v7209_v51 = vor.u32 %v9752_v12, %v7206_v19  ;;  %v7126_v12 = vld [vmem:[#allocation5 + $0x450] sm:$0xf0]  ;;  %v9812_v19 = vld [vmem:[#allocation5 + $0x6ac] sm:$0xf]  ;;  %v8725_v57 = vor.u32 %v10137_v54, %v8724_v56 }
 0x1b8   : > { %4440 = vmatpush.bf16.msrb.mxu0 %v7285_v34  ;;  %v7529_v34 = vor.u32 %v9832_v26, %v7526_v30  ;;  %v9642_v26 = vld [vmem:[#allocation5 + $0x15c] sm:$0xf]  ;;  %v6766_v30 = vld [vmem:[#allocation5 + $0x180] sm:$0xf0]  ;;  %v9632_v56 = vld [vmem:[#allocation5 + $0x10c] sm:$0xf] }
 0x1b9   : > { %4454 = vmatpush.bf16.msrb.mxu1 %v7605_v36  ;;  %v9822_v36 = vld [vmem:[#allocation5 + $0x6fc] sm:$0xf] }
 0x1ba   : > { %4468 = vmatpush.bf16.msrb.mxu2 %v7925_v50  ;;  %v7486_v50 = vld [vmem:[#allocation5 + $0x720] sm:$0xf0] }
 0x1bb   : > { %4482 = vmatpush.bf16.msrb.mxu3 %v8245_v14  ;;  %v6806_v14 = vld [vmem:[#allocation5 + $0x1d0] sm:$0xf0]  ;;  %v7489_v18 = vor.u32 %v9822_v36, %v7486_v50  ;;  %v6769_v36 = vor.u32 %v9642_v26, %v6766_v30  ;;  %v8644_v50 = vld [vmem:[#allocation5 + $0x1008] sm:$0xf]  ;;  %v10107_v30 = vld [vmem:[#allocation5 + $0xfdc] sm:$0xf0] }
 0x1bc   : > { %4441 = vmatpush.bf16.msrb.mxu0 %v7245_v6  ;;  %v10984_v6 = vpop.f32.mrf.mxu1  ;;  %v6809_v17 = vor.u32 %v9652_v4, %v6806_v14  ;;  %v10992_v4 = vpop.f32.mrf.mxu3 }
 0x1bd   : > { %4455 = vmatpush.bf16.msrb.mxu1 %v7565_v13  ;;  %11343 = vst [vmem:[#allocation25_spill] sm:$0xff] %v10984_v6  ;;  %v7129_v13 = vor.u32 %v9732_v45, %v7126_v12  ;;  %v7046_v45 = vld [vmem:[#allocation5 + $0x3b0] sm:$0xf0]  ;;  %v8132_v6 = vld [vmem:[#allocation5 + $0xc00] sm:$0xf] }
 0x1be   : > { %4469 = vmatpush.bf16.msrb.mxu2 %v7885_v16  ;;  %v10127_v16 = vld [vmem:[#allocation5 + $0x107c] sm:$0xf0]  ;;  %v4219_v54 = vpop.f32.mrf.mxu0  ;;  %11345 = vst [vmem:[#allocation27_spill] sm:$0xff] %v10992_v4  ;;  %v9782_v4 = vld [vmem:[#allocation5 + $0x5bc] sm:$0xf] }
 0x1bf   : > { %4483 = vmatpush.bf16.msrb.mxu3 %v8205_v33  ;;  %4442 = vmatmul.bf16.vlgmr.msrb.gmra.mxu0 %v10824_v2  ;;  %v11317_v33 = vperm.slane %v10950_v38, 4  ;;  %v8685_v5 = vor.u32 %v10127_v16, %v8684_v21 }
 0x1c0   : > { %4490 = vmatpush.bf16.msra.mxu0 %v8805_v31  ;;  %4456 = vmatmul.bf16.vlgmr.msrb.gmra.mxu1 %v10835_v24  ;;  %v7449_v31 = vor.u32 %v9812_v19, %v7446_v15  ;;  %v9792_v19 = vld [vmem:[#allocation5 + $0x60c] sm:$0xf]  ;;  %v7366_v15 = vld [vmem:[#allocation5 + $0x630] sm:$0xf0] }
 0x1c1   : > { %4504 = vmatpush.bf16.msra.mxu1 %v6889_v32  ;;  %4470 = vmatmul.bf16.vlgmr.msrb.gmra.mxu2 %v10844_v37  ;;  %v9722_v32 = vld [vmem:[#allocation5 + $0x3dc] sm:$0xf]  ;;  %v4220_v12 = vadd.f32 %v4219_v54, %v11317_v33  ;;  %v7326_v54 = vld [vmem:[#allocation5 + $0x5e0] sm:$0xf0] }
 0x1c2   : > { %4518 = vmatpush.bf16.msra.mxu2 %v7209_v51  ;;  %4484 = vmatmul.bf16.vlgmr.msrb.gmra.mxu3 %v10848_v43  ;;  %v7086_v51 = vld [vmem:[#allocation5 + $0x400] sm:$0xf0] }
 0x1c3   : > { %4532 = vmatpush.bf16.msra.mxu3 %v7529_v34  ;;  %v7406_v34 = vld [vmem:[#allocation5 + $0x680] sm:$0xf0] }
 0x1c4   : > { %4491 = vmatpush.bf16.msra.mxu0 %v8765_v52  ;;  %v7089_v52 = vor.u32 %v9722_v32, %v7086_v51  ;;  %v7409_v14 = vor.u32 %v9802_v11, %v7406_v34  ;;  %v9622_v32 = vld [vmem:[#allocation5 + $0xbc] sm:$0xf]  ;;  %v7369_v51 = vor.u32 %v9792_v19, %v7366_v15  ;;  %v7006_v34 = vld [vmem:[#allocation5 + $0x360] sm:$0xf0]  ;;  %v9772_v15 = vld [vmem:[#allocation5 + $0x56c] sm:$0xf] }
 0x1c5   : > { %4505 = vmatpush.bf16.msra.mxu1 %v6849_v53  ;;  %v10117_v53 = vld [vmem:[#allocation5 + $0x102c] sm:$0xf0]  ;;  %v9702_v11 = vld [vmem:[#allocation5 + $0x33c] sm:$0xf]  ;;  %v4261_v19 = vpop.f32.mrf.mxu3 }
 0x1c6   : > { %4519 = vmatpush.bf16.msra.mxu2 %v7169_v7  ;;  %v6726_v7 = vld [vmem:[#allocation5 + $0x130] sm:$0xf0] }
 0x1c7   : > { %4533 = vmatpush.bf16.msra.mxu3 %v7489_v18  ;;  %v9712_v18 = vld [vmem:[#allocation5 + $0x38c] sm:$0xf]  ;;  %v6729_v21 = vor.u32 %v9632_v56, %v6726_v7  ;;  %v10097_v56 = vld [vmem:[#allocation5 + $0xf8c] sm:$0xf0]  ;;  %v6646_v7 = vld [vmem:[#allocation5 + $0x90] sm:$0xf0] }
 0x1c8   : > { %4492 = vmatpush.bf16.msra.mxu0 %v8725_v57  ;;  %v4233_v57 = vpop.f32.mrf.mxu1  ;;  %v7049_v26 = vor.u32 %v9712_v18, %v7046_v45  ;;  %v7329_v45 = vor.u32 %v9782_v4, %v7326_v54  ;;  %v9992_v54 = vld [vmem:[#allocation5 + $0xc4c] sm:$0xf] }
 0x1c9   : > { %4506 = vmatpush.bf16.msra.mxu1 %v6809_v17  ;;  %v8645_v17 = vor.u32 %v10117_v53, %v8644_v50  ;;  %v4234_v16 = vadd.f32 %v4233_v57, %v4220_v12  ;;  %v4247_v50 = vpop.f32.mrf.mxu2  ;;  %v7009_v53 = vor.u32 %v9702_v11, %v7006_v34  ;;  %v6966_v12 = vld [vmem:[#allocation5 + $0x310] sm:$0xf0]  ;;  %v9912_v11 = vld [vmem:[#allocation5 + $0x9cc] sm:$0xf] }
 0x1ca   : > { %4520 = vmatpush.bf16.msra.mxu2 %v7129_v13  ;;  %v8604_v13 = vld [vmem:[#allocation5 + $0xfb8] sm:$0xf]  ;;  %v7286_v57 = vld [vmem:[#allocation5 + $0x590] sm:$0xf0] }
 0x1cb   : > { %4534 = vmatpush.bf16.msra.mxu3 %v7449_v31  ;;  %v6686_v31 = vld [vmem:[#allocation5 + $0xe0] sm:$0xf0]  ;;  %v8605_v33 = vor.u32 %v10107_v30, %v8604_v13  ;;  %v4248_v18 = vadd.f32 %v4247_v50, %v4234_v16  ;;  %v8524_v13 = vld [vmem:[#allocation5 + $0xf18] sm:$0xf]  ;;  %v9602_v30 = vld [vmem:[#allocation5 + $0x1c] sm:$0xf]  ;;  %v7289_v4 = vor.u32 %v9772_v15, %v7286_v57 }
 0x1cc   : > { %4493 = vmatpush.bf16.msra.mxu0 %v8685_v5  ;;  %v6689_v5 = vor.u32 %v9622_v32, %v6686_v31  ;;  %v6606_v31 = vld [vmem:[#allocation5 + $0x40] sm:$0xf0]  ;;  %v9682_v16 = vld [vmem:[#allocation5 + $0x29c] sm:$0xf]  ;;  %v7846_v34 = vld [vmem:[#allocation5 + $0x9f0] sm:$0xf0] }
 0x1cd   : > { %4507 = vmatpush.bf16.msra.mxu1 %v6769_v36  ;;  %v8564_v36 = vld [vmem:[#allocation5 + $0xf68] sm:$0xf]  ;;  %v10996_v55 = vadd.f32 %v4261_v19, %v4248_v18  ;;  %v8166_v50 = vld [vmem:[#allocation5 + $0xc70] sm:$0xf0]  ;;  %v10072_v18 = vld [vmem:[#allocation5 + $0xecc] sm:$0xf] }
 0x1ce   : > { %4521 = vmatpush.bf16.msra.mxu2 %v7089_v52  ;;  %v9612_v52 = vld [vmem:[#allocation5 + $0x6c] sm:$0xf]  ;;  %v8486_v19 = vld [vmem:[#allocation5 + $0xef0] sm:$0xf0]  ;;  %v9902_v15 = vld [vmem:[#allocation5 + $0x97c] sm:$0xf] }
 0x1cf   : > { %4535 = vmatpush.bf16.msra.mxu3 %v7409_v14  ;;  %v9692_v14 = vld [vmem:[#allocation5 + $0x2ec] sm:$0xf]  ;;  %v7806_v57 = vld [vmem:[#allocation5 + $0x9a0] sm:$0xf0] }
 0x1d0   : > { %4494 = vmatpush.bf16.msra.mxu0 %v8645_v17  ;;  %v8565_v17 = vor.u32 %v10097_v56, %v8564_v36  ;;  %v6969_v32 = vor.u32 %v9692_v14, %v6966_v12  ;;  %v9762_v36 = vld [vmem:[#allocation5 + $0x51c] sm:$0xf]  ;;  %v7246_v56 = vld [vmem:[#allocation5 + $0x540] sm:$0xf0]  ;;  %v8806_v14 = vld [vmem:[#allocation5 + $0x1170] sm:$0xf0]  ;;  %v8489_v12 = vor.u32 %v10072_v18, %v8486_v19 }
 0x1d1   : > { %4508 = vmatpush.bf16.msra.mxu1 %v6729_v21  ;;  %v6649_v21 = vor.u32 %v9612_v52, %v6646_v7  ;;  %v7849_v52 = vor.u32 %v9912_v11, %v7846_v34  ;;  %v10152_v7 = vld [vmem:[#allocation5 + $0x114c] sm:$0xf]  ;;  %v7249_v0 = vor.u32 %v9762_v36, %v7246_v56  ;;  %v7766_v11 = vld [vmem:[#allocation5 + $0x950] sm:$0xf0]  ;;  %v7726_v36 = vld [vmem:[#allocation5 + $0x900] sm:$0xf0] }
 0x1d2   : > { %4522 = vmatpush.bf16.msra.mxu2 %v7049_v26  ;;  %v10087_v26 = vld [vmem:[#allocation5 + $0xf3c] sm:$0xf0]  ;;  %v9972_v34 = vld [vmem:[#allocation5 + $0xbac] sm:$0xf]  ;;  %v8406_v18 = vld [vmem:[#allocation5 + $0xe50] sm:$0xf0] }
 0x1d3   : > { %4536 = vmatpush.bf16.msra.mxu3 %v7369_v51  ;;  %v6926_v51 = vld [vmem:[#allocation5 + $0x2c0] sm:$0xf0]  ;;  %v9962_v56 = vld [vmem:[#allocation5 + $0xb5c] sm:$0xf] }
 0x1d4   : > { %4495 = vmatpush.bf16.msra.mxu0 %v8605_v33  ;;  %v8525_v33 = vor.u32 %v10087_v26, %v8524_v13  ;;  %v10998_v13 = vpop.f32.mrf.mxu0  ;;  %v7809_v26 = vor.u32 %v9902_v15, %v7806_v57  ;;  %v10122_v15 = vld [vmem:[#allocation5 + $0x105c] sm:$0xf]  ;;  %v8686_v57 = vld [vmem:[#allocation5 + $0x1080] sm:$0xf0] }
 0x1d5   : > { %4509 = vmatpush.bf16.msra.mxu1 %v6689_v5  ;;  %v6609_v5 = vor.u32 %v9602_v30, %v6606_v31  ;;  %v10142_v30 = vld [vmem:[#allocation5 + $0x10fc] sm:$0xf]  ;;  %v8129_v31 = vor.u32 %v9982_v42, %v8126_v59  ;;  %v8726_v59 = vld [vmem:[#allocation5 + $0x10d0] sm:$0xf0] }
 0x1d6   : > { %4523 = vmatpush.bf16.msra.mxu2 %v7009_v53  ;;  %v6929_v53 = vor.u32 %v9682_v16, %v6926_v51  ;;  %v11000_v51 = vpop.f32.mrf.mxu1 }
 0x1d7   : > { %4537 = vmatpush.bf16.msra.mxu3 %v7329_v45  ;;  %v8169_v45 = vor.u32 %v9992_v54, %v8166_v50  ;;  %v8086_v54 = vld [vmem:[#allocation5 + $0xbd0] sm:$0xf0]  ;;  %v10052_v50 = vld [vmem:[#allocation5 + $0xe2c] sm:$0xf] }
 0x1d8   : > { %4496 = vmatpush.bf16.msra.mxu0 %v8565_v17  ;;  %v8446_v17 = vld [vmem:[#allocation5 + $0xea0] sm:$0xf0]  ;;  %v8409_v42 = vor.u32 %v10052_v50, %v8406_v18  ;;  %v8689_v50 = vor.u32 %v10122_v15, %v8686_v57 }
 0x1d9   : > { %4510 = vmatpush.bf16.msra.mxu1 %v6649_v21  ;;  %v8809_v21 = vor.u32 %v10152_v7, %v8806_v14  ;;  %v8449_v16 = vor.u32 %v10062_v48, %v8446_v17  ;;  %v8089_v48 = vor.u32 %v9972_v34, %v8086_v54  ;;  %v10042_v7 = vld [vmem:[#allocation5 + $0xddc] sm:$0xf]  ;;  %v8366_v14 = vld [vmem:[#allocation5 + $0xe00] sm:$0xf0]  ;;  %v8326_v34 = vld [vmem:[#allocation5 + $0xdb0] sm:$0xf0] }
 0x1da   : > { %4524 = vmatpush.bf16.msra.mxu2 %v6969_v32  ;;  %v8766_v32 = vld [vmem:[#allocation5 + $0x1120] sm:$0xf0] }
 0x1db   : > { %4538 = vmatpush.bf16.msra.mxu3 %v7289_v4  ;;  %v9892_v4 = vld [vmem:[#allocation5 + $0x92c] sm:$0xf]  ;;  %v8769_v19 = vor.u32 %v10142_v30, %v8766_v32  ;;  %v7686_v32 = vld [vmem:[#allocation5 + $0x8b0] sm:$0xf0]  ;;  %v8606_v15 = vld [vmem:[#allocation5 + $0xfe0] sm:$0xf0] }
 0x1dc   : > { %4497 = vmatpush.bf16.msra.mxu0 %v8525_v33  ;;  %v7769_v33 = vor.u32 %v9892_v4, %v7766_v11  ;;  %v4275_v17 = vpop.f32.mrf.mxu0  ;;  %v9872_v30 = vld [vmem:[#allocation5 + $0x88c] sm:$0xf]  ;;  %v8006_v4 = vld [vmem:[#allocation5 + $0xb30] sm:$0xf0] }
 0x1dd   : > { %4511 = vmatpush.bf16.msra.mxu1 %v6609_v5  ;;  %v10132_v5 = vld [vmem:[#allocation5 + $0x10ac] sm:$0xf] }
 0x1de   : > { %4525 = vmatpush.bf16.msra.mxu2 %v6929_v53  ;;  %v11005_v53 = vpop.f32.mrf.mxu2  ;;  %v10032_v11 = vld [vmem:[#allocation5 + $0xd8c] sm:$0xf]  ;;  %v4289_v54 = vpop.f32.mrf.mxu1 }
 0x1df   : > { %4539 = vmatpush.bf16.msra.mxu3 %v7249_v0  ;;  %4498 = vmatmul.bf16.vlgmr.msra.gmra.mxu0 %v10846_v41  ;;  %v9882_v0 = vld [vmem:[#allocation5 + $0x8dc] sm:$0xf]  ;;  %11346 = vst [vmem:[#allocation28_spill] sm:$0xff] %v11005_v53  ;;  %v8774_v53 = vld [vmem:[#allocation5 + $0x1128] sm:$0xf0] }
 0x1e0   : > { %4546 = vmatpush.bf16.msrb.mxu0 %v7849_v52  ;;  %4512 = vmatmul.bf16.vlgmr.msra.gmra.mxu1 %v10821_v60  ;;  %v8046_v52 = vld [vmem:[#allocation5 + $0xb80] sm:$0xf0] }
 0x1e1   : > { %4560 = vmatpush.bf16.msrb.mxu1 %v8169_v45  ;;  %4526 = vmatmul.bf16.vlgmr.msra.gmra.mxu2 %v10830_v9  ;;  %v8729_v45 = vor.u32 %v10132_v5, %v8726_v59  ;;  %v8646_v5 = vld [vmem:[#allocation5 + $0x1030] sm:$0xf0] }
 0x1e2   : > { %4574 = vmatpush.bf16.msrb.mxu2 %v8489_v12  ;;  %4540 = vmatmul.bf16.vlgmr.msra.gmra.mxu3 %v10824_v2  ;;  %v7729_v12 = vor.u32 %v9882_v0, %v7726_v36  ;;  %v7646_v0 = vld [vmem:[#allocation5 + $0x860] sm:$0xf0]  ;;  %v9942_v36 = vld [vmem:[#allocation5 + $0xabc] sm:$0xf] }
 0x1e3   : > { %4588 = vmatpush.bf16.msrb.mxu3 %v8809_v21  ;;  %v8049_v21 = vor.u32 %v9962_v56, %v8046_v52  ;;  %v7966_v56 = vld [vmem:[#allocation5 + $0xae0] sm:$0xf0] }
 0x1e4   : > { %4547 = vmatpush.bf16.msrb.mxu0 %v7809_v26  ;;  %v8369_v26 = vor.u32 %v10042_v7, %v8366_v14  ;;  %v8286_v52 = vld [vmem:[#allocation5 + $0xd60] sm:$0xf0] }
 0x1e5   : > { %4561 = vmatpush.bf16.msrb.mxu1 %v8129_v31  ;;  %v9952_v31 = vld [vmem:[#allocation5 + $0xb0c] sm:$0xf] }
 0x1e6   : > { %4575 = vmatpush.bf16.msrb.mxu2 %v8449_v16  ;;  %v4276_v16 = vadd.f32 %v4275_v17, %v10996_v55  ;;  %v8009_v59 = vor.u32 %v9952_v31, %v8006_v4  ;;  %v10022_v55 = vld [vmem:[#allocation5 + $0xd3c] sm:$0xf]  ;;  %v4303_v14 = vpop.f32.mrf.mxu2  ;;  %v7969_v17 = vor.u32 %v9942_v36, %v7966_v56  ;;  %v7926_v31 = vld [vmem:[#allocation5 + $0xa90] sm:$0xf0]  ;;  %v7886_v36 = vld [vmem:[#allocation5 + $0xa40] sm:$0xf0] }
 0x1e7   : > { %4589 = vmatpush.bf16.msrb.mxu3 %v8769_v19  ;;  %v7689_v19 = vor.u32 %v9872_v30, %v7686_v32  ;;  %v7606_v30 = vld [vmem:[#allocation5 + $0x810] sm:$0xf0]  ;;  %v9932_v32 = vld [vmem:[#allocation5 + $0xa6c] sm:$0xf]  ;;  %v10002_v56 = vld [vmem:[#allocation5 + $0xc9c] sm:$0xf] }
 0x1e8   : > { %4548 = vmatpush.bf16.msrb.mxu0 %v7769_v33  ;;  %v4290_v18 = vadd.f32 %v4289_v54, %v4276_v16  ;;  %v10112_v33 = vld [vmem:[#allocation5 + $0x100c] sm:$0xf]  ;;  %v8246_v4 = vld [vmem:[#allocation5 + $0xd10] sm:$0xf0] }
 0x1e9   : > { %4562 = vmatpush.bf16.msrb.mxu1 %v8089_v48  ;;  %v8329_v48 = vor.u32 %v10032_v11, %v8326_v34  ;;  %v8649_v7 = vor.u32 %v10112_v33, %v8646_v5  ;;  %v10012_v16 = vld [vmem:[#allocation5 + $0xcec] sm:$0xf]  ;;  %v11347_v11 = vmax.f32 %v10884_v46, %v10954_v49  ;;  %v8566_v33 = vld [vmem:[#allocation5 + $0xf90] sm:$0xf0]  ;;  %v9842_v5 = vld [vmem:[#allocation5 + $0x79c] sm:$0xf] }
 0x1ea   : > { %4576 = vmatpush.bf16.msrb.mxu2 %v8409_v42  ;;  %v9862_v42 = vld [vmem:[#allocation5 + $0x83c] sm:$0xf]  ;;  %v4304_v57 = vadd.f32 %v4303_v14, %v4290_v18  ;;  %v8206_v46 = vld [vmem:[#allocation5 + $0xcc0] sm:$0xf0]  ;;  %v6892_v49 = vld [vmem:[#allocation5 + $0x250] sm:$0xf] }
 0x1eb   : > { %4590 = vmatpush.bf16.msrb.mxu3 %v8729_v45  ;;  %v7649_v45 = vor.u32 %v9862_v42, %v7646_v0  ;;  %v8249_v42 = vor.u32 %v10012_v16, %v8246_v4  ;;  %v9922_v0 = vld [vmem:[#allocation5 + $0xa1c] sm:$0xf]  ;;  %v9758_v14 = vld [vmem:[#allocation5 + $0x4f4] sm:$0xf0] }
 0x1ec   : > { %4549 = vmatpush.bf16.msrb.mxu0 %v7729_v12  ;;  %v10102_v12 = vld [vmem:[#allocation5 + $0xfbc] sm:$0xf]  ;;  %v11012_v34 = vmax.f32 %v11347_v11, %v4304_v57  ;;  %v9918_v16 = vld [vmem:[#allocation5 + $0x9f4] sm:$0xf0] }
 0x1ed   : > { %4563 = vmatpush.bf16.msrb.mxu1 %v8049_v21  ;;  %v8289_v21 = vor.u32 %v10022_v55, %v8286_v52  ;;  %v8609_v54 = vor.u32 %v10102_v12, %v8606_v15  ;;  %v9678_v55 = vld [vmem:[#allocation5 + $0x274] sm:$0xf0]  ;;  %v7532_v12 = vld [vmem:[#allocation5 + $0x750] sm:$0xf]  ;;  %v10082_v57 = vld [vmem:[#allocation5 + $0xf1c] sm:$0xf] }
 0x1ee   : > { %4577 = vmatpush.bf16.msrb.mxu2 %v8369_v26  ;;  %v9852_v26 = vld [vmem:[#allocation5 + $0x7ec] sm:$0xf]  ;;  %v9838_v15 = vld [vmem:[#allocation5 + $0x774] sm:$0xf0] }
 0x1ef   : > { %4591 = vmatpush.bf16.msrb.mxu3 %v8689_v50  ;;  %v10092_v50 = vld [vmem:[#allocation5 + $0xf6c] sm:$0xf]  ;;  %v7609_v18 = vor.u32 %v9852_v26, %v7606_v30  ;;  %v8526_v26 = vld [vmem:[#allocation5 + $0xf40] sm:$0xf0]  ;;  %v6893_v30 = vor.u32 %v9678_v55, %v6892_v49  ;;  %v7533_v4 = vor.u32 %v9838_v15, %v7532_v12  ;;  %v7452_v12 = vld [vmem:[#allocation5 + $0x6b0] sm:$0xf] }
 0x1f0   : > { %4550 = vmatpush.bf16.msrb.mxu0 %v7689_v19  ;;  %v11014_v19 = vpop.f32.mrf.mxu3  ;;  %v8569_v52 = vor.u32 %v10092_v50, %v8566_v33  ;;  %v8529_v11 = vor.u32 %v10082_v57, %v8526_v26  ;;  %v9668_v50 = vld [vmem:[#allocation5 + $0x224] sm:$0xf0]  ;;  %v7172_v33 = vld [vmem:[#allocation5 + $0x480] sm:$0xf]  ;;  %v11023_v26 = vpop.f32.mrf.mxu1 }
 0x1f1   : > { %4564 = vmatpush.bf16.msrb.mxu1 %v8009_v59  ;;  %11348 = vst [vmem:[#allocation29_spill] sm:$0xff] %v11014_v19  ;;  %v7566_v59 = vld [vmem:[#allocation5 + $0x7c0] sm:$0xf0] }
 0x1f2   : > { %4578 = vmatpush.bf16.msrb.mxu2 %v8329_v48  ;;  %v7929_v48 = vor.u32 %v9932_v32, %v7926_v31  ;;  %v7852_v31 = vld [vmem:[#allocation5 + $0x9d0] sm:$0xf]  ;;  %v11020_v15 = vld [vmem:[#allocation7] sm:$0xff]  ;;  %11350 = vst [vmem:[#allocation31_spill] sm:$0xff] %v11023_v26 }
 0x1f3   : > { %4592 = vmatpush.bf16.msrb.mxu3 %v8649_v7  ;;  %v7212_v7 = vld [vmem:[#allocation5 + $0x4d0] sm:$0xf]  ;;  %v11318_v57 = vperm.slane %v11020_v15, 5  ;;  %v7332_v26 = vld [vmem:[#allocation5 + $0x5c0] sm:$0xf] }
 0x1f4   : > { %4551 = vmatpush.bf16.msrb.mxu0 %v7649_v45  ;;  %v7569_v45 = vor.u32 %v9842_v5, %v7566_v59  ;;  %v7213_v32 = vor.u32 %v9758_v14, %v7212_v7  ;;  %v7492_v5 = vld [vmem:[#allocation5 + $0x700] sm:$0xf]  ;;  %v9828_v59 = vld [vmem:[#allocation5 + $0x724] sm:$0xf0]  ;;  %v7132_v7 = vld [vmem:[#allocation5 + $0x430] sm:$0xf] }
 0x1f5   : > { %4565 = vmatpush.bf16.msrb.mxu1 %v7969_v17  ;;  %v7889_v17 = vor.u32 %v9922_v0, %v7886_v36  ;;  %v6812_v0 = vld [vmem:[#allocation5 + $0x1b0] sm:$0xf]  ;;  %v7812_v36 = vld [vmem:[#allocation5 + $0x980] sm:$0xf]  ;;  %v7493_v55 = vor.u32 %v9828_v59, %v7492_v5  ;;  %v9738_v14 = vld [vmem:[#allocation5 + $0x454] sm:$0xf0] }
 0x1f6   : > { %4579 = vmatpush.bf16.msrb.mxu2 %v8289_v21  ;;  %v8209_v21 = vor.u32 %v10002_v56, %v8206_v46  ;;  %v9908_v56 = vld [vmem:[#allocation5 + $0x9a4] sm:$0xf0]  ;;  %v11016_v46 = vpop.f32.mrf.mxu0 }
 0x1f7   : > { %4593 = vmatpush.bf16.msrb.mxu3 %v8609_v54  ;;  %v6852_v54 = vld [vmem:[#allocation5 + $0x200] sm:$0xf]  ;;  %11349 = vst [vmem:[#allocation30_spill] sm:$0xff] %v11016_v46  ;;  %v9788_v46 = vld [vmem:[#allocation5 + $0x5e4] sm:$0xf0] }
 0x1f8   : > { %4552 = vmatpush.bf16.msrb.mxu0 %v7609_v18  ;;  %v9748_v18 = vld [vmem:[#allocation5 + $0x4a4] sm:$0xf0]  ;;  %v4317_v19 = vpop.f32.mrf.mxu3 }
 0x1f9   : > { %4566 = vmatpush.bf16.msrb.mxu1 %v7929_v48  ;;  %v7853_v48 = vor.u32 %v9918_v16, %v7852_v31  ;;  %v7173_v49 = vor.u32 %v9748_v18, %v7172_v33  ;;  %v7133_v31 = vor.u32 %v9738_v14, %v7132_v7  ;;  %v7412_v33 = vld [vmem:[#allocation5 + $0x660] sm:$0xf]  ;;  %v9808_v18 = vld [vmem:[#allocation5 + $0x684] sm:$0xf0]  ;;  %v4318_v5 = vadd.f32 %v4317_v19, %v11318_v57  ;;  %v9638_v7 = vld [vmem:[#allocation5 + $0x134] sm:$0xf0] }
 0x1fa   : > { %4580 = vmatpush.bf16.msrb.mxu2 %v8249_v42  ;;  %v6853_v42 = vor.u32 %v9668_v50, %v6852_v54  ;;  %v7092_v54 = vld [vmem:[#allocation5 + $0x3e0] sm:$0xf]  ;;  %v9728_v50 = vld [vmem:[#allocation5 + $0x404] sm:$0xf0]  ;;  %v7052_v14 = vld [vmem:[#allocation5 + $0x390] sm:$0xf] }
 0x1fb   : > { %4594 = vmatpush.bf16.msrb.mxu3 %v8569_v52  ;;  %v9658_v52 = vld [vmem:[#allocation5 + $0x1d4] sm:$0xf0]  ;;  %v7372_v19 = vld [vmem:[#allocation5 + $0x610] sm:$0xf] }
 0x1fc   : > { %4553 = vmatpush.bf16.msrb.mxu0 %v7569_v45  ;;  %v9818_v45 = vld [vmem:[#allocation5 + $0x6d4] sm:$0xf0] }
 0x1fd   : > { %4567 = vmatpush.bf16.msrb.mxu1 %v7889_v17  ;;  %v7813_v17 = vor.u32 %v9908_v56, %v7812_v36  ;;  %v7453_v16 = vor.u32 %v9818_v45, %v7452_v12  ;;  %v9888_v36 = vld [vmem:[#allocation5 + $0x904] sm:$0xf0]  ;;  %v9718_v45 = vld [vmem:[#allocation5 + $0x3b4] sm:$0xf0] }
 0x1fe   : > { %4581 = vmatpush.bf16.msrb.mxu2 %v8209_v21  ;;  %v6813_v21 = vor.u32 %v9658_v52, %v6812_v0  ;;  %v7732_v0 = vld [vmem:[#allocation5 + $0x8e0] sm:$0xf]  ;;  %v6732_v52 = vld [vmem:[#allocation5 + $0x110] sm:$0xf]  ;;  %v4331_v12 = vpop.f32.mrf.mxu0  ;;  %v9878_v57 = vld [vmem:[#allocation5 + $0x8b4] sm:$0xf0] }
 0x1ff   : > { %4595 = vmatpush.bf16.msrb.mxu3 %v8529_v11  ;;  %4554 = vmatmul.bf16.vlgmr.msrb.gmra.mxu0 %v10835_v24  ;;  %v9648_v11 = vld [vmem:[#allocation5 + $0x184] sm:$0xf0] }
 0x200   : > { %4602 = vmatpush.bf16.msra.mxu0 %v6893_v30  ;;  %4568 = vmatmul.bf16.vlgmr.msrb.gmra.mxu1 %v10844_v37  ;;  %v7772_v30 = vld [vmem:[#allocation5 + $0x930] sm:$0xf]  ;;  %v11031_v56 = vpop.f32.mrf.mxu3 }
 0x201   : > { %4616 = vmatpush.bf16.msra.mxu1 %v7213_v32  ;;  %4582 = vmatmul.bf16.vlgmr.msrb.gmra.mxu2 %v10848_v43  ;;  %v9898_v32 = vld [vmem:[#allocation5 + $0x954] sm:$0xf0] }
 0x202   : > { %4630 = vmatpush.bf16.msra.mxu2 %v7533_v4  ;;  %4596 = vmatmul.bf16.vlgmr.msrb.gmra.mxu3 %v10846_v41  ;;  %v6772_v4 = vld [vmem:[#allocation5 + $0x160] sm:$0xf]  ;;  %v7773_v59 = vor.u32 %v9898_v32, %v7772_v30  ;;  %v4332_v30 = vadd.f32 %v4331_v12, %v4318_v5  ;;  %v7733_v32 = vor.u32 %v9888_v36, %v7732_v0 }
 0x203   : > { %4644 = vmatpush.bf16.msra.mxu3 %v7853_v48  ;;  %v11029_v48 = vpop.f32.mrf.mxu2  ;;  %v7652_v0 = vld [vmem:[#allocation5 + $0x840] sm:$0xf] }
 0x204   : > { %4603 = vmatpush.bf16.msra.mxu0 %v6853_v42  ;;  %11351 = vst [vmem:[#allocation32_spill] sm:$0xff] %v11029_v48  ;;  %v6773_v42 = vor.u32 %v9648_v11, %v6772_v4  ;;  %v6733_v4 = vor.u32 %v9638_v7, %v6732_v52  ;;  %v7692_v11 = vld [vmem:[#allocation5 + $0x890] sm:$0xf]  ;;  %v9618_v7 = vld [vmem:[#allocation5 + $0x94] sm:$0xf0] }
 0x205   : > { %4617 = vmatpush.bf16.msra.mxu1 %v7173_v49  ;;  %v7093_v49 = vor.u32 %v9728_v50, %v7092_v54  ;;  %v6692_v54 = vld [vmem:[#allocation5 + $0xc0] sm:$0xf]  ;;  %v9628_v50 = vld [vmem:[#allocation5 + $0xe4] sm:$0xf0]  ;;  %v7693_v5 = vor.u32 %v9878_v57, %v7692_v11 }
 0x206   : > { %4631 = vmatpush.bf16.msra.mxu2 %v7493_v55  ;;  %v7413_v55 = vor.u32 %v9808_v18, %v7412_v33  ;;  %v7012_v33 = vld [vmem:[#allocation5 + $0x340] sm:$0xf]  ;;  %v9708_v18 = vld [vmem:[#allocation5 + $0x364] sm:$0xf0] }
 0x207   : > { %4645 = vmatpush.bf16.msra.mxu3 %v7813_v17  ;;  %v9798_v17 = vld [vmem:[#allocation5 + $0x634] sm:$0xf0]  ;;  %v7013_v52 = vor.u32 %v9708_v18, %v7012_v33  ;;  %v6612_v57 = vld [vmem:[#allocation5 + $0x20] sm:$0xf]  ;;  %v9608_v11 = vld [vmem:[#allocation5 + $0x44] sm:$0xf0] }
 0x208   : > { %4604 = vmatpush.bf16.msra.mxu0 %v6813_v21  ;;  %v4345_v21 = vpop.f32.mrf.mxu1  ;;  %v9768_v33 = vld [vmem:[#allocation5 + $0x544] sm:$0xf0]  ;;  %v8172_v18 = vld [vmem:[#allocation5 + $0xc50] sm:$0xf] }
 0x209   : > { %4618 = vmatpush.bf16.msra.mxu1 %v7133_v31  ;;  %v4346_v48 = vadd.f32 %v4345_v21, %v4332_v30  ;;  %v7053_v31 = vor.u32 %v9718_v45, %v7052_v14  ;;  %v6972_v14 = vld [vmem:[#allocation5 + $0x2f0] sm:$0xf]  ;;  %v9698_v45 = vld [vmem:[#allocation5 + $0x314] sm:$0xf0]  ;;  %v4373_v30 = vpop.f32.mrf.mxu3 }
 0x20a   : > { %4632 = vmatpush.bf16.msra.mxu2 %v7453_v16  ;;  %v7373_v16 = vor.u32 %v9798_v17, %v7372_v19  ;;  %v7292_v19 = vld [vmem:[#allocation5 + $0x570] sm:$0xf]  ;;  %v9778_v17 = vld [vmem:[#allocation5 + $0x594] sm:$0xf0] }
 0x20b   : > { %4646 = vmatpush.bf16.msra.mxu3 %v7773_v59  ;;  %v6693_v59 = vor.u32 %v9628_v50, %v6692_v54  ;;  %v4359_v36 = vpop.f32.mrf.mxu2  ;;  %v6932_v54 = vld [vmem:[#allocation5 + $0x2a0] sm:$0xf] }
 0x20c   : > { %4605 = vmatpush.bf16.msra.mxu0 %v6773_v42  ;;  %v9868_v42 = vld [vmem:[#allocation5 + $0x864] sm:$0xf0]  ;;  %v4360_v12 = vadd.f32 %v4359_v36, %v4346_v48  ;;  %v7252_v50 = vld [vmem:[#allocation5 + $0x520] sm:$0xf]  ;;  %v9998_v36 = vld [vmem:[#allocation5 + $0xc74] sm:$0xf0] }
 0x20d   : > { %4619 = vmatpush.bf16.msra.mxu1 %v7093_v49  ;;  %v7333_v49 = vor.u32 %v9788_v46, %v7332_v26  ;;  %v6973_v46 = vor.u32 %v9698_v45, %v6972_v14  ;;  %v7293_v26 = vor.u32 %v9778_v17, %v7292_v19  ;;  %v9688_v48 = vld [vmem:[#allocation5 + $0x2c4] sm:$0xf0]  ;;  %v9673_v14 = vld [vmem:[#allocation5 + $0x254] sm:$0xf]  ;;  %v6894_v45 = vld [vmem:[#allocation5 + $0x278] sm:$0xf0]  ;;  %v8173_v19 = vor.u32 %v9998_v36, %v8172_v18 }
 0x20e   : > { %4633 = vmatpush.bf16.msra.mxu2 %v7413_v55  ;;  %v6652_v55 = vld [vmem:[#allocation5 + $0x70] sm:$0xf]  ;;  %v11033_v21 = vadd.f32 %v4373_v30, %v4360_v12  ;;  %v9848_v30 = vld [vmem:[#allocation5 + $0x7c4] sm:$0xf0] }
 0x20f   : > { %4647 = vmatpush.bf16.msra.mxu3 %v7733_v32  ;;  %v7653_v32 = vor.u32 %v9868_v42, %v7652_v0  ;;  %v8492_v0 = vld [vmem:[#allocation5 + $0xed0] sm:$0xf]  ;;  %v10078_v42 = vld [vmem:[#allocation5 + $0xef4] sm:$0xf0] }
 0x210   : > { %4606 = vmatpush.bf16.msra.mxu0 %v6733_v4  ;;  %v6653_v4 = vor.u32 %v9618_v7, %v6652_v55  ;;  %v8812_v12 = vld [vmem:[#allocation5 + $0x1150] sm:$0xf]  ;;  %v10158_v55 = vld [vmem:[#allocation5 + $0x1174] sm:$0xf0]  ;;  %v7572_v7 = vld [vmem:[#allocation5 + $0x7a0] sm:$0xf]  ;;  %v8493_v17 = vor.u32 %v10078_v42, %v8492_v0 }
 0x211   : > { %4620 = vmatpush.bf16.msra.mxu1 %v7053_v31  ;;  %v7612_v31 = vld [vmem:[#allocation5 + $0x7f0] sm:$0xf]  ;;  %v10058_v42 = vld [vmem:[#allocation5 + $0xe54] sm:$0xf0] }
 0x212   : > { %4634 = vmatpush.bf16.msra.mxu2 %v7373_v16  ;;  %v9858_v16 = vld [vmem:[#allocation5 + $0x814] sm:$0xf0]  ;;  %v8092_v18 = vld [vmem:[#allocation5 + $0xbb0] sm:$0xf] }
 0x213   : > { %4648 = vmatpush.bf16.msra.mxu3 %v7693_v5  ;;  %v7613_v5 = vor.u32 %v9858_v16, %v7612_v31  ;;  %v7573_v31 = vor.u32 %v9848_v30, %v7572_v7  ;;  %v9988_v16 = vld [vmem:[#allocation5 + $0xc24] sm:$0xf0]  ;;  %v8412_v0 = vld [vmem:[#allocation5 + $0xe30] sm:$0xf]  ;;  %v9653_v7 = vld [vmem:[#allocation5 + $0x1b4] sm:$0xf] }
 0x214   : > { %4607 = vmatpush.bf16.msra.mxu0 %v6693_v59  ;;  %v6613_v59 = vor.u32 %v9608_v11, %v6612_v57  ;;  %v11035_v57 = vpop.f32.mrf.mxu0  ;;  %v10148_v11 = vld [vmem:[#allocation5 + $0x1124] sm:$0xf0]  ;;  %v6814_v30 = vld [vmem:[#allocation5 + $0x1d8] sm:$0xf0] }
 0x215   : > { %4621 = vmatpush.bf16.msra.mxu1 %v7013_v52  ;;  %v6933_v52 = vor.u32 %v9688_v48, %v6932_v54  ;;  %v9663_v54 = vld [vmem:[#allocation5 + $0x204] sm:$0xf]  ;;  %v6854_v48 = vld [vmem:[#allocation5 + $0x228] sm:$0xf0] }
 0x216   : > { %4635 = vmatpush.bf16.msra.mxu2 %v7333_v49  ;;  %v7253_v49 = vor.u32 %v9768_v33, %v7252_v50  ;;  %v8133_v50 = vor.u32 %v9988_v16, %v8132_v6  ;;  %v8453_v33 = vor.u32 %v10068_v58, %v8452_v28  ;;  %v8413_v28 = vor.u32 %v10058_v42, %v8412_v0  ;;  %v8052_v6 = vld [vmem:[#allocation5 + $0xb60] sm:$0xf]  ;;  %v6774_v16 = vld [vmem:[#allocation5 + $0x188] sm:$0xf0]  ;;  %v10038_v0 = vld [vmem:[#allocation5 + $0xdb4] sm:$0xf0]  ;;  %v11046_v42 = vpop.f32.mrf.mxu3 }
 0x217   : > { %4649 = vmatpush.bf16.msra.mxu3 %v7653_v32  ;;  %v8813_v32 = vor.u32 %v10158_v55, %v8812_v12  ;;  %v8732_v12 = vld [vmem:[#allocation5 + $0x10b0] sm:$0xf]  ;;  %v6857_v55 = vor.u32 %v9663_v54, %v6854_v48  ;;  %v11043_v54 = vpop.f32.mrf.mxu2  ;;  %11353 = vst [vmem:[#allocation34_spill] sm:$0xff] %v11046_v42 }
 0x218   : > { %4608 = vmatpush.bf16.msra.mxu0 %v6653_v4  ;;  %v8772_v4 = vld [vmem:[#allocation5 + $0x1100] sm:$0xf]  ;;  %11352 = vst [vmem:[#allocation33_spill] sm:$0xff] %v11043_v54  ;;  %v8012_v48 = vld [vmem:[#allocation5 + $0xb10] sm:$0xf] }
 0x219   : > { %4622 = vmatpush.bf16.msra.mxu1 %v6973_v46  ;;  %v6897_v46 = vor.u32 %v9673_v14, %v6894_v45  ;;  %v8773_v36 = vor.u32 %v10148_v11, %v8772_v4  ;;  %v8372_v14 = vld [vmem:[#allocation5 + $0xde0] sm:$0xf]  ;;  %v10048_v45 = vld [vmem:[#allocation5 + $0xe04] sm:$0xf0]  ;;  %v4816_v42 = vld [vmem:[%s11085_s12] sm:$0xff] }
 0x21a   : > { %4636 = vmatpush.bf16.msra.mxu2 %v7293_v26  ;;  %v11037_v26 = vpop.f32.mrf.mxu1 }
 0x21b   : > { %4650 = vmatpush.bf16.msra.mxu3 %v7613_v5  ;;  %v9978_v5 = vld [vmem:[#allocation5 + $0xbd4] sm:$0xf0] }
 0x21c   : > { %4609 = vmatpush.bf16.msra.mxu0 %v6613_v59  ;;  %v10138_v59 = vld [vmem:[#allocation5 + $0x10d4] sm:$0xf0]  ;;  %v8093_v58 = vor.u32 %v9978_v5, %v8092_v18  ;;  %v4387_v4 = vpop.f32.mrf.mxu0  ;;  %v8332_v5 = vld [vmem:[#allocation5 + $0xd90] sm:$0xf] }
 0x21d   : > { %4623 = vmatpush.bf16.msra.mxu1 %v6933_v52  ;;  %v8733_v52 = vor.u32 %v10138_v59, %v8732_v12  ;;  %v8652_v12 = vld [vmem:[#allocation5 + $0x1010] sm:$0xf]  ;;  %v10118_v59 = vld [vmem:[#allocation5 + $0x1034] sm:$0xf0] }
 0x21e   : > { %4637 = vmatpush.bf16.msra.mxu2 %v7253_v49  ;;  %v9968_v49 = vld [vmem:[#allocation5 + $0xb84] sm:$0xf0] }
 0x21f   : > { %4651 = vmatpush.bf16.msra.mxu3 %v7573_v31  ;;  %4610 = vmatmul.bf16.vlgmr.msra.gmra.mxu0 %v10821_v60  ;;  %v9643_v31 = vld [vmem:[#allocation5 + $0x164] sm:$0xf]  ;;  %v8053_v11 = vor.u32 %v9968_v49, %v8052_v6  ;;  %v8333_v6 = vor.u32 %v10038_v0, %v8332_v5  ;;  %v10018_v5 = vld [vmem:[#allocation5 + $0xd14] sm:$0xf0] }
 0x220   : > { %4658 = vmatpush.bf16.msrb.mxu0 %v8173_v19  ;;  %4624 = vmatmul.bf16.vlgmr.msra.gmra.mxu1 %v10830_v9  ;;  %v8692_v19 = vld [vmem:[#allocation5 + $0x1060] sm:$0xf] }
 0x221   : > { %4672 = vmatpush.bf16.msrb.mxu1 %v8493_v17  ;;  %4638 = vmatmul.bf16.vlgmr.msra.gmra.mxu2 %v10824_v2  ;;  %v10128_v17 = vld [vmem:[#allocation5 + $0x1084] sm:$0xf0] }
 0x222   : > { %4686 = vmatpush.bf16.msrb.mxu2 %v8813_v32  ;;  %4652 = vmatmul.bf16.vlgmr.msra.gmra.mxu3 %v10835_v24  ;;  %v6817_v32 = vor.u32 %v9653_v7, %v6814_v30  ;;  %v4401_v18 = vpop.f32.mrf.mxu1  ;;  %v9633_v30 = vld [vmem:[#allocation5 + $0x114] sm:$0xf] }
 0x223   : > { %4700 = vmatpush.bf16.msrb.mxu3 %v6897_v46  ;;  %v8373_v46 = vor.u32 %v10048_v45, %v8372_v14  ;;  %v8653_v14 = vor.u32 %v10118_v59, %v8652_v12  ;;  %v9948_v45 = vld [vmem:[#allocation5 + $0xae4] sm:$0xf0]  ;;  %v8572_v12 = vld [vmem:[#allocation5 + $0xf70] sm:$0xf]  ;;  %v10098_v59 = vld [vmem:[#allocation5 + $0xf94] sm:$0xf0] }
 0x224   : > { %4659 = vmatpush.bf16.msrb.mxu0 %v8133_v50  ;;  %v4388_v50 = vadd.f32 %v4387_v4, %v11033_v21  ;;  %v11354_v21 = vmax.f32 %v10918_v3, %v10977_v27  ;;  %v11319_v4 = vperm.slane %v11020_v15, 6  ;;  %v4415_v3 = vpop.f32.mrf.mxu2 }
 0x225   : > { %4673 = vmatpush.bf16.msrb.mxu1 %v8453_v33  ;;  %v8693_v33 = vor.u32 %v10128_v17, %v8692_v19  ;;  %v8292_v19 = vld [vmem:[#allocation5 + $0xd40] sm:$0xf]  ;;  %v10028_v17 = vld [vmem:[#allocation5 + $0xd64] sm:$0xf0] }
 0x226   : > { %4687 = vmatpush.bf16.msrb.mxu2 %v8773_v36  ;;  %v9958_v36 = vld [vmem:[#allocation5 + $0xb34] sm:$0xf0]  ;;  %v4402_v7 = vadd.f32 %v4401_v18, %v4388_v50  ;;  %v8293_v50 = vor.u32 %v10028_v17, %v8292_v19  ;;  %v4416_v0 = vadd.f32 %v4415_v3, %v11319_v4  ;;  %v8573_v19 = vor.u32 %v10098_v59, %v8572_v12  ;;  %v10008_v17 = vld [vmem:[#allocation5 + $0xcc4] sm:$0xf0]  ;;  %v9833_v3 = vld [vmem:[#allocation5 + $0x754] sm:$0xf] }
 0x227   : > { %4701 = vmatpush.bf16.msrb.mxu3 %v6857_v55  ;;  %v6777_v55 = vor.u32 %v9643_v31, %v6774_v16  ;;  %v10108_v31 = vld [vmem:[#allocation5 + $0xfe4] sm:$0xf0]  ;;  %v9938_v18 = vld [vmem:[#allocation5 + $0xa94] sm:$0xf0]  ;;  %v9743_v12 = vld [vmem:[#allocation5 + $0x484] sm:$0xf] }
 0x228   : > { %4660 = vmatpush.bf16.msrb.mxu0 %v8093_v58  ;;  %v6734_v58 = vld [vmem:[#allocation5 + $0x138] sm:$0xf0]  ;;  %v11051_v49 = vmax.f32 %v11354_v21, %v4402_v7  ;;  %v4429_v7 = vpop.f32.mrf.mxu3  ;;  %v7892_v21 = vld [vmem:[#allocation5 + $0xa20] sm:$0xf]  ;;  %v7174_v59 = vld [vmem:[#allocation5 + $0x4a8] sm:$0xf0] }
 0x229   : > { %4674 = vmatpush.bf16.msrb.mxu1 %v8413_v28  ;;  %v8013_v28 = vor.u32 %v9958_v36, %v8012_v48  ;;  %v6737_v16 = vor.u32 %v9633_v30, %v6734_v58  ;;  %v8252_v36 = vld [vmem:[#allocation5 + $0xcf0] sm:$0xf]  ;;  %v9613_v30 = vld [vmem:[#allocation5 + $0x74] sm:$0xf]  ;;  %v6654_v58 = vld [vmem:[#allocation5 + $0x98] sm:$0xf0] }
 0x22a   : > { %4688 = vmatpush.bf16.msrb.mxu2 %v8733_v52  ;;  %v7972_v52 = vld [vmem:[#allocation5 + $0xac0] sm:$0xf]  ;;  %11355 = vst [vmem:[#allocation35_spill] sm:$0xff] %v11051_v49  ;;  %v9993_v4 = vld [vmem:[#allocation5 + $0xc54] sm:$0xf] }
 0x22b   : > { %4702 = vmatpush.bf16.msrb.mxu3 %v6817_v32  ;;  %v8612_v32 = vld [vmem:[#allocation5 + $0xfc0] sm:$0xf]  ;;  %v7973_v48 = vor.u32 %v9948_v45, %v7972_v52  ;;  %v8253_v52 = vor.u32 %v10018_v5, %v8252_v36  ;;  %v6614_v5 = vld [vmem:[#allocation5 + $0x48] sm:$0xf0] }
 0x22c   : > { %4661 = vmatpush.bf16.msrb.mxu0 %v8053_v11  ;;  %v9623_v11 = vld [vmem:[#allocation5 + $0xc4] sm:$0xf]  ;;  %v8613_v27 = vor.u32 %v10108_v31, %v8612_v32  ;;  %v8212_v45 = vld [vmem:[#allocation5 + $0xca0] sm:$0xf]  ;;  %v10088_v31 = vld [vmem:[#allocation5 + $0xf44] sm:$0xf0] }
 0x22d   : > { %4675 = vmatpush.bf16.msrb.mxu1 %v8373_v46  ;;  %v6694_v46 = vld [vmem:[#allocation5 + $0xe8] sm:$0xf0]  ;;  %v8532_v32 = vld [vmem:[#allocation5 + $0xf20] sm:$0xf] }
 0x22e   : > { %4689 = vmatpush.bf16.msrb.mxu2 %v8693_v33  ;;  %v7932_v33 = vld [vmem:[#allocation5 + $0xa70] sm:$0xf] }
 0x22f   : > { %4703 = vmatpush.bf16.msrb.mxu3 %v6777_v55  ;;  %v6697_v55 = vor.u32 %v9623_v11, %v6694_v46  ;;  %v9753_v11 = vld [vmem:[#allocation5 + $0x4d4] sm:$0xf]  ;;  %v7214_v46 = vld [vmem:[#allocation5 + $0x4f8] sm:$0xf0] }
 0x230   : > { %4662 = vmatpush.bf16.msrb.mxu0 %v8013_v28  ;;  %v11056_v28 = vadd.f32 %v4429_v7, %v4416_v0  ;;  %v7534_v0 = vld [vmem:[#allocation5 + $0x778] sm:$0xf0]  ;;  %v9913_v7 = vld [vmem:[#allocation5 + $0x9d4] sm:$0xf]  ;;  %v7217_v36 = vor.u32 %v9753_v11, %v7214_v46  ;;  %v11063_v11 = vpop.f32.mrf.mxu0 }
 0x231   : > { %4676 = vmatpush.bf16.msrb.mxu1 %v8333_v6  ;;  %v7933_v6 = vor.u32 %v9938_v18, %v7932_v33  ;;  %v8213_v33 = vor.u32 %v10008_v17, %v8212_v45  ;;  %v9603_v18 = vld [vmem:[#allocation5 + $0x24] sm:$0xf]  ;;  %11356 = vst [vmem:[#allocation36_spill] sm:$0xff] %v11063_v11 }
 0x232   : > { %4690 = vmatpush.bf16.msrb.mxu2 %v8653_v14  ;;  %v9928_v14 = vld [vmem:[#allocation5 + $0xa44] sm:$0xf0]  ;;  %v6617_v45 = vor.u32 %v9603_v18, %v6614_v5  ;;  %v7094_v5 = vld [vmem:[#allocation5 + $0x408] sm:$0xf0] }
 0x233   : > { %4704 = vmatpush.bf16.msrb.mxu3 %v6737_v16  ;;  %v6657_v16 = vor.u32 %v9613_v30, %v6654_v58  ;;  %v9823_v58 = vld [vmem:[#allocation5 + $0x704] sm:$0xf] }
 0x234   : > { %4663 = vmatpush.bf16.msrb.mxu0 %v7973_v48  ;;  %v7854_v48 = vld [vmem:[#allocation5 + $0x9f8] sm:$0xf0] }
 0x235   : > { %4677 = vmatpush.bf16.msrb.mxu1 %v8293_v50  ;;  %v7893_v50 = vor.u32 %v9928_v14, %v7892_v21  ;;  %v7857_v30 = vor.u32 %v9913_v7, %v7854_v48  ;;  %v9903_v21 = vld [vmem:[#allocation5 + $0x984] sm:$0xf]  ;;  %v7814_v14 = vld [vmem:[#allocation5 + $0x9a8] sm:$0xf0]  ;;  %v11065_v48 = vpop.f32.mrf.mxu1 }
 0x236   : > { %4691 = vmatpush.bf16.msrb.mxu2 %v8613_v27  ;;  %v8533_v27 = vor.u32 %v10088_v31, %v8532_v32  ;;  %v9733_v32 = vld [vmem:[#allocation5 + $0x434] sm:$0xf]  ;;  %v7134_v31 = vld [vmem:[#allocation5 + $0x458] sm:$0xf0]  ;;  %v7817_v46 = vor.u32 %v9903_v21, %v7814_v14  ;;  %v8134_v7 = vld [vmem:[#allocation5 + $0xc28] sm:$0xf0]  ;;  %v4417_v14 = vpop.f32.mrf.mxu2 }
 0x237   : > { %4705 = vmatpush.bf16.msrb.mxu3 %v6697_v55  ;;  %v7537_v55 = vor.u32 %v9833_v3, %v7534_v0  ;;  %v9813_v3 = vld [vmem:[#allocation5 + $0x6b4] sm:$0xf]  ;;  %v9983_v0 = vld [vmem:[#allocation5 + $0xc04] sm:$0xf]  ;;  %11357 = vst [vmem:[#allocation37_spill] sm:$0xff] %v11065_v48  ;;  %v7137_v18 = vor.u32 %v9733_v32, %v7134_v31 }
 0x238   : > { %4664 = vmatpush.bf16.msrb.mxu0 %v7933_v6  ;;  %v8174_v6 = vld [vmem:[#allocation5 + $0xc78] sm:$0xf0]  ;;  %v7734_v21 = vld [vmem:[#allocation5 + $0x908] sm:$0xf0]  ;;  %v9793_v31 = vld [vmem:[#allocation5 + $0x614] sm:$0xf] }
 0x239   : > { %4678 = vmatpush.bf16.msrb.mxu1 %v8253_v52  ;;  %v7494_v52 = vld [vmem:[#allocation5 + $0x728] sm:$0xf0]  ;;  %v8177_v17 = vor.u32 %v9993_v4, %v8174_v6  ;;  %v7454_v4 = vld [vmem:[#allocation5 + $0x6d8] sm:$0xf0] }
 0x23a   : > { %4692 = vmatpush.bf16.msrb.mxu2 %v8573_v19  ;;  %v7177_v19 = vor.u32 %v9743_v12, %v7174_v59  ;;  %v7457_v12 = vor.u32 %v9813_v3, %v7454_v4  ;;  %v7414_v6 = vld [vmem:[#allocation5 + $0x688] sm:$0xf0]  ;;  %v7054_v32 = vld [vmem:[#allocation5 + $0x3b8] sm:$0xf0] }
 0x23b   : > { %4706 = vmatpush.bf16.msrb.mxu3 %v6657_v16  ;;  %v7497_v16 = vor.u32 %v9823_v58, %v7494_v52  ;;  %v8094_v58 = vld [vmem:[#allocation5 + $0xbd8] sm:$0xf0]  ;;  %v9883_v52 = vld [vmem:[#allocation5 + $0x8e4] sm:$0xf]  ;;  %v8054_v4 = vld [vmem:[#allocation5 + $0xb88] sm:$0xf0] }
 0x23c   : > { %4665 = vmatpush.bf16.msrb.mxu0 %v7893_v50  ;;  %v9893_v50 = vld [vmem:[#allocation5 + $0x934] sm:$0xf]  ;;  %v7737_v3 = vor.u32 %v9883_v52, %v7734_v21  ;;  %v7654_v48 = vld [vmem:[#allocation5 + $0x868] sm:$0xf0] }
 0x23d   : > { %4679 = vmatpush.bf16.msrb.mxu1 %v8213_v33  ;;  %v7774_v33 = vld [vmem:[#allocation5 + $0x958] sm:$0xf0] }
 0x23e   : > { %4693 = vmatpush.bf16.msrb.mxu2 %v8533_v27  ;;  %v8137_v27 = vor.u32 %v9983_v0, %v8134_v7  ;;  %v7777_v59 = vor.u32 %v9893_v50, %v7774_v33  ;;  %v7374_v0 = vld [vmem:[#allocation5 + $0x638] sm:$0xf0]  ;;  %v9963_v7 = vld [vmem:[#allocation5 + $0xb64] sm:$0xf]  ;;  %v4443_v50 = vpop.f32.mrf.mxu0 }
 0x23f   : > { %4666 = vmatmul.bf16.vlgmr.msrb.gmra.mxu0 %v10844_v37  ;;  %4707 = vmatpush.bf16.msrb.mxu3 %v6617_v45  ;;  %v7694_v33 = vld [vmem:[#allocation5 + $0x8b8] sm:$0xf0]  ;;  %v7377_v52 = vor.u32 %v9793_v31, %v7374_v0  ;;  %v9943_v0 = vld [vmem:[#allocation5 + $0xac4] sm:$0xf] }
 0x240   : > { %4714 = vmatpush.bf16.msra.mxu0 %v7217_v36  ;;  %4680 = vmatmul.bf16.vlgmr.msrb.gmra.mxu1 %v10848_v43  ;;  %v9723_v36 = vld [vmem:[#allocation5 + $0x3e4] sm:$0xf] }
 0x241   : > { %4728 = vmatpush.bf16.msra.mxu1 %v7537_v55  ;;  %4694 = vmatmul.bf16.vlgmr.msrb.gmra.mxu2 %v10846_v41  ;;  %v9803_v55 = vld [vmem:[#allocation5 + $0x664] sm:$0xf]  ;;  %v7097_v45 = vor.u32 %v9723_v36, %v7094_v5  ;;  %v4457_v5 = vpop.f32.mrf.mxu1 }
 0x242   : > { %4742 = vmatpush.bf16.msra.mxu2 %v7857_v30  ;;  %v9973_v30 = vld [vmem:[#allocation5 + $0xbb4] sm:$0xf]  ;;  %4708 = vmatmul.bf16.vlgmr.msrb.gmra.mxu3 %v10821_v60 }
 0x243   : > { %4756 = vmatpush.bf16.msra.mxu3 %v8177_v17  ;;  %v9713_v17 = vld [vmem:[#allocation5 + $0x394] sm:$0xf] }
 0x244   : > { %4715 = vmatpush.bf16.msra.mxu0 %v7177_v19  ;;  %v8097_v19 = vor.u32 %v9973_v30, %v8094_v58  ;;  %v9873_v60 = vld [vmem:[#allocation5 + $0x894] sm:$0xf]  ;;  %v10658_v30 = vmov 0   ;;  %v7014_v58 = vld [vmem:[#allocation5 + $0x368] sm:$0xf0] }
 0x245   : > { %4729 = vmatpush.bf16.msra.mxu1 %v7497_v16  ;;  %v4431_v16 = vpop.f32.mrf.mxu3  ;;  %10442 = vset.pattern.permute.xlu0 %v10658_v30  ;;  %v7697_v21 = vor.u32 %v9873_v60, %v7694_v33  ;;  %v9863_v30 = vld [vmem:[#allocation5 + $0x844] sm:$0xf] }
 0x246   : > { %4743 = vmatpush.bf16.msra.mxu2 %v7817_v46  ;;  %v7417_v46 = vor.u32 %v9803_v55, %v7414_v6  ;;  %v9703_v55 = vld [vmem:[#allocation5 + $0x344] sm:$0xf]  ;;  %4819 = vperm.xlu0 %10442, %v4816_v42   ;;  %v7657_v31 = vor.u32 %v9863_v30, %v7654_v48  ;;  %v4445_v60 = vpop.f32.mrf.mxu0  ;;  %v6934_v48 = vld [vmem:[#allocation5 + $0x2c8] sm:$0xf0] }
 0x247   : > { %4757 = vmatpush.bf16.msra.mxu3 %v8137_v27  ;;  %v11358_v27 = vperm.slane %v11020_v15, 6 }
 0x248   : > { %4716 = vmatpush.bf16.msra.mxu0 %v7137_v18  ;;  %v4444_v18 = vadd.f32 %v4443_v50, %v11056_v28  ;;  %v9783_v28 = vld [vmem:[#allocation5 + $0x5c4] sm:$0xf]  ;;  %v9953_v50 = vld [vmem:[#allocation5 + $0xb14] sm:$0xf] }
 0x249   : > { %4730 = vmatpush.bf16.msra.mxu1 %v7457_v12  ;;  %v4418_v36 = vadd.f32 %v4417_v14, %v11358_v27  ;;  %v7057_v12 = vor.u32 %v9713_v17, %v7054_v32  ;;  %v7334_v14 = vld [vmem:[#allocation5 + $0x5e8] sm:$0xf0]  ;;  %v8014_v27 = vld [vmem:[#allocation5 + $0xb38] sm:$0xf0]  ;;  %v9693_v17 = vld [vmem:[#allocation5 + $0x2f4] sm:$0xf] }
 0x24a   : > { %4744 = vmatpush.bf16.msra.mxu2 %v7777_v59  ;;  %v8057_v59 = vor.u32 %v9963_v7, %v8054_v4  ;;  %v4458_v6 = vadd.f32 %v4457_v5, %v4444_v18  ;;  %v6974_v32 = vld [vmem:[#allocation5 + $0x318] sm:$0xf0]  ;;  %v4471_v7 = vpop.f32.mrf.mxu2  ;;  %v7974_v4 = vld [vmem:[#allocation5 + $0xae8] sm:$0xf0] }
 0x24b   : > { %4758 = vmatpush.bf16.msra.mxu3 %v8097_v19  ;;  %v4432_v11 = vadd.f32 %v4431_v16, %v4418_v36  ;;  %v8017_v19 = vor.u32 %v9953_v50, %v8014_v27  ;;  %v7294_v18 = vld [vmem:[#allocation5 + $0x598] sm:$0xf0]  ;;  %v9853_v16 = vld [vmem:[#allocation5 + $0x7f4] sm:$0xf] }
 0x24c   : > { %4717 = vmatpush.bf16.msra.mxu0 %v7097_v45  ;;  %v7017_v45 = vor.u32 %v9703_v55, %v7014_v58  ;;  %v4472_v33 = vadd.f32 %v4471_v7, %v4458_v6  ;;  %v7614_v36 = vld [vmem:[#allocation5 + $0x818] sm:$0xf0]  ;;  %v6977_v58 = vor.u32 %v9693_v17, %v6974_v32  ;;  %v9933_v50 = vld [vmem:[#allocation5 + $0xa74] sm:$0xf] }
 0x24d   : > { %4731 = vmatpush.bf16.msra.mxu1 %v7417_v46  ;;  %v7337_v46 = vor.u32 %v9783_v28, %v7334_v14  ;;  %v4446_v42 = vadd.f32 %v4445_v60, %v4432_v11  ;;  %v4485_v5 = vpop.f32.mrf.mxu3  ;;  %v7977_v28 = vor.u32 %v9943_v0, %v7974_v4  ;;  %v7617_v14 = vor.u32 %v9853_v16, %v7614_v36  ;;  %v7934_v27 = vld [vmem:[#allocation5 + $0xa98] sm:$0xf0]  ;;  %v10073_v11 = vld [vmem:[#allocation5 + $0xed4] sm:$0xf]  ;;  %v7894_v4 = vld [vmem:[#allocation5 + $0xa48] sm:$0xf0] }
 0x24e   : > { %4745 = vmatpush.bf16.msra.mxu2 %v7737_v3  ;;  %v9773_v3 = vld [vmem:[#allocation5 + $0x574] sm:$0xf]  ;;  %v11088_v55 = vadd.f32 %v4485_v5, %v4472_v33  ;;  %v8494_v7 = vld [vmem:[#allocation5 + $0xef8] sm:$0xf0]  ;;  %v7937_v32 = vor.u32 %v9933_v50, %v7934_v27  ;;  %v10043_v50 = vld [vmem:[#allocation5 + $0xde4] sm:$0xf] }
 0x24f   : > { %4759 = vmatpush.bf16.msra.mxu3 %v8057_v59  ;;  %v9683_v59 = vld [vmem:[#allocation5 + $0x2a4] sm:$0xf]  ;;  %v7297_v6 = vor.u32 %v9773_v3, %v7294_v18  ;;  %v10153_v60 = vld [vmem:[#allocation5 + $0x1154] sm:$0xf]  ;;  %v8814_v5 = vld [vmem:[#allocation5 + $0x1178] sm:$0xf0] }
 0x250   : > { %4718 = vmatpush.bf16.msra.mxu0 %v7057_v12  ;;  %v4459_v12 = vpop.f32.mrf.mxu1  ;;  %v4817_v33 = vld [vmem:[%s11085_s12 + $0x8] sm:$0xff]  ;;  %v6937_v17 = vor.u32 %v9683_v59, %v6934_v48  ;;  %v9923_v3 = vld [vmem:[#allocation5 + $0xa24] sm:$0xf]  ;;  %v8817_v16 = vor.u32 %v10153_v60, %v8814_v5  ;;  %v8374_v27 = vld [vmem:[#allocation5 + $0xe08] sm:$0xf0] }
 0x251   : > { %4732 = vmatpush.bf16.msra.mxu1 %v7377_v52  ;;  %v9763_v52 = vld [vmem:[#allocation5 + $0x524] sm:$0xf]  ;;  %v4460_v30 = vadd.f32 %v4459_v12, %v4446_v42  ;;  %4822 = vperm.xlu0 %10442, %v4817_v33   ;;  %v8454_v12 = vld [vmem:[#allocation5 + $0xea8] sm:$0xf0]  ;;  %v7897_v59 = vor.u32 %v9923_v3, %v7894_v4  ;;  %v10053_v48 = vld [vmem:[#allocation5 + $0xe34] sm:$0xf] }
 0x252   : > { %4746 = vmatpush.bf16.msra.mxu2 %v7697_v21  ;;  %v7254_v21 = vld [vmem:[#allocation5 + $0x548] sm:$0xf0]  ;;  %v4473_v0 = vpop.f32.mrf.mxu2  ;;  %v10063_v42 = vld [vmem:[#allocation5 + $0xe84] sm:$0xf]  ;;  %v8334_v60 = vld [vmem:[#allocation5 + $0xdb8] sm:$0xf0] }
 0x253   : > { %4760 = vmatpush.bf16.msra.mxu3 %v8017_v19  ;;  %v7574_v19 = vld [vmem:[#allocation5 + $0x7c8] sm:$0xf0]  ;;  %v4474_v18 = vadd.f32 %v4473_v0, %v4460_v30  ;;  %v10113_v5 = vld [vmem:[#allocation5 + $0x1014] sm:$0xf]  ;;  %v10023_v0 = vld [vmem:[#allocation5 + $0xd44] sm:$0xf] }
 0x254   : > { %4719 = vmatpush.bf16.msra.mxu0 %v7017_v45  ;;  %v9843_v45 = vld [vmem:[#allocation5 + $0x7a4] sm:$0xf]  ;;  %v8614_v4 = vld [vmem:[#allocation5 + $0xfe8] sm:$0xf0] }
 0x255   : > { %4733 = vmatpush.bf16.msra.mxu1 %v7337_v46  ;;  %v7257_v46 = vor.u32 %v9763_v52, %v7254_v21  ;;  %v7577_v36 = vor.u32 %v9843_v45, %v7574_v19  ;;  %v4487_v54 = vpop.f32.mrf.mxu3  ;;  %v8414_v52 = vld [vmem:[#allocation5 + $0xe58] sm:$0xf0]  ;;  %v10133_v21 = vld [vmem:[#allocation5 + $0x10b4] sm:$0xf]  ;;  %v10103_v3 = vld [vmem:[#allocation5 + $0xfc4] sm:$0xf] }
 0x256   : > { %4747 = vmatpush.bf16.msra.mxu2 %v7657_v31  ;;  %v8497_v31 = vor.u32 %v10073_v11, %v8494_v7  ;;  %v4488_v33 = vadd.f32 %v4487_v54, %v4474_v18  ;;  %v8417_v54 = vor.u32 %v10053_v48, %v8414_v52  ;;  %v8377_v11 = vor.u32 %v10043_v50, %v8374_v27  ;;  %v10033_v7 = vld [vmem:[#allocation5 + $0xd94] sm:$0xf]  ;;  %v8654_v45 = vld [vmem:[#allocation5 + $0x1038] sm:$0xf0]  ;;  %v8214_v50 = vld [vmem:[#allocation5 + $0xcc8] sm:$0xf0] }
 0x257   : > { %4761 = vmatpush.bf16.msra.mxu3 %v7977_v28  ;;  %v8777_v28 = vor.u32 %v10143_v44, %v8774_v53  ;;  %v10123_v44 = vld [vmem:[#allocation5 + $0x1064] sm:$0xf]  ;;  %v8694_v53 = vld [vmem:[#allocation5 + $0x1088] sm:$0xf0]  ;;  %v8574_v48 = vld [vmem:[#allocation5 + $0xf98] sm:$0xf0] }
 0x258   : > { %4720 = vmatpush.bf16.msra.mxu0 %v6977_v58  ;;  %v8457_v58 = vor.u32 %v10063_v42, %v8454_v12  ;;  %v8697_v30 = vor.u32 %v10123_v44, %v8694_v53  ;;  %v10013_v42 = vld [vmem:[#allocation5 + $0xcf4] sm:$0xf]  ;;  %v8254_v12 = vld [vmem:[#allocation5 + $0xd18] sm:$0xf0]  ;;  %v10083_v27 = vld [vmem:[#allocation5 + $0xf24] sm:$0xf] }
 0x259   : > { %4734 = vmatpush.bf16.msra.mxu1 %v7297_v6  ;;  %v8734_v6 = vld [vmem:[#allocation5 + $0x10d8] sm:$0xf0]  ;;  %v8534_v44 = vld [vmem:[#allocation5 + $0xf48] sm:$0xf0] }
 0x25a   : > { %4748 = vmatpush.bf16.msra.mxu2 %v7617_v14  ;;  %v8737_v14 = vor.u32 %v10133_v21, %v8734_v6  ;;  %v8257_v21 = vor.u32 %v10013_v42, %v8254_v12  ;;  %v9462_v42 = vld [vmem:[#allocation8 + $0x500] sm:$0xf] }
 0x25b   : > { %4762 = vmatpush.bf16.msra.mxu3 %v7937_v32  ;;  %v8657_v32 = vor.u32 %v10113_v5, %v8654_v45  ;;  %v10323_v12 = vld [vmem:[#allocation8 + $0x51c] sm:$0xf0] }
 0x25c   : > { %4721 = vmatpush.bf16.msra.mxu0 %v6937_v17 }
 0x25d   : > { %4735 = vmatpush.bf16.msra.mxu1 %v7257_v46  ;;  %v4513_v17 = vpop.f32.mrf.mxu1  ;;  %v8294_v46 = vld [vmem:[#allocation5 + $0xd68] sm:$0xf0] }
 0x25e   : > { %4749 = vmatpush.bf16.msra.mxu2 %v7577_v36  ;;  %v8617_v36 = vor.u32 %v10103_v3, %v8614_v4  ;;  %v10339_v4 = vld [vmem:[#allocation8 + $0x59c] sm:$0xf0] }
 0x25f   : > { %4722 = vmatmul.bf16.vlgmr.msra.gmra.mxu0 %v10830_v9  ;;  %4763 = vmatpush.bf16.msra.mxu3 %v7897_v59  ;;  %v4499_v9 = vpop.f32.mrf.mxu0 }
 0x260   : > { %4770 = vmatpush.bf16.msrb.mxu0 %v8497_v31  ;;  %4736 = vmatmul.bf16.vlgmr.msra.gmra.mxu1 %v10824_v2  ;;  %v11320_v2 = vperm.slane %v11020_v15, 7 }
 0x261   : > { %4784 = vmatpush.bf16.msrb.mxu1 %v8817_v16  ;;  %4750 = vmatmul.bf16.vlgmr.msra.gmra.mxu2 %v10835_v24  ;;  %v11097_v24 = vadd.f32 %v4499_v9, %v11088_v55  ;;  %v8297_v55 = vor.u32 %v10023_v0, %v8294_v46  ;;  %v10347_v0 = vld [vmem:[#allocation8 + $0x5dc] sm:$0xf0] }
 0x262   : > { %4764 = vmatmul.bf16.vlgmr.msra.gmra.mxu3 %v10844_v37  ;;  %v8337_v37 = vor.u32 %v10033_v7, %v8334_v60  ;;  %v4514_v31 = vadd.f32 %v4513_v17, %v11320_v2  ;;  %v9246_v2 = vld [vmem:[#allocation8 + $0x348] sm:$0xf] }
 0x263   : > { %11359 = vst [vmem:[#allocation38_spill] sm:$0xff] %v11097_v24 }
 0x264   : > { %4771 = vmatpush.bf16.msrb.mxu0 %v8457_v58  ;;  %v4527_v18 = vpop.f32.mrf.mxu2 }
 0x265   : > { %4785 = vmatpush.bf16.msrb.mxu1 %v8777_v28  ;;  %v4528_v59 = vadd.f32 %v4527_v18, %v4514_v31  ;;  %v10093_v28 = vld [vmem:[#allocation5 + $0xf74] sm:$0xf]  ;;  %v4541_v52 = vpop.f32.mrf.mxu3  ;;  %v9494_v18 = vld [vmem:[#allocation8 + $0x540] sm:$0xf] }
 0x267   : > { %v4501_v16 = vpop.f32.mrf.mxu0  ;;  %v4542_v6 = vadd.f32 %v4541_v52, %v4528_v59  ;;  %v9463_v59 = vor.u32 %v10323_v12, %v9462_v42 }
 0x268   : > { %4772 = vmatpush.bf16.msrb.mxu0 %v8417_v54  ;;  %v11103_v58 = vadd.f32 %v4501_v16, %v4488_v33  ;;  %v8577_v54 = vor.u32 %v10093_v28, %v8574_v48  ;;  %v11106_v33 = vpop.f32.mrf.mxu1  ;;  %v10331_v16 = vld [vmem:[#allocation8 + $0x55c] sm:$0xf0] }
 0x269   : > { %4786 = vmatpush.bf16.msrb.mxu1 %v8737_v14  ;;  %v10003_v14 = vld [vmem:[#allocation5 + $0xca4] sm:$0xf]  ;;  %v9430_v28 = vld [vmem:[#allocation8 + $0x4c0] sm:$0xf] }
 0x26a   : > { %11360 = vst [vmem:[#allocation39_spill] sm:$0xff] %v11103_v58  ;;  %v8217_v53 = vor.u32 %v10003_v14, %v8214_v50  ;;  %v10315_v48 = vld [vmem:[#allocation8 + $0x4dc] sm:$0xf0]  ;;  %v11148_v58 = vld [vmem:[#allocation7 + $0x8] sm:$0x3] }
 0x26b   : > { %v9431_v52 = vor.u32 %v10315_v48, %v9430_v28  ;;  %v9366_v14 = vld [vmem:[#allocation8 + $0x440] sm:$0xf]  ;;  %v9016_v28 = vld [vmem:[#allocation8 + $0x1a0] sm:$0xf0]  ;;  %v9022_v48 = vld [vmem:[#allocation8 + $0x188] sm:$0xf] }
 0x26c   : > { %4773 = vmatpush.bf16.msrb.mxu0 %v8377_v11  ;;  %v8537_v11 = vor.u32 %v10083_v27, %v8534_v44  ;;  %v11109_v9 = vpop.f32.mrf.mxu2  ;;  %v10299_v50 = vld [vmem:[#allocation8 + $0x45c] sm:$0xf0] }
 0x26d   : > { %4787 = vmatpush.bf16.msrb.mxu1 %v8697_v30  ;;  %v11111_v30 = vpop.f32.mrf.mxu3  ;;  %v9367_v27 = vor.u32 %v10299_v50, %v9366_v14  ;;  %v9334_v44 = vld [vmem:[#allocation8 + $0x400] sm:$0xf] }
 0x26e   : > { %v9238_v50 = vld [vmem:[#allocation8 + $0x340] sm:$0xf] }
 0x270   : > { %4774 = vmatpush.bf16.msrb.mxu0 %v8337_v37 }
 0x271   : > { %4788 = vmatpush.bf16.msrb.mxu1 %v8657_v32  ;;  %v9558_v32 = vld [vmem:[#allocation8 + $0x5c0] sm:$0xf] }
 0x272   : > { %v9559_v31 = vor.u32 %v10347_v0, %v9558_v32  ;;  %v10215_v32 = vld [vmem:[#allocation8 + $0x1c4] sm:$0xf] }
 0x273   : > { %v9048_v0 = vld [vmem:[#allocation8 + $0x1e0] sm:$0xf0] }
 0x274   : > { %4775 = vmatpush.bf16.msrb.mxu0 %v8297_v55 }
 0x275   : > { %4789 = vmatpush.bf16.msrb.mxu1 %v8617_v36  ;;  %v9495_v36 = vor.u32 %v10331_v16, %v9494_v18  ;;  %v10211_v18 = vld [vmem:[#allocation8 + $0x19c] sm:$0xf0] }
 0x276   : > { %v9270_v16 = vld [vmem:[#allocation8 + $0x380] sm:$0xf] }
 0x278   : > { %4776 = vmatpush.bf16.msrb.mxu0 %v8257_v21  ;;  %v9398_v21 = vld [vmem:[#allocation8 + $0x480] sm:$0xf] }
 0x279   : > { %4790 = vmatpush.bf16.msrb.mxu1 %v8577_v54 }
 0x27c   : > { %4777 = vmatpush.bf16.msrb.mxu0 %v8217_v53  ;;  %v4555_v7 = vpop.f32.mrf.mxu0  ;;  %v10291_v53 = vld [vmem:[#allocation8 + $0x41c] sm:$0xf0] }
 0x27d   : > { %4791 = vmatpush.bf16.msrb.mxu1 %v8537_v11  ;;  %v4556_v60 = vadd.f32 %v4555_v7, %v4542_v6  ;;  %v4569_v5 = vpop.f32.mrf.mxu1  ;;  %v10307_v6 = vld [vmem:[#allocation8 + $0x49c] sm:$0xf0]  ;;  %v9335_v7 = vor.u32 %v10291_v53, %v9334_v44  ;;  %v10199_v44 = vld [vmem:[#allocation8 + $0x144] sm:$0xf] }
 0x27e   : > { %v9399_v54 = vor.u32 %v10307_v6, %v9398_v21  ;;  %v9046_v11 = vld [vmem:[#allocation8 + $0x1c0] sm:$0xf]  ;;  %v10212_v21 = vld [vmem:[#allocation8 + $0x1a4] sm:$0xf0] }
 0x27f   : > { %4778 = vmatmul.bf16.vlgmr.msrb.gmra.mxu0 %v10848_v43  ;;  %v4570_v45 = vadd.f32 %v4569_v5, %v4556_v60  ;;  %v9526_v43 = vld [vmem:[#allocation8 + $0x580] sm:$0xf]  ;;  %v9023_v14 = vor.u32 %v10212_v21, %v9022_v48 }
 0x280   : > { %4792 = vmatmul.bf16.vlgmr.msrb.gmra.mxu1 %v10846_v41  ;;  %6030 = vmatpush.bf16.msra.mxu0 %v9559_v31  ;;  %v9527_v41 = vor.u32 %v10339_v4, %v9526_v43  ;;  %v10219_v60 = vld [vmem:[#allocation8 + $0x1dc] sm:$0xf0]  ;;  %v9051_v31 = vor.u32 %v10215_v32, %v9048_v0  ;;  %v10220_v43 = vld [vmem:[#allocation8 + $0x1e4] sm:$0xf0]  ;;  %v4814_v32 = vlaneseq }
 0x281   : > { %v9302_v5 = vld [vmem:[#allocation8 + $0x3c0] sm:$0xf] }
 0x282   : > { %v9014_v4 = vld [vmem:[#allocation8 + $0x180] sm:$0xf]  ;;  %6044 = vmatpush.bf16.msra.mxu1 %v9051_v31 }
 0x283   : > { %v9015_v42 = vor.u32 %v10211_v18, %v9014_v4  ;;  %v8982_v6 = vld [vmem:[#allocation8 + $0x140] sm:$0xf]  ;;  %v8952_v18 = vld [vmem:[#allocation8 + $0x120] sm:$0xf0] }
 0x284   : > { %v4583_v37 = vpop.f32.mrf.mxu2  ;;  %6031 = vmatpush.bf16.msra.mxu0 %v9527_v41  ;;  %v11117_v53 = vpop.f32.mrf.mxu0  ;;  %v8950_v0 = vld [vmem:[#allocation8 + $0x100] sm:$0xf] }
 0x285   : > { %v4584_v17 = vadd.f32 %v4583_v37, %v4570_v45  ;;  %v4597_v46 = vpop.f32.mrf.mxu3  ;;  %v10283_v45 = vld [vmem:[#allocation8 + $0x3dc] sm:$0xf0]  ;;  %v9047_v37 = vor.u32 %v10219_v60, %v9046_v11  ;;  %v8984_v60 = vld [vmem:[#allocation8 + $0x160] sm:$0xf0] }
 0x286   : > { %v10259_v4 = vld [vmem:[#allocation8 + $0x31c] sm:$0xf0] }
 0x287   : > { %v11113_v3 = vadd.f32 %v4597_v46, %v4584_v17  ;;  %v9303_v17 = vor.u32 %v10283_v45, %v9302_v5  ;;  %v9054_v46 = vld [vmem:[#allocation8 + $0x1c8] sm:$0xf]  ;;  %6002 = vmatpush.bf16.msrb.mxu2 %v9047_v37  ;;  %v11119_v37 = vpop.f32.mrf.mxu1  ;;  %v10187_v21 = vld [vmem:[#allocation8 + $0xdc] sm:$0xf0] }
 0x288   : > { %6032 = vmatpush.bf16.msra.mxu0 %v9495_v36  ;;  %v9055_v41 = vor.u32 %v10220_v43, %v9054_v46  ;;  %v10275_v36 = vld [vmem:[#allocation8 + $0x39c] sm:$0xf0]  ;;  %v8990_v5 = vld [vmem:[#allocation8 + $0x148] sm:$0xf] }
 0x289   : > { %11361 = vst [vmem:[#allocation40_spill] sm:$0xff] %v11113_v3  ;;  %6016 = vmatpush.bf16.msrb.mxu3 %v9303_v17  ;;  %v9271_v12 = vor.u32 %v10275_v36, %v9270_v16  ;;  %v10204_v45 = vld [vmem:[#allocation8 + $0x164] sm:$0xf0]  ;;  %v8987_v17 = vor.u32 %v10199_v44, %v8984_v60  ;;  %v10195_v46 = vld [vmem:[#allocation8 + $0x11c] sm:$0xf0] }
 0x28a   : > { %v8991_v31 = vor.u32 %v10204_v45, %v8990_v5  ;;  %v9206_v43 = vld [vmem:[#allocation8 + $0x300] sm:$0xf]  ;;  %v8958_v16 = vld [vmem:[#allocation8 + $0x108] sm:$0xf] }
 0x28b   : > { %6003 = vmatpush.bf16.msrb.mxu2 %v9015_v42  ;;  %v10196_v36 = vld [vmem:[#allocation8 + $0x124] sm:$0xf0]  ;;  %v8951_v42 = vor.u32 %v10195_v46, %v8950_v0 }
 0x28c   : > { %6033 = vmatpush.bf16.msra.mxu0 %v9463_v59  ;;  %v10207_v59 = vld [vmem:[#allocation8 + $0x184] sm:$0xf]  ;;  %v8959_v48 = vor.u32 %v10196_v36, %v8958_v16  ;;  %v8926_v5 = vld [vmem:[#allocation8 + $0xc8] sm:$0xf]  ;;  %v10243_v36 = vld [vmem:[#allocation8 + $0x29c] sm:$0xf0] }
 0x28d   : > { %6017 = vmatpush.bf16.msrb.mxu3 %v9271_v12  ;;  %v9207_v12 = vor.u32 %v10259_v4, %v9206_v43  ;;  %v10188_v45 = vld [vmem:[#allocation8 + $0xe4] sm:$0xf0]  ;;  %v11127_v46 = vpop.f32.mrf.mxu3  ;;  %v8886_v4 = vld [vmem:[#allocation8 + $0x80] sm:$0xf] }
 0x28e   : > { %v8927_v0 = vor.u32 %v10188_v45, %v8926_v5  ;;  %11362 = vst [vmem:[#allocation41_spill] sm:$0xff] %v11127_v46  ;;  %v10235_v5 = vld [vmem:[#allocation8 + $0x25c] sm:$0xf0]  ;;  %v10167_v45 = vld [vmem:[#allocation8 + $0x44] sm:$0xf] }
 0x290   : > { %6034 = vmatpush.bf16.msra.mxu0 %v9431_v52  ;;  %v9019_v52 = vor.u32 %v10207_v59, %v9016_v28  ;;  %v4815_v59 = vand.u32 127, %v4814_v32 }
 0x292   : > { %6045 = vmatpush.bf16.msra.mxu1 %v9019_v52  ;;  %v8918_v52 = vld [vmem:[#allocation8 + $0xc0] sm:$0xf] }
 0x294   : > { %6035 = vmatpush.bf16.msra.mxu0 %v9399_v54  ;;  %v10203_v54 = vld [vmem:[#allocation8 + $0x15c] sm:$0xf0] }
 0x295   : > { %v8983_v11 = vor.u32 %v10203_v54, %v8982_v6  ;;  %v9174_v6 = vld [vmem:[#allocation8 + $0x2c0] sm:$0xf]  ;;  %v11121_v54 = vpop.f32.mrf.mxu2 }
 0x296   : > { %6046 = vmatpush.bf16.msra.mxu1 %v8987_v17 }
 0x297   : > { %6004 = vmatpush.bf16.msrb.mxu2 %v8983_v11  ;;  %v8919_v11 = vor.u32 %v10187_v21, %v8918_v52 }
 0x298   : > { %6036 = vmatpush.bf16.msra.mxu0 %v9367_v27  ;;  %v10267_v27 = vld [vmem:[#allocation8 + $0x35c] sm:$0xf0] }
 0x29b   : > { %6005 = vmatpush.bf16.msrb.mxu2 %v8951_v42  ;;  %v10175_v42 = vld [vmem:[#allocation8 + $0x84] sm:$0xf] }
 0x29c   : > { %6037 = vmatpush.bf16.msra.mxu0 %v9335_v7  ;;  %v9239_v7 = vor.u32 %v10267_v27, %v9238_v50  ;;  %v10183_v50 = vld [vmem:[#allocation8 + $0xc4] sm:$0xf]  ;;  %v11123_v44 = vpop.f32.mrf.mxu0 }
 0x29d   : > { %v8920_v27 = vld [vmem:[#allocation8 + $0xe0] sm:$0xf0]  ;;  %v11125_v17 = vpop.f32.mrf.mxu1 }
 0x29e   : > { %6018 = vmatpush.bf16.msrb.mxu3 %v9239_v7  ;;  %v8923_v32 = vor.u32 %v10183_v50, %v8920_v27 }
 0x29f   : > { %6006 = vmatpush.bf16.msrb.mxu2 %v8919_v11  ;;  %v10171_v11 = vld [vmem:[#allocation8 + $0x5c] sm:$0xf0] }
 0x2a0   : > { %6086 = vmatpush.bf16.msrb.mxu0 %v9055_v41  ;;  %v10191_v41 = vld [vmem:[#allocation8 + $0x104] sm:$0xf] }
 0x2a1   : > { %v8955_v28 = vor.u32 %v10191_v41, %v8952_v18  ;;  %v10179_v41 = vld [vmem:[#allocation8 + $0x9c] sm:$0xf0] }
 0x2a2   : > { %6019 = vmatpush.bf16.msrb.mxu3 %v9207_v12  ;;  %v9142_v18 = vld [vmem:[#allocation8 + $0x280] sm:$0xf]  ;;  %v8887_v16 = vor.u32 %v10179_v41, %v8886_v4  ;;  %v8888_v12 = vld [vmem:[#allocation8 + $0xa0] sm:$0xf0] }
 0x2a3   : > { %6047 = vmatpush.bf16.msra.mxu1 %v8955_v28  ;;  %v9143_v28 = vor.u32 %v10243_v36, %v9142_v18  ;;  %v8891_v21 = vor.u32 %v10175_v42, %v8888_v12  ;;  %v10172_v42 = vld [vmem:[#allocation8 + $0x64] sm:$0xf0] }
 0x2a4   : > { %6087 = vmatpush.bf16.msrb.mxu0 %v9023_v14  ;;  %v10251_v14 = vld [vmem:[#allocation8 + $0x2dc] sm:$0xf0]  ;;  %v11129_v50 = vpop.f32.mrf.mxu2  ;;  %6007 = vmatpush.bf16.msrb.mxu2 %v8887_v16 }
 0x2a5   : > { %v9175_v7 = vor.u32 %v10251_v14, %v9174_v6  ;;  %v10180_v6 = vld [vmem:[#allocation8 + $0xa4] sm:$0xf0]  ;;  %v8854_v14 = vld [vmem:[#allocation8 + $0x40] sm:$0xf]  ;;  %v11133_v12 = vpop.f32.mrf.mxu1  ;;  %v11135_v55 = vpop.f32.mrf.mxu3 }
 0x2a6   : > { %v8855_v41 = vor.u32 %v10171_v11, %v8854_v14  ;;  %v10227_v14 = vld [vmem:[#allocation8 + $0x21c] sm:$0xf0]  ;;  %v8824_v11 = vld [vmem:[#allocation8 + $0x20] sm:$0xf0] }
 0x2a7   : > { %6020 = vmatpush.bf16.msrb.mxu3 %v9175_v7  ;;  %6048 = vmatpush.bf16.msra.mxu1 %v8923_v32  ;;  %v9110_v7 = vld [vmem:[#allocation8 + $0x240] sm:$0xf]  ;;  %v8856_v32 = vld [vmem:[#allocation8 + $0x60] sm:$0xf0] }
 0x2a8   : > { %6088 = vmatpush.bf16.msrb.mxu0 %v8991_v31  ;;  %v10659_v31 = vmov 0.0   ;;  %v9111_v18 = vor.u32 %v10235_v5, %v9110_v7  ;;  %v8859_v36 = vor.u32 %v10167_v45, %v8856_v32  ;;  %6008 = vmatpush.bf16.msrb.mxu2 %v8855_v41  ;;  %v8830_v45 = vld [vmem:[#allocation8 + $0x8] sm:$0xf]  ;;  %v9304_v41 = vld [vmem:[#allocation8 + $0x3e0] sm:$0xf0] }
 0x2a9   : > { %v10164_v32 = vld [vmem:[#allocation8 + $0x24] sm:$0xf0] }
 0x2ab   : > { %6021 = vmatpush.bf16.msrb.mxu3 %v9143_v28  ;;  %6049 = vmatpush.bf16.msra.mxu1 %v8891_v21  ;;  %v8822_v28 = vld [vmem:[#allocation8] sm:$0xf] }
 0x2ac   : > { %6089 = vmatpush.bf16.msrb.mxu0 %v8959_v48  ;;  %v8894_v48 = vld [vmem:[#allocation8 + $0x88] sm:$0xf]  ;;  %v10163_v21 = vld [vmem:[#allocation8 + $0x1c] sm:$0xf0]  ;;  %v11139_v19 = vpop.f32.mrf.mxu2 }
 0x2af   : > { %6022 = vmatpush.bf16.msrb.mxu3 %v9111_v18  ;;  %6050 = vmatpush.bf16.msra.mxu1 %v8859_v36  ;;  %v10343_v18 = vld [vmem:[#allocation8 + $0x5c4] sm:$0xf] }
 0x2b0   : > { %6090 = vmatpush.bf16.msrb.mxu0 %v8927_v0  ;;  %v8862_v0 = vld [vmem:[#allocation8 + $0x48] sm:$0xf]  ;;  %v9560_v36 = vld [vmem:[#allocation8 + $0x5e0] sm:$0xf0] }
 0x2b8   : > { %v4820_v60 = vpop.permute.xlu0 %4819 }
 0x2b9   : > { %vm4824_vm0 = vcmp.eq.s32.totalorder %v4820_v60, %v4815_v59  ;;  %v8895_v60 = vor.u32 %v10180_v6, %v8894_v48  ;;  %v8863_v6 = vor.u32 %v10172_v42, %v8862_v0  ;;  %v10279_v0 = vld [vmem:[#allocation8 + $0x3c4] sm:$0xf] }
 0x2ba   : > { %v8818_v43 = vsel %vm4824_vm0, 1.0, %v10659_v31  ;;  %v9307_v42 = vor.u32 %v10279_v0, %v9304_v41  ;;  %v10276_v0 = vld [vmem:[#allocation8 + $0x3a4] sm:$0xf0]  ;;  %v10272_v41 = vld [vmem:[#allocation8 + $0x38c] sm:$0xf] }
 0x2bb   : > { %v4830_v52 = vpack.c.bf16 %v8818_v43, %v8818_v43  ;;  %v11131_v43 = vpop.f32.mrf.mxu0  ;;  %6091 = vmatpush.bf16.msrb.mxu0 %v8895_v60  ;;  %v10159_v60 = vld [vmem:[#allocation8 + $0x4] sm:$0xf] }
 0x2bd   : > { %v4846_v16 = vunpack.c.l.b16 %v4830_v52  ;;  %v8827_v52 = vor.u32 %v10159_v60, %v8824_v11  ;;  %v10335_v11 = vld [vmem:[#allocation8 + $0x584] sm:$0xf] }
 0x2bf   : > { %6092 = vmatpush.bf16.msrb.mxu0 %v8863_v6  ;;  %6051 = vmatpush.bf16.msra.mxu1 %v8827_v52  ;;  %v9310_v6 = vld [vmem:[#allocation8 + $0x3c8] sm:$0xf] }
 0x2c0   : > { %v9278_v52 = vld [vmem:[#allocation8 + $0x388] sm:$0xf] }
 0x2c3   : > { %v4823_v27 = vpop.permute.xlu0 %4822 }
 0x2c4   : > { %vm4825_vm1 = vcmp.eq.s32.totalorder %v4823_v27, %v4815_v59  ;;  %v9078_v27 = vld [vmem:[#allocation8 + $0x200] sm:$0xf]  ;;  %v11150_v46 = vpop.f32.mrf.mxu2 }
 0x2c5   : > { %v8819_v4 = vsel %vm4825_vm1, 1.0, %v10659_v31  ;;  %v8823_v31 = vor.u32 %v10163_v21, %v8822_v28  ;;  %v9079_v5 = vor.u32 %v10227_v14, %v9078_v27  ;;  %v10284_v28 = vld [vmem:[#allocation8 + $0x3e4] sm:$0xf0]  ;;  %v10280_v21 = vld [vmem:[#allocation8 + $0x3cc] sm:$0xf] }
 0x2c6   : > { %v4831_v48 = vpack.c.bf16 %v8819_v4, %v8819_v4  ;;  %v8831_v4 = vor.u32 %v10164_v32, %v8830_v45  ;;  %v10271_v27 = vld [vmem:[#allocation8 + $0x384] sm:$0xf]  ;;  %v11142_v45 = vpop.f32.mrf.mxu0 }
 0x2c7   : > { %6009 = vmatpush.bf16.msrb.mxu2 %v8823_v31  ;;  %6023 = vmatpush.bf16.msrb.mxu3 %v9079_v5  ;;  %v9272_v14 = vld [vmem:[#allocation8 + $0x3a0] sm:$0xf0] }
 0x2c8   : > { %v4847_v59 = vunpack.c.l.b16 %v4831_v48  ;;  %v9563_v48 = vor.u32 %v10343_v18, %v9560_v36  ;;  %6093 = vmatpush.bf16.msrb.mxu0 %v8831_v4  ;;  %v9275_v60 = vor.u32 %v10271_v27, %v9272_v14  ;;  %v9528_v5 = vld [vmem:[#allocation8 + $0x5a0] sm:$0xf0]  ;;  %v9280_v4 = vld [vmem:[#allocation8 + $0x3a8] sm:$0xf0]  ;;  %v11144_v18 = vpop.f32.mrf.mxu1  ;;  %v9279_v36 = vor.u32 %v10276_v0, %v9278_v52 }
 0x2c9   : > { %v9531_v32 = vor.u32 %v10335_v11, %v9528_v5  ;;  %v9496_v14 = vld [vmem:[#allocation8 + $0x560] sm:$0xf0]  ;;  %v10264_v5 = vld [vmem:[#allocation8 + $0x34c] sm:$0xf] }
 0x2ca   : > { %v11137_v7 = vpack.c.b16 %v4847_v59, %v4846_v16  ;;  %v9311_v16 = vor.u32 %v10284_v28, %v9310_v6  ;;  %v9312_v59 = vld [vmem:[#allocation8 + $0x3e8] sm:$0xf0]  ;;  %v9283_v6 = vor.u32 %v10272_v41, %v9280_v4  ;;  %v11146_v28 = vpop.f32.mrf.mxu3  ;;  %v10255_v52 = vld [vmem:[#allocation8 + $0x304] sm:$0xf] }
 0x2cb   : > { %6058 = vmatpush.bf16.msra.mxu2 %v9307_v42  ;;  %v9315_v31 = vor.u32 %v10280_v21, %v9312_v59  ;;  %6072 = vmatpush.bf16.msra.mxu3 %v9563_v48  ;;  %v10263_v42 = vld [vmem:[#allocation8 + $0x344] sm:$0xf]  ;;  %v10268_v48 = vld [vmem:[#allocation8 + $0x364] sm:$0xf0] }
 0x2cc   : > { %11363 = vst [vmem:[#allocation42_spill] sm:$0xff] %v11137_v7  ;;  %6038 = vmatmul.bf16.vlgmr.msra.gmra.mxu0 %v11137_v7  ;;  %6100 = vmatpush.bf16.msrb.mxu1 %v9311_v16  ;;  %v9240_v21 = vld [vmem:[#allocation8 + $0x360] sm:$0xf0]  ;;  %v9247_v11 = vor.u32 %v10268_v48, %v9246_v2  ;;  %v9248_v7 = vld [vmem:[#allocation8 + $0x368] sm:$0xf0] }
 0x2cd   : > { %6142 = vmatpush.bf16.msra.mxu0 %v9315_v31  ;;  %v10327_v59 = vld [vmem:[#allocation8 + $0x544] sm:$0xf]  ;;  %v9243_v27 = vor.u32 %v10263_v42, %v9240_v21  ;;  %v9251_v31 = vor.u32 %v10264_v5, %v9248_v7  ;;  %v9214_v42 = vld [vmem:[#allocation8 + $0x308] sm:$0xf] }
 0x2ce   : > { %v9499_v16 = vor.u32 %v10327_v59, %v9496_v14  ;;  %v9208_v0 = vld [vmem:[#allocation8 + $0x320] sm:$0xf0]  ;;  %v10260_v21 = vld [vmem:[#allocation8 + $0x324] sm:$0xf0]  ;;  %v9216_v59 = vld [vmem:[#allocation8 + $0x328] sm:$0xf0] }
 0x2cf   : > { %6059 = vmatpush.bf16.msra.mxu2 %v9275_v60  ;;  %6073 = vmatpush.bf16.msra.mxu3 %v9531_v32  ;;  %v10319_v41 = vld [vmem:[#allocation8 + $0x504] sm:$0xf]  ;;  %v9211_v4 = vor.u32 %v10255_v52, %v9208_v0  ;;  %v9215_v2 = vor.u32 %v10260_v21, %v9214_v42  ;;  %v11325_v14 = vperm.slane %v11148_v58, 0  ;;  %v10248_v21 = vld [vmem:[#allocation8 + $0x2cc] sm:$0xf] }
 0x2d0   : > { %6101 = vmatpush.bf16.msrb.mxu1 %v9279_v36  ;;  %v9464_v60 = vld [vmem:[#allocation8 + $0x520] sm:$0xf0]  ;;  %v10256_v36 = vld [vmem:[#allocation8 + $0x30c] sm:$0xf]  ;;  %v11155_v0 = vpop.f32.mrf.mxu1 }
 0x2d1   : > { %6143 = vmatpush.bf16.msra.mxu0 %v9283_v6  ;;  %v9467_v32 = vor.u32 %v10319_v41, %v9464_v60  ;;  %v9219_v7 = vor.u32 %v10256_v36, %v9216_v59  ;;  %v11153_v6 = vpop.f32.mrf.mxu0  ;;  %v9176_v5 = vld [vmem:[#allocation8 + $0x2e0] sm:$0xf0]  ;;  %11364 = vst [vmem:[#allocation43_spill] sm:$0xff] %v11155_v0  ;;  %v10252_v41 = vld [vmem:[#allocation8 + $0x2e4] sm:$0xf0]  ;;  %v4612_v36 = vadd.f32 %v11123_v44, %v11325_v14  ;;  %v11366_v59 = vperm.slane %v10865_v62, 0 }
 0x2d2   : > { %v4709_v48 = vpop.f32.mrf.mxu3  ;;  %v10311_v52 = vld [vmem:[#allocation8 + $0x4c4] sm:$0xf]  ;;  %v10240_v44 = vld [vmem:[#allocation8 + $0x28c] sm:$0xf] }
 0x2d3   : > { %6060 = vmatpush.bf16.msra.mxu2 %v9243_v27  ;;  %6074 = vmatpush.bf16.msra.mxu3 %v9499_v16  ;;  %v10247_v27 = vld [vmem:[#allocation8 + $0x2c4] sm:$0xf]  ;;  %v9152_v14 = vld [vmem:[#allocation8 + $0x2a8] sm:$0xf0]  ;;  %v3830_v24 = vadd.f32 %v10873_v39, %v11366_v59 }
 0x2d4   : > { %6102 = vmatpush.bf16.msrb.mxu1 %v9247_v11  ;;  %v9179_v3 = vor.u32 %v10247_v27, %v9176_v5  ;;  %v9432_v16 = vld [vmem:[#allocation8 + $0x4e0] sm:$0xf0]  ;;  %v9182_v11 = vld [vmem:[#allocation8 + $0x2c8] sm:$0xf]  ;;  %v11365_v5 = vperm.slane %v10865_v62, 2 }
 0x2d5   : > { %6144 = vmatpush.bf16.msra.mxu0 %v9251_v31  ;;  %v9435_v60 = vor.u32 %v10311_v52, %v9432_v16  ;;  %v9183_v42 = vor.u32 %v10252_v41, %v9182_v11  ;;  %v9184_v31 = vld [vmem:[#allocation8 + $0x2e8] sm:$0xf0]  ;;  %v10239_v0 = vld [vmem:[#allocation8 + $0x284] sm:$0xf]  ;;  %v9150_v16 = vld [vmem:[#allocation8 + $0x288] sm:$0xf] }
 0x2d6   : > { %v9187_v49 = vor.u32 %v10248_v21, %v9184_v31  ;;  %v10303_v27 = vld [vmem:[#allocation8 + $0x484] sm:$0xf]  ;;  %v10244_v11 = vld [vmem:[#allocation8 + $0x2a4] sm:$0xf0]  ;;  %v9155_v31 = vor.u32 %v10240_v44, %v9152_v14 }
 0x2d7   : > { %6061 = vmatpush.bf16.msra.mxu2 %v9211_v4  ;;  %6075 = vmatpush.bf16.msra.mxu3 %v9467_v32  ;;  %v9144_v4 = vld [vmem:[#allocation8 + $0x2a0] sm:$0xf0]  ;;  %v4026_v32 = vadd.f32 %v10932_v23, %v11365_v5  ;;  %v9151_v21 = vor.u32 %v10244_v11, %v9150_v16  ;;  %v11367_v23 = vperm.slane %v10865_v62, 1  ;;  %v11370_v62 = vperm.slane %v11148_v58, 1  ;;  %v10236_v16 = vld [vmem:[#allocation8 + $0x264] sm:$0xf0] }
 0x2d8   : > { %6103 = vmatpush.bf16.msrb.mxu1 %v9215_v2  ;;  %v9147_v2 = vor.u32 %v10239_v0, %v9144_v4  ;;  %v9400_v52 = vld [vmem:[#allocation8 + $0x4a0] sm:$0xf0]  ;;  %v11368_v0 = vperm.slane %v10950_v38, 3  ;;  %v11371_v11 = vperm.slane %v10950_v38, 4 }
 0x2d9   : > { %6145 = vmatpush.bf16.msra.mxu0 %v9219_v7  ;;  %v9403_v41 = vor.u32 %v10303_v27, %v9400_v52  ;;  %v4626_v7 = vadd.f32 %v11125_v17, %v4612_v36  ;;  %v11177_v17 = vpop.f32.mrf.mxu2  ;;  %v10231_v14 = vld [vmem:[#allocation8 + $0x244] sm:$0xf]  ;;  %v4040_v39 = vadd.f32 %v10935_v29, %v4026_v32  ;;  %v4710_v59 = vadd.f32 %v4709_v48, %v11370_v62  ;;  %v9120_v29 = vld [vmem:[#allocation8 + $0x268] sm:$0xf0] }
 0x2da   : > { %v9112_v36 = vld [vmem:[#allocation8 + $0x260] sm:$0xf0]  ;;  %v4711_v44 = vpop.f32.mrf.mxu3 }
 0x2db   : > { %6062 = vmatpush.bf16.msra.mxu2 %v9179_v3  ;;  %6076 = vmatpush.bf16.msra.mxu3 %v9435_v60  ;;  %v3928_v3 = vadd.f32 %v10901_v20, %v11367_v23  ;;  %v4124_v60 = vadd.f32 %v10966_v25, %v11368_v0  ;;  %v10295_v27 = vld [vmem:[#allocation8 + $0x444] sm:$0xf]  ;;  %v9115_v5 = vor.u32 %v10231_v14, %v9112_v36  ;;  %v9118_v25 = vld [vmem:[#allocation8 + $0x248] sm:$0xf] }
 0x2dc   : > { %6104 = vmatpush.bf16.msrb.mxu1 %v9183_v42  ;;  %v11369_v42 = vperm.slane %v11020_v15, 5  ;;  %v9368_v52 = vld [vmem:[#allocation8 + $0x460] sm:$0xf0]  ;;  %v9119_v0 = vor.u32 %v10236_v16, %v9118_v25  ;;  %v4640_v32 = vadd.f32 %v11129_v50, %v4626_v7  ;;  %v11374_v16 = vperm.slane %v11148_v58, 1 }
 0x2dd   : > { %6146 = vmatpush.bf16.msra.mxu0 %v9187_v49  ;;  %v4723_v49 = vpop.f32.mrf.mxu0  ;;  %v4737_v20 = vpop.f32.mrf.mxu1  ;;  %v9371_v23 = vor.u32 %v10295_v27, %v9368_v52  ;;  %v3942_v14 = vadd.f32 %v10905_v63, %v3928_v3  ;;  %v4138_v36 = vadd.f32 %v10971_v22, %v4124_v60  ;;  %v9080_v62 = vld [vmem:[#allocation8 + $0x220] sm:$0xf0]  ;;  %v11372_v27 = vperm.slane %v11020_v15, 7  ;;  %v10224_v3 = vld [vmem:[#allocation8 + $0x20c] sm:$0xf] }
 0x2de   : > { %v4320_v4 = vadd.f32 %v11031_v56, %v11369_v42  ;;  %v4222_v56 = vadd.f32 %v10998_v13, %v11371_v11  ;;  %v10232_v42 = vld [vmem:[#allocation8 + $0x24c] sm:$0xf]  ;;  %v10223_v13 = vld [vmem:[#allocation8 + $0x204] sm:$0xf]  ;;  %v4724_v50 = vadd.f32 %v4723_v49, %v4710_v59  ;;  %v4712_v11 = vadd.f32 %v4711_v44, %v11374_v16  ;;  %v11377_v44 = vld [vmem:[#allocation33_spill] sm:$0xff] }
 0x2df   : > { %6063 = vmatpush.bf16.msra.mxu2 %v9147_v2  ;;  %6077 = vmatpush.bf16.msra.mxu3 %v9403_v41  ;;  %v9123_v48 = vor.u32 %v10232_v42, %v9120_v29  ;;  %v3844_v2 = vadd.f32 %v10875_v47, %v3830_v24  ;;  %v10287_v41 = vld [vmem:[#allocation8 + $0x404] sm:$0xf]  ;;  %v4516_v52 = vadd.f32 %v11106_v33, %v11372_v27  ;;  %v9086_v47 = vld [vmem:[#allocation8 + $0x208] sm:$0xf]  ;;  %v9088_v60 = vld [vmem:[#allocation8 + $0x228] sm:$0xf0] }
 0x2e0   : > { %6105 = vmatpush.bf16.msrb.mxu1 %v9151_v21  ;;  %v4334_v38 = vadd.f32 %v11035_v57, %v4320_v4  ;;  %v4054_v21 = vadd.f32 %v10940_v35, %v4040_v39  ;;  %v9083_v7 = vor.u32 %v10223_v13, %v9080_v62  ;;  %v10228_v24 = vld [vmem:[#allocation8 + $0x224] sm:$0xf0]  ;;  %v4236_v63 = vadd.f32 %v11000_v51, %v4222_v56  ;;  %v11391_v16 = vld [vmem:[#allocation24_spill] sm:$0xff] }
 0x2e1   : > { %6147 = vmatpush.bf16.msra.mxu0 %v9155_v31  ;;  %v9336_v31 = vld [vmem:[#allocation8 + $0x420] sm:$0xf0]  ;;  %v9087_v57 = vor.u32 %v10228_v24, %v9086_v47  ;;  %v11373_v35 = vperm.slane %v11148_v58, 0  ;;  %v4654_v33 = vadd.f32 %v11135_v55, %v4640_v32  ;;  %v9091_v4 = vor.u32 %v10224_v3, %v9088_v60  ;;  %v11387_v3 = vld [vmem:[#allocation20_spill] sm:$0xff] }
 0x2e2   : > { %v9339_v22 = vor.u32 %v10287_v41, %v9336_v31  ;;  %v3956_v49 = vadd.f32 %v10907_v8, %v3942_v14  ;;  %v4152_v39 = vadd.f32 %v10974_v40, %v4138_v36  ;;  %v4348_v51 = vadd.f32 %v11037_v26, %v4334_v38  ;;  %v11378_v29 = vld [vmem:[#allocation14_spill] sm:$0xff]  ;;  %v11380_v36 = vld [vmem:[#allocation25_spill] sm:$0xff] }
 0x2e3   : > { %6064 = vmatpush.bf16.msra.mxu2 %v9115_v5  ;;  %6078 = vmatpush.bf16.msra.mxu3 %v9371_v23  ;;  %v4614_v15 = vadd.f32 %v11131_v43, %v11373_v35  ;;  %v3858_v5 = vadd.f32 %v10880_v1, %v3844_v2  ;;  %v4530_v25 = vadd.f32 %v11109_v9, %v4516_v52  ;;  %v11375_v23 = vld [vmem:[#allocation28_spill] sm:$0xff]  ;;  %v11376_v9 = vld [vmem:[#allocation18_spill] sm:$0xff]  ;;  %v11383_v52 = vld [vmem:[#allocation19_spill] sm:$0xff] }
 0x2e4   : > { %6106 = vmatpush.bf16.msrb.mxu1 %v9119_v0  ;;  %v4751_v59 = vpop.f32.mrf.mxu2  ;;  %v4738_v56 = vadd.f32 %v4737_v20, %v4724_v50  ;;  %v4068_v55 = vadd.f32 %v10943_v10, %v4054_v21  ;;  %v4166_v43 = vadd.f32 %v10981_v61, %v4152_v39  ;;  %v4250_v8 = vadd.f32 %v11375_v23, %v4236_v63  ;;  %v11379_v2 = vld [vmem:[#allocation22_spill] sm:$0xff]  ;;  %v11388_v35 = vld [vmem:[#allocation23_spill] sm:$0xff] }
 0x2e5   : > { %6148 = vmatpush.bf16.msra.mxu0 %v9123_v48  ;;  %v4725_v0 = vpop.f32.mrf.mxu0  ;;  %v4628_v40 = vadd.f32 %v11133_v12, %v4614_v15  ;;  %v4668_v1 = vadd.f32 %v11142_v45, %v4654_v33  ;;  %v4739_v26 = vpop.f32.mrf.mxu1  ;;  %v3970_v58 = vadd.f32 %v11376_v9, %v3956_v49  ;;  %v4362_v20 = vadd.f32 %v11377_v44, %v4348_v51  ;;  %v11381_v12 = vld [vmem:[#allocation29_spill] sm:$0xff]  ;;  %v11382_v45 = vld [vmem:[#allocation15_spill] sm:$0xff]  ;;  %v11385_v31 = vld [vmem:[#allocation30_spill] sm:$0xff] }
 0x2e6   : > { %v4765_v42 = vpop.f32.mrf.mxu3  ;;  %v3872_v10 = vadd.f32 %v11378_v29, %v3858_v5  ;;  %v4544_v61 = vadd.f32 %v11111_v30, %v4530_v25  ;;  %v4752_v32 = vadd.f32 %v4751_v59, %v4738_v56  ;;  %v4726_v48 = vadd.f32 %v4725_v0, %v4712_v11  ;;  %v11386_v24 = vld [vmem:[#allocation34_spill] sm:$0xff]  ;;  %v11389_v33 = vld [vmem:[#allocation36_spill] sm:$0xff]  ;;  %v11392_v56 = vld [vmem:[#allocation27_spill] sm:$0xff] }
 0x2e7   : > { %6065 = vmatpush.bf16.msra.mxu2 %v9083_v7  ;;  %6079 = vmatpush.bf16.msra.mxu3 %v9339_v22  ;;  %v4082_v14 = vadd.f32 %v11379_v2, %v4068_v55  ;;  %v4180_v38 = vadd.f32 %v11380_v36, %v4166_v43  ;;  %v4264_v13 = vadd.f32 %v11381_v12, %v4250_v8  ;;  %v11384_v7 = vld [vmem:[#allocation26_spill] sm:$0xff]  ;;  %v11390_v5 = vld [vmem:[#allocation16_spill] sm:$0xff]  ;;  %v11393_v43 = vld [vmem:[#allocation31_spill] sm:$0xff] }
 0x2e8   : > { %6107 = vmatpush.bf16.msrb.mxu1 %v9087_v57  ;;  %v3886_v62 = vadd.f32 %v11382_v45, %v3872_v10  ;;  %v4558_v41 = vadd.f32 %v11117_v53, %v4544_v61  ;;  %v4642_v21 = vadd.f32 %v11139_v19, %v4628_v40  ;;  %v4682_v27 = vadd.f32 %v11144_v18, %v4668_v1  ;;  %v11394_v1 = vld [vmem:[#allocation17_spill] sm:$0xff]  ;;  %v11398_v29 = vld [vmem:[#allocation38_spill] sm:$0xff]  ;;  %v11404_v12 = vld [vmem:[#allocation43_spill] sm:$0xff] }
 0x2e9   : > { %6149 = vmatpush.bf16.msra.mxu0 %v9091_v4  ;;  %v3984_v50 = vadd.f32 %v11383_v52, %v3970_v58  ;;  %v4194_v30 = vadd.f32 %v11384_v7, %v4180_v38  ;;  %v4278_v47 = vadd.f32 %v11385_v31, %v4264_v13  ;;  %v4376_v63 = vadd.f32 %v11386_v24, %v4362_v20  ;;  %v11396_v58 = vld [vmem:[#allocation32_spill] sm:$0xff]  ;;  %v11397_v20 = vld [vmem:[#allocation37_spill] sm:$0xff]  ;;  %v11405_v7 = vld [vmem:[#allocation39_spill] sm:$0xff] }
 0x2ea   : > { %v4766_v22 = vadd.f32 %v4765_v42, %v4752_v32  ;;  %v4740_v57 = vadd.f32 %v4739_v26, %v4726_v48  ;;  %v4096_v15 = vadd.f32 %v11388_v35, %v4082_v14  ;;  %v4572_v18 = vadd.f32 %v11119_v37, %v4558_v41  ;;  %v11395_v26 = vld [vmem:[#allocation21_spill] sm:$0xff]  ;;  %v11400_v32 = vld [vmem:[#allocation35_spill] sm:$0xff]  ;;  %v11401_v48 = vld [vmem:[#allocation40_spill] sm:$0xff] }
 0x2eb   : > { %v3998_v60 = vadd.f32 %v11387_v3, %v3984_v50  ;;  %v4390_v53 = vadd.f32 %v11389_v33, %v4376_v63  ;;  %v4656_v49 = vadd.f32 %v11146_v28, %v4642_v21  ;;  %v4696_v39 = vadd.f32 %v11150_v46, %v4682_v27  ;;  %v11403_v36 = vld [vmem:[#allocation41_spill] sm:$0xff]  ;;  %v10348_v3 = vld [vmem:[#allocation8 + $0x5e4] sm:$0xf0]  ;;  %v9056_v35 = vld [vmem:[#allocation8 + $0x1e8] sm:$0xf0] }
 0x2ec   : > { %v4753_v4 = vpop.f32.mrf.mxu2  ;;  %v3900_v25 = vadd.f32 %v11390_v5, %v3886_v62  ;;  %v4110_v11 = vadd.f32 %v11391_v16, %v4096_v15  ;;  %v4208_v55 = vadd.f32 %v11392_v56, %v4194_v30  ;;  %v4292_v23 = vadd.f32 %v11393_v43, %v4278_v47  ;;  %v10344_v15 = vld [vmem:[#allocation8 + $0x5cc] sm:$0xf]  ;;  %v10340_v16 = vld [vmem:[#allocation8 + $0x5a4] sm:$0xf0] }
 0x2ed   : > { %v4586_v8 = vadd.f32 %v11121_v54, %v4572_v18  ;;  %v4670_v0 = vadd.f32 %v11153_v6, %v4656_v49  ;;  %v4754_v40 = vadd.f32 %v4753_v4, %v4740_v57  ;;  %v4012_v46 = vadd.f32 %v11395_v26, %v3998_v60  ;;  %v9566_v57 = vld [vmem:[#allocation8 + $0x5c8] sm:$0xf]  ;;  %v10216_v60 = vld [vmem:[#allocation8 + $0x1cc] sm:$0xf]  ;;  %v10349_v49 = vld [vmem:[#allocation8 + $0x5ec] sm:$0xf0] }
 0x2ee   : > { %v3914_v28 = vadd.f32 %v11394_v1, %v3900_v25  ;;  %v4767_v9 = vpop.f32.mrf.mxu3  ;;  %v4306_v44 = vadd.f32 %v11396_v58, %v4292_v23  ;;  %v4404_v42 = vadd.f32 %v11397_v20, %v4390_v53  ;;  %v11399_v10 = vmax.f32 %v11012_v34, %v11398_v29  ;;  %v9568_v18 = vld [vmem:[#allocation8 + $0x5e8] sm:$0xf0]  ;;  %v9534_v25 = vld [vmem:[#allocation8 + $0x588] sm:$0xf]  ;;  %v9510_v29 = vld [vmem:[#allocation8 + $0x550] sm:$0xf] }
 0x2ef   : > { %v11402_v54 = vmax.f32 %v11400_v32, %v11401_v48  ;;  %v4801_v14 = vmax.f32 %v4012_v46, %v4208_v55  ;;  %v4600_v38 = vadd.f32 %v11403_v36, %v4586_v8  ;;  %v4684_v13 = vadd.f32 %v11404_v12, %v4670_v0  ;;  %v10208_v55 = vld [vmem:[#allocation8 + $0x18c] sm:$0xf]  ;;  %v9542_v0 = vld [vmem:[#allocation8 + $0x590] sm:$0xf]  ;;  %v10332_v26 = vld [vmem:[#allocation8 + $0x564] sm:$0xf0] }
 0x2f0   : > { %v4810_v61 = vmax.f32 %v11399_v10, %v4696_v39  ;;  %v4800_v6 = vmax.f32 %v3914_v28, %v4110_v11  ;;  %v4768_v45 = vadd.f32 %v4767_v9, %v4754_v40  ;;  %v9059_v5 = vor.u32 %v10216_v60, %v9056_v35  ;;  %v9024_v43 = vld [vmem:[#allocation8 + $0x1a8] sm:$0xf0]  ;;  %v10341_v40 = vld [vmem:[#allocation8 + $0x5ac] sm:$0xf0]  ;;  %v9502_v28 = vld [vmem:[#allocation8 + $0x548] sm:$0xf] }
 0x2f1   : > { %v4805_v27 = vmax.f32 %v4801_v14, %v4404_v42  ;;  %v4698_v52 = vadd.f32 %v11177_v17, %v4684_v13  ;;  %v9574_v17 = vld [vmem:[#allocation8 + $0x5d0] sm:$0xf]  ;;  %v9571_v11 = vor.u32 %v10344_v15, %v9568_v18  ;;  %v10336_v23 = vld [vmem:[#allocation8 + $0x58c] sm:$0xf]  ;;  %v9027_v1 = vor.u32 %v10208_v55, %v9024_v43  ;;  %v9470_v48 = vld [vmem:[#allocation8 + $0x508] sm:$0xf] }
 0x2f2   : > { %v4804_v21 = vmax.f32 %v4800_v6, %v4306_v44  ;;  %v9575_v56 = vor.u32 %v10349_v49, %v9574_v17  ;;  %v9536_v8 = vld [vmem:[#allocation8 + $0x5a8] sm:$0xf0]  ;;  %v9543_v9 = vor.u32 %v10341_v40, %v9542_v0  ;;  %v10333_v10 = vld [vmem:[#allocation8 + $0x56c] sm:$0xf0]  ;;  %v9342_v40 = vld [vmem:[#allocation8 + $0x408] sm:$0xf] }
 0x2f3   : > { %v4809_v31 = vmax.f32 %v4805_v27, %v4600_v38  ;;  %v9539_v46 = vor.u32 %v10336_v23, %v9536_v8  ;;  %v10200_v58 = vld [vmem:[#allocation8 + $0x14c] sm:$0xf]  ;;  %v9511_v6 = vor.u32 %v10333_v10, %v9510_v29  ;;  %v9478_v13 = vld [vmem:[#allocation8 + $0x510] sm:$0xf]  ;;  %v10316_v27 = vld [vmem:[#allocation8 + $0x4e4] sm:$0xf0] }
 0x2f4   : > { %v4808_v30 = vmax.f32 %v4804_v21, %v11405_v7  ;;  %v8992_v44 = vld [vmem:[#allocation8 + $0x168] sm:$0xf0]  ;;  %v9438_v21 = vld [vmem:[#allocation8 + $0x4c8] sm:$0xf]  ;;  %v9414_v18 = vld [vmem:[#allocation8 + $0x490] sm:$0xf] }
 0x2f5   : > { %v10328_v20 = vld [vmem:[#allocation8 + $0x54c] sm:$0xf]  ;;  %v8995_v32 = vor.u32 %v10200_v58, %v8992_v44  ;;  %v10309_v17 = vld [vmem:[#allocation8 + $0x4ac] sm:$0xf0] }
 0x2f6   : > { %v4812_v24 = vmax.f32 %v4808_v30, %v4698_v52  ;;  %v9504_v42 = vld [vmem:[#allocation8 + $0x568] sm:$0xf0]  ;;  %v9382_v8 = vld [vmem:[#allocation8 + $0x450] sm:$0xf] }
 0x2f7   : > { %v10192_v14 = vld [vmem:[#allocation8 + $0x10c] sm:$0xf]  ;;  %v10301_v0 = vld [vmem:[#allocation8 + $0x46c] sm:$0xf0] }
 0x2f8   : > { %v8960_v36 = vld [vmem:[#allocation8 + $0x128] sm:$0xf0]  ;;  %v9383_v58 = vor.u32 %v10301_v0, %v9382_v8  ;;  %v10293_v29 = vld [vmem:[#allocation8 + $0x42c] sm:$0xf0]  ;;  %v10198_v8 = vld [vmem:[#allocation8 + $0x134] sm:$0xf0] }
 0x2f9   : > { %v10320_v38 = vld [vmem:[#allocation8 + $0x50c] sm:$0xf]  ;;  %v9062_v10 = vld [vmem:[#allocation8 + $0x1d0] sm:$0xf] }
 0x2fa   : > { %v9472_v12 = vld [vmem:[#allocation8 + $0x528] sm:$0xf0] }
 0x2fb   : > { %v9475_v52 = vor.u32 %v10320_v38, %v9472_v12  ;;  %v8928_v7 = vld [vmem:[#allocation8 + $0xe8] sm:$0xf0]  ;;  %v10222_v38 = vld [vmem:[#allocation8 + $0x1f4] sm:$0xf0] }
 0x2fc   : > { %v4779_v19 = vpop.f32.mrf.mxu0  ;;  %v10312_v30 = vld [vmem:[#allocation8 + $0x4cc] sm:$0xf] }
 0x2fd   : > { %v4780_v51 = vadd.f32 %v4779_v19, %v4766_v22  ;;  %v4793_v59 = vpop.f32.mrf.mxu1  ;;  %v10176_v15 = vld [vmem:[#allocation8 + $0x8c] sm:$0xf] }
 0x2fe   : > { %v8864_v55 = vld [vmem:[#allocation8 + $0x68] sm:$0xf0] }
 0x2ff   : > { %v4794_v37 = vadd.f32 %v4793_v59, %v4780_v51  ;;  %v9567_v59 = vor.u32 %v10348_v3, %v9566_v57  ;;  %v9406_v57 = vld [vmem:[#allocation8 + $0x488] sm:$0xf]  ;;  %v10296_v43 = vld [vmem:[#allocation8 + $0x44c] sm:$0xf] }
 0x300   : > { %v10308_v3 = vld [vmem:[#allocation8 + $0x4a4] sm:$0xf0]  ;;  %v9376_v23 = vld [vmem:[#allocation8 + $0x468] sm:$0xf0] }
 0x301   : > { %v4811_v2 = vmax.f32 %v11402_v54, %v4794_v37  ;;  %v9535_v37 = vor.u32 %v10340_v16, %v9534_v25  ;;  %v10324_v54 = vld [vmem:[#allocation8 + $0x524] sm:$0xf0]  ;;  %v9407_v49 = vor.u32 %v10308_v3, %v9406_v57  ;;  %v10288_v44 = vld [vmem:[#allocation8 + $0x40c] sm:$0xf]  ;;  %v10205_v57 = vld [vmem:[#allocation8 + $0x16c] sm:$0xf0] }
 0x302   : > { %v10300_v25 = vld [vmem:[#allocation8 + $0x464] sm:$0xf0] }
 0x303   : > { %v4832_v62 = vpack.c.bf16 %v4811_v2, %v4810_v61  ;;  %v9503_v61 = vor.u32 %v10332_v26, %v9502_v28  ;;  %v9507_v2 = vor.u32 %v10328_v20, %v9504_v42  ;;  %v10292_v28 = vld [vmem:[#allocation8 + $0x424] sm:$0xf0]  ;;  %v10160_v26 = vld [vmem:[#allocation8 + $0xc] sm:$0xf]  ;;  %v9350_v42 = vld [vmem:[#allocation8 + $0x410] sm:$0xf] }
 0x304   : > { %v4781_v41 = vpop.f32.mrf.mxu0  ;;  %v9344_v20 = vld [vmem:[#allocation8 + $0x428] sm:$0xf0] }
 0x305   : > { %v4782_v50 = vadd.f32 %v4781_v41, %v4768_v45  ;;  %v4795_v34 = vpop.f32.mrf.mxu1  ;;  %v4836_v33 = vunpack.c.l.b16 %v4832_v62  ;;  %v4837_v53 = vunpack.c.h.b16 %v4832_v62  ;;  %v10325_v45 = vld [vmem:[#allocation8 + $0x52c] sm:$0xf0]  ;;  %v9471_v62 = vor.u32 %v10324_v54, %v9470_v48  ;;  %v10217_v54 = vld [vmem:[#allocation8 + $0x1d4] sm:$0xf] }
 0x306   : > { %v8963_v41 = vor.u32 %v10192_v14, %v8960_v36  ;;  %v10285_v48 = vld [vmem:[#allocation8 + $0x3ec] sm:$0xf0]  ;;  %v9064_v14 = vld [vmem:[#allocation8 + $0x1f0] sm:$0xf0]  ;;  %v9070_v36 = vld [vmem:[#allocation8 + $0x1d8] sm:$0xf]  ;;  %v9347_v12 = vor.u32 %v10288_v44, %v9344_v20 }
 0x307   : > { %v4796_v47 = vadd.f32 %v4795_v34, %v4782_v50  ;;  %v9479_v50 = vor.u32 %v10325_v45, %v9478_v13  ;;  %v10184_v34 = vld [vmem:[#allocation8 + $0xcc] sm:$0xf]  ;;  %v9351_v13 = vor.u32 %v10293_v29, %v9350_v42  ;;  %v8936_v44 = vld [vmem:[#allocation8 + $0xf0] sm:$0xf0]  ;;  %v8942_v20 = vld [vmem:[#allocation8 + $0xd8] sm:$0xf] }
 0x308   : > { %v10190_v42 = vld [vmem:[#allocation8 + $0xf4] sm:$0xf0] }
 0x309   : > { %v4813_v63 = vmax.f32 %v4809_v31, %v4796_v47  ;;  %v9440_v31 = vld [vmem:[#allocation8 + $0x4e8] sm:$0xf0]  ;;  %v9446_v47 = vld [vmem:[#allocation8 + $0x4d0] sm:$0xf] }
 0x30a   : > { %v9443_v60 = vor.u32 %v10312_v30, %v9440_v31  ;;  %v9032_v30 = vld [vmem:[#allocation8 + $0x1b0] sm:$0xf0]  ;;  %v9038_v31 = vld [vmem:[#allocation8 + $0x198] sm:$0xf] }
 0x30b   : > { %v4833_v22 = vpack.c.bf16 %v4813_v63, %v4812_v24  ;;  %v10317_v24 = vld [vmem:[#allocation8 + $0x4ec] sm:$0xf0]  ;;  %v9439_v63 = vor.u32 %v10316_v27, %v9438_v21  ;;  %v9067_v27 = vor.u32 %v10217_v54, %v9064_v14  ;;  %v8943_v54 = vor.u32 %v10190_v42, %v8942_v20  ;;  %v10177_v14 = vld [vmem:[#allocation8 + $0x94] sm:$0xf]  ;;  %v9296_v20 = vld [vmem:[#allocation8 + $0x3b8] sm:$0xf0] }
 0x30c   : > { %v9447_v35 = vor.u32 %v10317_v24, %v9446_v47  ;;  %v10213_v21 = vld [vmem:[#allocation8 + $0x1ac] sm:$0xf0]  ;;  %v10214_v47 = vld [vmem:[#allocation8 + $0x1b4] sm:$0xf0] }
 0x30d   : > { %v4838_v4 = vunpack.c.l.b16 %v4833_v22  ;;  %v4839_v19 = vunpack.c.h.b16 %v4833_v22  ;;  %v8931_v22 = vor.u32 %v10184_v34, %v8928_v7  ;;  %v10277_v34 = vld [vmem:[#allocation8 + $0x3ac] sm:$0xf0]  ;;  %v10209_v7 = vld [vmem:[#allocation8 + $0x194] sm:$0xf] }
 0x30e   : > { %v9035_v3 = vor.u32 %v10209_v7, %v9032_v30  ;;  %v8872_v7 = vld [vmem:[#allocation8 + $0x70] sm:$0xf0]  ;;  %v8878_v30 = vld [vmem:[#allocation8 + $0x58] sm:$0xf] }
 0x30f   : > { %v11252_v39 = vpack.c.b16 %v4838_v4, %v4836_v33  ;;  %v11254_v51 = vpack.c.b16 %v4839_v19, %v4837_v53  ;;  %v8896_v33 = vld [vmem:[#allocation8 + $0xa8] sm:$0xf0]  ;;  %v11406_v4 = vld [vmem:[#allocation42_spill] sm:$0xff] }
 0x310   : > { %v10304_v53 = vld [vmem:[#allocation8 + $0x48c] sm:$0xf] }
 0x311   : > { %6010 = vmatmul.bf16.vlgmr.msrb.gmra.mxu2 %v11252_v39  ;;  %6024 = vmatmul.bf16.vlgmr.msrb.gmra.mxu3 %v11254_v51  ;;  %v9408_v19 = vld [vmem:[#allocation8 + $0x4a8] sm:$0xf0] }
 0x312   : > { %6052 = vmatmul.bf16.vlgmr.msra.gmra.mxu1 %v11252_v39  ;;  %6094 = vmatmul.bf16.vlgmr.msrb.gmra.mxu0 %v11252_v39  ;;  %v9411_v16 = vor.u32 %v10304_v53, %v9408_v19  ;;  %v9000_v53 = vld [vmem:[#allocation8 + $0x170] sm:$0xf0]  ;;  %v9006_v19 = vld [vmem:[#allocation8 + $0x158] sm:$0xf] }
 0x313   : > { %6114 = vmatpush.bf16.msrb.mxu2 %v9567_v59  ;;  %6128 = vmatpush.bf16.msrb.mxu3 %v9059_v5  ;;  %v8899_v59 = vor.u32 %v10176_v15, %v8896_v33  ;;  %v9374_v5 = vld [vmem:[#allocation8 + $0x448] sm:$0xf]  ;;  %v10269_v15 = vld [vmem:[#allocation8 + $0x36c] sm:$0xf0]  ;;  %v10201_v33 = vld [vmem:[#allocation8 + $0x154] sm:$0xf] }
 0x314   : > { %6156 = vmatpush.bf16.msra.mxu1 %v9571_v11  ;;  %6198 = vmatpush.bf16.msrb.mxu0 %v9575_v56  ;;  %v9415_v11 = vor.u32 %v10309_v17, %v9414_v18  ;;  %v10168_v56 = vld [vmem:[#allocation8 + $0x4c] sm:$0xf]  ;;  %v10206_v18 = vld [vmem:[#allocation8 + $0x174] sm:$0xf0] }
 0x317   : > { %6115 = vmatpush.bf16.msrb.mxu2 %v9535_v37  ;;  %6129 = vmatpush.bf16.msrb.mxu3 %v9027_v1  ;;  %v9375_v37 = vor.u32 %v10300_v25, %v9374_v5  ;;  %v8867_v1 = vor.u32 %v10168_v56, %v8864_v55  ;;  %v10197_v5 = vld [vmem:[#allocation8 + $0x12c] sm:$0xf0]  ;;  %v9003_v25 = vor.u32 %v10201_v33, %v9000_v53  ;;  %v10193_v55 = vld [vmem:[#allocation8 + $0x114] sm:$0xf]  ;;  %v8846_v53 = vld [vmem:[#allocation8 + $0x18] sm:$0xf] }
 0x318   : > { %6157 = vmatpush.bf16.msra.mxu1 %v9539_v46  ;;  %6199 = vmatpush.bf16.msrb.mxu0 %v9543_v9  ;;  %v8832_v46 = vld [vmem:[#allocation8 + $0x28] sm:$0xf0]  ;;  %v9379_v9 = vor.u32 %v10296_v43, %v9376_v23  ;;  %v10261_v56 = vld [vmem:[#allocation8 + $0x32c] sm:$0xf0]  ;;  %v8968_v43 = vld [vmem:[#allocation8 + $0x130] sm:$0xf0] }
 0x319   : > { %v8974_v23 = vld [vmem:[#allocation8 + $0x118] sm:$0xf]  ;;  %v8840_v33 = vld [vmem:[#allocation8 + $0x30] sm:$0xf0] }
 0x31b   : > { %6116 = vmatpush.bf16.msrb.mxu2 %v9503_v61  ;;  %6130 = vmatpush.bf16.msrb.mxu3 %v8995_v32  ;;  %v10221_v61 = vld [vmem:[#allocation8 + $0x1ec] sm:$0xf0] }
 0x31c   : > { %6158 = vmatpush.bf16.msra.mxu1 %v9507_v2  ;;  %6200 = vmatpush.bf16.msrb.mxu0 %v9511_v6  ;;  %v9318_v32 = vld [vmem:[#allocation8 + $0x3d0] sm:$0xf]  ;;  %v9343_v2 = vor.u32 %v10292_v28, %v9342_v40  ;;  %v8835_v6 = vor.u32 %v10160_v26, %v8832_v46  ;;  %v9063_v45 = vor.u32 %v10221_v61, %v9062_v10 }
 0x31d   : > { %v8971_v28 = vor.u32 %v10193_v55, %v8968_v43  ;;  %v8975_v26 = vor.u32 %v10198_v8, %v8974_v23  ;;  %v9190_v46 = vld [vmem:[#allocation8 + $0x2d0] sm:$0xf]  ;;  %v9328_v55 = vld [vmem:[#allocation8 + $0x3f8] sm:$0xf0] }
 0x31e   : > { %v8902_v61 = vld [vmem:[#allocation8 + $0x90] sm:$0xf] }
 0x31f   : > { %6117 = vmatpush.bf16.msrb.mxu2 %v9471_v62  ;;  %6131 = vmatpush.bf16.msrb.mxu3 %v8963_v41  ;;  %v9319_v62 = vor.u32 %v10285_v48, %v9318_v32  ;;  %v9030_v41 = vld [vmem:[#allocation8 + $0x190] sm:$0xf] }
 0x320   : > { %6159 = vmatpush.bf16.msra.mxu1 %v9475_v52  ;;  %6201 = vmatpush.bf16.msrb.mxu0 %v9479_v50  ;;  %v9071_v52 = vor.u32 %v10222_v38, %v9070_v36  ;;  %v9286_v50 = vld [vmem:[#allocation8 + $0x390] sm:$0xf]  ;;  %v9031_v24 = vor.u32 %v10213_v21, %v9030_v41  ;;  %v8904_v36 = vld [vmem:[#allocation8 + $0xb0] sm:$0xf0]  ;;  %v8910_v38 = vld [vmem:[#allocation8 + $0x98] sm:$0xf] }
 0x321   : > { %6066 = vmatmul.bf16.vlgmr.msra.gmra.mxu2 %v11254_v51  ;;  %6080 = vmatmul.bf16.vlgmr.msra.gmra.mxu3 %v11406_v4  ;;  %v10181_v32 = vld [vmem:[#allocation8 + $0xac] sm:$0xf0]  ;;  %v8907_v21 = vor.u32 %v10177_v14, %v8904_v36  ;;  %v10270_v14 = vld [vmem:[#allocation8 + $0x374] sm:$0xf0]  ;;  %v10266_v36 = vld [vmem:[#allocation8 + $0x35c] sm:$0xf] }
 0x322   : > { %6108 = vmatmul.bf16.vlgmr.msrb.gmra.mxu1 %v11254_v51  ;;  %6150 = vmatmul.bf16.vlgmr.msra.gmra.mxu0 %v11254_v51  ;;  %v10173_v41 = vld [vmem:[#allocation8 + $0x6c] sm:$0xf0] }
 0x323   : > { %6118 = vmatpush.bf16.msrb.mxu2 %v9439_v63  ;;  %6132 = vmatpush.bf16.msrb.mxu3 %v8931_v22  ;;  %v9287_v63 = vor.u32 %v10277_v34, %v9286_v50  ;;  %v8998_v22 = vld [vmem:[#allocation8 + $0x150] sm:$0xf]  ;;  %v10169_v34 = vld [vmem:[#allocation8 + $0x54] sm:$0xf] }
 0x324   : > { %6160 = vmatpush.bf16.msra.mxu1 %v9443_v60  ;;  %6202 = vmatpush.bf16.msrb.mxu0 %v9447_v35  ;;  %v9039_v60 = vor.u32 %v10214_v47, %v9038_v31  ;;  %v9254_v35 = vld [vmem:[#allocation8 + $0x350] sm:$0xf]  ;;  %v8999_v17 = vor.u32 %v10205_v57, %v8998_v22  ;;  %v10174_v31 = vld [vmem:[#allocation8 + $0x74] sm:$0xf0] }
 0x325   : > { %v10237_v50 = vld [vmem:[#allocation8 + $0x26c] sm:$0xf0] }
 0x326   : > { %v8838_v47 = vld [vmem:[#allocation8 + $0x10] sm:$0xf] }
 0x327   : > { %6119 = vmatpush.bf16.msrb.mxu2 %v9407_v49  ;;  %6133 = vmatpush.bf16.msrb.mxu3 %v8899_v59  ;;  %v9255_v49 = vor.u32 %v10269_v15, %v9254_v35  ;;  %v8966_v59 = vld [vmem:[#allocation8 + $0x110] sm:$0xf]  ;;  %v8879_v35 = vor.u32 %v10174_v31, %v8878_v30  ;;  %v10161_v15 = vld [vmem:[#allocation8 + $0x14] sm:$0xf]  ;;  %v9232_v30 = vld [vmem:[#allocation8 + $0x338] sm:$0xf0] }
 0x328   : > { %6161 = vmatpush.bf16.msra.mxu1 %v9411_v16  ;;  %6203 = vmatpush.bf16.msrb.mxu0 %v9415_v11  ;;  %v9007_v16 = vor.u32 %v10206_v18, %v9006_v19  ;;  %v9222_v11 = vld [vmem:[#allocation8 + $0x310] sm:$0xf]  ;;  %v8967_v0 = vor.u32 %v10197_v5, %v8966_v59  ;;  %v10166_v19 = vld [vmem:[#allocation8 + $0x34] sm:$0xf0]  ;;  %v10281_v18 = vld [vmem:[#allocation8 + $0x3d4] sm:$0xf]  ;;  %v8843_v43 = vor.u32 %v10161_v15, %v8840_v33 }
 0x329   : > { %v9223_v40 = vor.u32 %v10261_v56, %v9222_v11  ;;  %v10165_v22 = vld [vmem:[#allocation8 + $0x2c] sm:$0xf0]  ;;  %v9576_v59 = vld [vmem:[#allocation8 + $0x5f0] sm:$0xf0]  ;;  %v9326_v5 = vld [vmem:[#allocation8 + $0x3d8] sm:$0xf]  ;;  %v8847_v23 = vor.u32 %v10166_v19, %v8846_v53 }
 0x32a   : > { %v9094_v57 = vld [vmem:[#allocation8 + $0x210] sm:$0xf]  ;;  %v10286_v11 = vld [vmem:[#allocation8 + $0x3f4] sm:$0xf0]  ;;  %v10282_v56 = vld [vmem:[#allocation8 + $0x3dc] sm:$0xf] }
 0x32b   : > { %6120 = vmatpush.bf16.msrb.mxu2 %v9375_v37  ;;  %6134 = vmatpush.bf16.msrb.mxu3 %v8867_v1  ;;  %v8934_v37 = vld [vmem:[#allocation8 + $0xd0] sm:$0xf]  ;;  %v10254_v15 = vld [vmem:[#allocation8 + $0x2f4] sm:$0xf0]  ;;  %v10250_v33 = vld [vmem:[#allocation8 + $0x2dc] sm:$0xf] }
 0x32c   : > { %6162 = vmatpush.bf16.msra.mxu1 %v9379_v9  ;;  %6204 = vmatpush.bf16.msrb.mxu0 %v9383_v58  ;;  %v10189_v1 = vld [vmem:[#allocation8 + $0xec] sm:$0xf0]  ;;  %v10185_v58 = vld [vmem:[#allocation8 + $0xd4] sm:$0xf]  ;;  %v9200_v53 = vld [vmem:[#allocation8 + $0x2f8] sm:$0xf0] }
 0x32d   : > { %v10253_v9 = vld [vmem:[#allocation8 + $0x2ec] sm:$0xf0]  ;;  %v8935_v29 = vor.u32 %v10189_v1, %v8934_v37  ;;  %v8939_v48 = vor.u32 %v10185_v58, %v8936_v44  ;;  %v9288_v37 = vld [vmem:[#allocation8 + $0x3b0] sm:$0xf0]  ;;  %v9327_v1 = vor.u32 %v10286_v11, %v9326_v5  ;;  %v10278_v58 = vld [vmem:[#allocation8 + $0x3b4] sm:$0xf0]  ;;  %v9203_v5 = vor.u32 %v10250_v33, %v9200_v53 }
 0x32e   : > { %v9191_v10 = vor.u32 %v10253_v9, %v9190_v46  ;;  %v9544_v46 = vld [vmem:[#allocation8 + $0x5b0] sm:$0xf0]  ;;  %v9294_v9 = vld [vmem:[#allocation8 + $0x398] sm:$0xf]  ;;  %v10274_v44 = vld [vmem:[#allocation8 + $0x39c] sm:$0xf] }
 0x32f   : > { %6121 = vmatpush.bf16.msrb.mxu2 %v9343_v2  ;;  %6135 = vmatpush.bf16.msrb.mxu3 %v8835_v6  ;;  %v9158_v2 = vld [vmem:[#allocation8 + $0x290] sm:$0xf]  ;;  %v9166_v11 = vld [vmem:[#allocation8 + $0x298] sm:$0xf]  ;;  %v10202_v53 = vld [vmem:[#allocation8 + $0x15c] sm:$0xf] }
 0x330   : > { %6163 = vmatpush.bf16.msra.mxu1 %v9347_v12  ;;  %6205 = vmatpush.bf16.msrb.mxu0 %v9351_v13  ;;  %v10245_v6 = vld [vmem:[#allocation8 + $0x2ac] sm:$0xf0]  ;;  %v10182_v12 = vld [vmem:[#allocation8 + $0xb4] sm:$0xf0]  ;;  %v8903_v13 = vor.u32 %v10181_v32, %v8902_v61  ;;  %v9256_v61 = vld [vmem:[#allocation8 + $0x370] sm:$0xf0]  ;;  %v9295_v32 = vor.u32 %v10278_v58, %v9294_v9 }
 0x331   : > { %v10238_v9 = vld [vmem:[#allocation8 + $0x274] sm:$0xf0]  ;;  %v10234_v58 = vld [vmem:[#allocation8 + $0x25c] sm:$0xf] }
 0x332   : > { %6122 = vmatmul.bf16.vlgmr.msrb.gmra.mxu2 %v11406_v4  ;;  %6136 = vmatmul.bf16.vlgmr.msrb.gmra.mxu3 %v11252_v39  ;;  %v10334_v33 = vld [vmem:[#allocation8 + $0x574] sm:$0xf0] }
 0x333   : > { %6170 = vmatpush.bf16.msra.mxu2 %v9063_v45  ;;  %6184 = vmatpush.bf16.msra.mxu3 %v9319_v62  ;;  %v9159_v45 = vor.u32 %v10245_v6, %v9158_v2  ;;  %v8870_v62 = vld [vmem:[#allocation8 + $0x50] sm:$0xf]  ;;  %v9512_v2 = vld [vmem:[#allocation8 + $0x570] sm:$0xf0]  ;;  %v9262_v6 = vld [vmem:[#allocation8 + $0x358] sm:$0xf] }
 0x334   : > { %6212 = vmatpush.bf16.msrb.mxu1 %v9067_v27  ;;  %6254 = vmatpush.bf16.msra.mxu0 %v9071_v52  ;;  %v8911_v27 = vor.u32 %v10182_v12, %v8910_v38  ;;  %v9126_v52 = vld [vmem:[#allocation8 + $0x250] sm:$0xf]  ;;  %v9264_v38 = vld [vmem:[#allocation8 + $0x378] sm:$0xf0] }
 0x335   : > { %6164 = vmatmul.bf16.vlgmr.msra.gmra.mxu1 %v11406_v4  ;;  %6206 = vmatmul.bf16.vlgmr.msrb.gmra.mxu0 %v11406_v4 }
 0x337   : > { %6171 = vmatpush.bf16.msra.mxu2 %v9031_v24  ;;  %6185 = vmatpush.bf16.msra.mxu3 %v9287_v63  ;;  %v8871_v24 = vor.u32 %v10173_v41, %v8870_v62  ;;  %v9127_v63 = vor.u32 %v10237_v50, %v9126_v52  ;;  %v9224_v62 = vld [vmem:[#allocation8 + $0x330] sm:$0xf0]  ;;  %v9263_v41 = vor.u32 %v10270_v14, %v9262_v6  ;;  %v9230_v50 = vld [vmem:[#allocation8 + $0x318] sm:$0xf]  ;;  %v10226_v14 = vld [vmem:[#allocation8 + $0x21c] sm:$0xf] }
 0x338   : > { %6213 = vmatpush.bf16.msrb.mxu1 %v9035_v3  ;;  %6255 = vmatpush.bf16.msra.mxu0 %v9039_v60  ;;  %v10229_v3 = vld [vmem:[#allocation8 + $0x22c] sm:$0xf0]  ;;  %v8875_v60 = vor.u32 %v10169_v34, %v8872_v7  ;;  %v9480_v52 = vld [vmem:[#allocation8 + $0x530] sm:$0xf0]  ;;  %v10262_v34 = vld [vmem:[#allocation8 + $0x334] sm:$0xf0] }
 0x339   : > { %v10258_v7 = vld [vmem:[#allocation8 + $0x31c] sm:$0xf]  ;;  %v10230_v6 = vld [vmem:[#allocation8 + $0x234] sm:$0xf0] }
 0x33b   : > { %6172 = vmatpush.bf16.msra.mxu2 %v8999_v17  ;;  %6186 = vmatpush.bf16.msra.mxu3 %v9255_v49  ;;  %v9320_v17 = vld [vmem:[#allocation8 + $0x3f0] sm:$0xf0] }
 0x33c   : > { %6214 = vmatpush.bf16.msrb.mxu1 %v9003_v25  ;;  %6256 = vmatpush.bf16.msra.mxu0 %v9007_v16  ;;  %v10345_v49 = vld [vmem:[#allocation8 + $0x5d4] sm:$0xf]  ;;  %v8839_v25 = vor.u32 %v10165_v22, %v8838_v47  ;;  %v9095_v16 = vor.u32 %v10229_v3, %v9094_v57  ;;  %v9323_v8 = vor.u32 %v10281_v18, %v9320_v17 }
 0x33d   : > { %v9231_v22 = vor.u32 %v10262_v34, %v9230_v50  ;;  %v9235_v57 = vor.u32 %v10258_v7, %v9232_v30  ;;  %v10313_v3 = vld [vmem:[#allocation8 + $0x4d4] sm:$0xf]  ;;  %v9550_v30 = vld [vmem:[#allocation8 + $0x598] sm:$0xf] }
 0x33e   : > { %v10241_v17 = vld [vmem:[#allocation8 + $0x294] sm:$0xf] }
 0x33f   : > { %6173 = vmatpush.bf16.msra.mxu2 %v8967_v0  ;;  %6187 = vmatpush.bf16.msra.mxu3 %v9223_v40  ;;  %v9579_v0 = vor.u32 %v10345_v49, %v9576_v59  ;;  %v10273_v40 = vld [vmem:[#allocation8 + $0x394] sm:$0xf] }
 0x340   : > { %6215 = vmatpush.bf16.msrb.mxu1 %v8971_v28  ;;  %6257 = vmatpush.bf16.msra.mxu0 %v8975_v26  ;;  %v9331_v28 = vor.u32 %v10282_v56, %v9328_v55  ;;  %v10337_v26 = vld [vmem:[#allocation8 + $0x594] sm:$0xf]  ;;  %v9291_v42 = vor.u32 %v10273_v40, %v9288_v37  ;;  %v10246_v56 = vld [vmem:[#allocation8 + $0x2b4] sm:$0xf0]  ;;  %v10242_v55 = vld [vmem:[#allocation8 + $0x29c] sm:$0xf] }
 0x341   : > { %v9160_v49 = vld [vmem:[#allocation8 + $0x2b0] sm:$0xf0]  ;;  %v9167_v37 = vor.u32 %v10246_v56, %v9166_v11  ;;  %v10194_v11 = vld [vmem:[#allocation8 + $0x11c] sm:$0xf] }
 0x342   : > { %v9128_v40 = vld [vmem:[#allocation8 + $0x270] sm:$0xf0]  ;;  %v8976_v56 = vld [vmem:[#allocation8 + $0x138] sm:$0xf0] }
 0x343   : > { %6174 = vmatpush.bf16.msra.mxu2 %v8935_v29  ;;  %6188 = vmatpush.bf16.msra.mxu3 %v9191_v10  ;;  %v9547_v29 = vor.u32 %v10337_v26, %v9544_v46  ;;  %v10265_v10 = vld [vmem:[#allocation8 + $0x354] sm:$0xf]  ;;  %v9134_v46 = vld [vmem:[#allocation8 + $0x258] sm:$0xf] }
 0x344   : > { %6216 = vmatpush.bf16.msrb.mxu1 %v8939_v48  ;;  %6258 = vmatpush.bf16.msra.mxu0 %v8943_v54  ;;  %v9299_v48 = vor.u32 %v10274_v44, %v9296_v20  ;;  %v10329_v54 = vld [vmem:[#allocation8 + $0x554] sm:$0xf]  ;;  %v9259_v12 = vor.u32 %v10265_v10, %v9256_v61  ;;  %v9136_v44 = vld [vmem:[#allocation8 + $0x278] sm:$0xf0] }
 0x345   : > { %v9384_v26 = vld [vmem:[#allocation8 + $0x470] sm:$0xf0] }
 0x346   : > { %v9096_v10 = vld [vmem:[#allocation8 + $0x230] sm:$0xf0] }
 0x347   : > { %6175 = vmatpush.bf16.msra.mxu2 %v8903_v13  ;;  %6189 = vmatpush.bf16.msra.mxu3 %v9159_v45  ;;  %v9515_v13 = vor.u32 %v10329_v54, %v9512_v2  ;;  %v10257_v45 = vld [vmem:[#allocation8 + $0x314] sm:$0xf]  ;;  %v9102_v2 = vld [vmem:[#allocation8 + $0x218] sm:$0xf] }
 0x348   : > { %6217 = vmatpush.bf16.msrb.mxu1 %v8907_v21  ;;  %6259 = vmatpush.bf16.msra.mxu0 %v8911_v27  ;;  %v9267_v21 = vor.u32 %v10266_v36, %v9264_v38  ;;  %v10321_v27 = vld [vmem:[#allocation8 + $0x514] sm:$0xf]  ;;  %v9227_v31 = vor.u32 %v10257_v45, %v9224_v62  ;;  %v9104_v36 = vld [vmem:[#allocation8 + $0x238] sm:$0xf0]  ;;  %v9582_v38 = vld [vmem:[#allocation8 + $0x5d8] sm:$0xf] }
 0x349   : > { %v9483_v47 = vor.u32 %v10321_v27, %v9480_v52  ;;  %v10289_v61 = vld [vmem:[#allocation8 + $0x414] sm:$0xf]  ;;  %v9072_v45 = vld [vmem:[#allocation8 + $0x1f8] sm:$0xf0]  ;;  %v9103_v52 = vor.u32 %v10230_v6, %v9102_v2  ;;  %v9107_v50 = vor.u32 %v10226_v14, %v9104_v36  ;;  %v10302_v6 = vld [vmem:[#allocation8 + $0x474] sm:$0xf0] }
 0x34a   : > { %v9352_v54 = vld [vmem:[#allocation8 + $0x430] sm:$0xf0]  ;;  %v9584_v27 = vld [vmem:[#allocation8 + $0x5f8] sm:$0xf0] }
 0x34b   : > { %6176 = vmatpush.bf16.msra.mxu2 %v8871_v24  ;;  %6190 = vmatpush.bf16.msra.mxu3 %v9127_v63  ;;  %v10249_v24 = vld [vmem:[#allocation8 + $0x2d4] sm:$0xf]  ;;  %v10170_v14 = vld [vmem:[#allocation8 + $0x5c] sm:$0xf] }
 0x34c   : > { %6218 = vmatpush.bf16.msrb.mxu1 %v8875_v60  ;;  %6260 = vmatpush.bf16.msra.mxu0 %v8879_v35  ;;  %v9192_v63 = vld [vmem:[#allocation8 + $0x2f0] sm:$0xf0]  ;;  %v9198_v35 = vld [vmem:[#allocation8 + $0x2d8] sm:$0xf]  ;;  %v8880_v36 = vld [vmem:[#allocation8 + $0x78] sm:$0xf0] }
 0x34d   : > { %v9448_v60 = vld [vmem:[#allocation8 + $0x4f0] sm:$0xf0]  ;;  %v9195_v19 = vor.u32 %v10249_v24, %v9192_v63  ;;  %v9199_v59 = vor.u32 %v10254_v15, %v9198_v35  ;;  %v10210_v24 = vld [vmem:[#allocation8 + $0x19c] sm:$0xf]  ;;  %v9518_v35 = vld [vmem:[#allocation8 + $0x558] sm:$0xf] }
 0x34e   : > { %v9451_v18 = vor.u32 %v10313_v3, %v9448_v60  ;;  %v9040_v63 = vld [vmem:[#allocation8 + $0x1b8] sm:$0xf0] }
 0x34f   : > { %6177 = vmatpush.bf16.msra.mxu2 %v8839_v25  ;;  %6191 = vmatpush.bf16.msra.mxu3 %v9095_v16  ;;  %v10305_v25 = vld [vmem:[#allocation8 + $0x494] sm:$0xf]  ;;  %v9043_v60 = vor.u32 %v10210_v24, %v9040_v63 }
 0x350   : > { %6219 = vmatpush.bf16.msrb.mxu1 %v8843_v43  ;;  %6261 = vmatpush.bf16.msra.mxu0 %v8847_v23  ;;  %v9416_v16 = vld [vmem:[#allocation8 + $0x4b0] sm:$0xf0]  ;;  %v9168_v43 = vld [vmem:[#allocation8 + $0x2b8] sm:$0xf0]  ;;  %v9163_v23 = vor.u32 %v10241_v17, %v9160_v49  ;;  %v9519_v49 = vor.u32 %v10334_v33, %v9518_v35 }
 0x351   : > { %v9520_v17 = vld [vmem:[#allocation8 + $0x578] sm:$0xf0] }
 0x352   : > { %6178 = vmatmul.bf16.vlgmr.msra.gmra.mxu2 %v11252_v39  ;;  %6192 = vmatmul.bf16.vlgmr.msra.gmra.mxu3 %v11254_v51 }
 0x353   : > { %6226 = vmatpush.bf16.msrb.mxu2 %v9323_v8  ;;  %6240 = vmatpush.bf16.msrb.mxu3 %v9579_v0  ;;  %v9419_v8 = vor.u32 %v10305_v25, %v9416_v16  ;;  %v10233_v0 = vld [vmem:[#allocation8 + $0x254] sm:$0xf]  ;;  %v10326_v16 = vld [vmem:[#allocation8 + $0x534] sm:$0xf0] }
 0x354   : > { %6268 = vmatpush.bf16.msra.mxu1 %v9327_v1  ;;  %6310 = vmatpush.bf16.msrb.mxu0 %v9331_v28  ;;  %v9171_v1 = vor.u32 %v10242_v55, %v9168_v43  ;;  %v10297_v28 = vld [vmem:[#allocation8 + $0x454] sm:$0xf]  ;;  %v9131_v20 = vor.u32 %v10233_v0, %v9128_v40  ;;  %v10322_v55 = vld [vmem:[#allocation8 + $0x51c] sm:$0xf]  ;;  %v9454_v0 = vld [vmem:[#allocation8 + $0x4d8] sm:$0xf] }
 0x355   : > { %6220 = vmatmul.bf16.vlgmr.msrb.gmra.mxu1 %v11252_v39  ;;  %6262 = vmatmul.bf16.vlgmr.msra.gmra.mxu0 %v11252_v39  ;;  %v9488_v43 = vld [vmem:[#allocation8 + $0x538] sm:$0xf0] }
 0x356   : > { %v9491_v40 = vor.u32 %v10322_v55, %v9488_v43 }
 0x357   : > { %6227 = vmatpush.bf16.msrb.mxu2 %v9291_v42  ;;  %6241 = vmatpush.bf16.msrb.mxu3 %v9547_v29  ;;  %v9387_v42 = vor.u32 %v10297_v28, %v9384_v26  ;;  %v10225_v29 = vld [vmem:[#allocation8 + $0x214] sm:$0xf]  ;;  %v10314_v28 = vld [vmem:[#allocation8 + $0x4dc] sm:$0xf] }
 0x358   : > { %6269 = vmatpush.bf16.msra.mxu1 %v9295_v32  ;;  %6311 = vmatpush.bf16.msrb.mxu0 %v9299_v48  ;;  %v9135_v32 = vor.u32 %v10238_v9, %v9134_v46  ;;  %v9139_v48 = vor.u32 %v10234_v58, %v9136_v44  ;;  %v9099_v62 = vor.u32 %v10225_v29, %v9096_v10  ;;  %v9456_v26 = vld [vmem:[#allocation8 + $0x4f8] sm:$0xf0]  ;;  %v9422_v58 = vld [vmem:[#allocation8 + $0x498] sm:$0xf] }
 0x359   : > { %v9459_v44 = vor.u32 %v10314_v28, %v9456_v26  ;;  %v8912_v29 = vld [vmem:[#allocation8 + $0xb8] sm:$0xf0] }
 0x35a   : > { %v10306_v10 = vld [vmem:[#allocation8 + $0x49c] sm:$0xf] }
 0x35b   : > { %6228 = vmatpush.bf16.msrb.mxu2 %v9259_v12  ;;  %6242 = vmatpush.bf16.msrb.mxu3 %v9515_v13  ;;  %v10350_v12 = vld [vmem:[#allocation8 + $0x5f4] sm:$0xf0]  ;;  %v10218_v13 = vld [vmem:[#allocation8 + $0x1dc] sm:$0xf] }
 0x35c   : > { %6270 = vmatpush.bf16.msra.mxu1 %v9263_v41  ;;  %6312 = vmatpush.bf16.msrb.mxu0 %v9267_v21  ;;  %v9355_v41 = vor.u32 %v10289_v61, %v9352_v54  ;;  %v10346_v21 = vld [vmem:[#allocation8 + $0x5dc] sm:$0xf]  ;;  %v9583_v34 = vor.u32 %v10350_v12, %v9582_v38  ;;  %v9075_v7 = vor.u32 %v10218_v13, %v9072_v45  ;;  %v9390_v54 = vld [vmem:[#allocation8 + $0x458] sm:$0xf] }
 0x35d   : > { %v9424_v61 = vld [vmem:[#allocation8 + $0x4b8] sm:$0xf0]  ;;  %v9391_v13 = vor.u32 %v10302_v6, %v9390_v54  ;;  %v8883_v45 = vor.u32 %v10170_v14, %v8880_v36 }
 0x35e   : > { %v9427_v2 = vor.u32 %v10306_v10, %v9424_v61  ;;  %v10298_v38 = vld [vmem:[#allocation8 + $0x45c] sm:$0xf] }
 0x35f   : > { %6229 = vmatpush.bf16.msrb.mxu2 %v9227_v31  ;;  %6243 = vmatpush.bf16.msrb.mxu3 %v9483_v47  ;;  %v9587_v31 = vor.u32 %v10346_v21, %v9584_v27  ;;  %v10342_v47 = vld [vmem:[#allocation8 + $0x5b4] sm:$0xf0]  ;;  %v9392_v12 = vld [vmem:[#allocation8 + $0x478] sm:$0xf0] }
 0x360   : > { %6271 = vmatpush.bf16.msra.mxu1 %v9231_v22  ;;  %6313 = vmatpush.bf16.msrb.mxu0 %v9235_v57  ;;  %v10338_v22 = vld [vmem:[#allocation8 + $0x59c] sm:$0xf]  ;;  %v9551_v3 = vor.u32 %v10342_v47, %v9550_v30  ;;  %v10294_v21 = vld [vmem:[#allocation8 + $0x434] sm:$0xf0]  ;;  %v6039_v47 = vpop.f32.mrf.mxu0 }
 0x361   : > { %v9552_v57 = vld [vmem:[#allocation8 + $0x5b8] sm:$0xf0] }
 0x362   : > { %v9555_v15 = vor.u32 %v10338_v22, %v9552_v57  ;;  %v10162_v27 = vld [vmem:[#allocation8 + $0x1c] sm:$0xf] }
 0x363   : > { %6230 = vmatpush.bf16.msrb.mxu2 %v9195_v19  ;;  %6244 = vmatpush.bf16.msrb.mxu3 %v9451_v18  ;;  %v9008_v19 = vld [vmem:[#allocation8 + $0x178] sm:$0xf0] }
 0x364   : > { %6272 = vmatpush.bf16.msra.mxu1 %v9199_v59  ;;  %6314 = vmatpush.bf16.msrb.mxu0 %v9203_v5  ;;  %v10330_v18 = vld [vmem:[#allocation8 + $0x55c] sm:$0xf]  ;;  %v9011_v59 = vor.u32 %v10202_v53, %v9008_v19  ;;  %v9486_v5 = vld [vmem:[#allocation8 + $0x518] sm:$0xf] }
 0x365   : > { %v9523_v25 = vor.u32 %v10330_v18, %v9520_v17 }
 0x367   : > { %6231 = vmatpush.bf16.msrb.mxu2 %v9163_v23  ;;  %6245 = vmatpush.bf16.msrb.mxu3 %v9419_v8  ;;  %v9487_v23 = vor.u32 %v10326_v16, %v9486_v5  ;;  %v8979_v8 = vor.u32 %v10194_v11, %v8976_v56 }
 0x368   : > { %6273 = vmatpush.bf16.msra.mxu1 %v9167_v37  ;;  %6315 = vmatpush.bf16.msrb.mxu0 %v9171_v1  ;;  %v10186_v37 = vld [vmem:[#allocation8 + $0xdc] sm:$0xf] }
 0x369   : > { %v8944_v1 = vld [vmem:[#allocation8 + $0xf8] sm:$0xf0] }
 0x36a   : > { %v8947_v9 = vor.u32 %v10186_v37, %v8944_v1 }
 0x36b   : > { %6232 = vmatpush.bf16.msrb.mxu2 %v9131_v20  ;;  %6246 = vmatpush.bf16.msrb.mxu3 %v9387_v42  ;;  %v10310_v20 = vld [vmem:[#allocation8 + $0x4b4] sm:$0xf0]  ;;  %v10178_v42 = vld [vmem:[#allocation8 + $0x9c] sm:$0xf] }
 0x36c   : > { %6274 = vmatpush.bf16.msra.mxu1 %v9135_v32  ;;  %6316 = vmatpush.bf16.msrb.mxu0 %v9139_v48  ;;  %v9423_v32 = vor.u32 %v10310_v20, %v9422_v58  ;;  %v8915_v48 = vor.u32 %v10178_v42, %v8912_v29 }
 0x36f   : > { %6233 = vmatpush.bf16.msrb.mxu2 %v9099_v62  ;;  %6247 = vmatpush.bf16.msrb.mxu3 %v9355_v41  ;;  %v9358_v62 = vld [vmem:[#allocation8 + $0x418] sm:$0xf]  ;;  %v9395_v41 = vor.u32 %v10298_v38, %v9392_v12 }
 0x370   : > { %6275 = vmatpush.bf16.msra.mxu1 %v9103_v52  ;;  %6317 = vmatpush.bf16.msrb.mxu0 %v9107_v50  ;;  %v8848_v52 = vld [vmem:[#allocation8 + $0x38] sm:$0xf0] }
 0x371   : > { %v10290_v50 = vld [vmem:[#allocation8 + $0x41c] sm:$0xf]  ;;  %v8851_v30 = vor.u32 %v10162_v27, %v8848_v52  ;;  %v6350_v52 = vld [vmem:[#allocation10] sm:$0x3] }
 0x372   : > { %6234 = vmatmul.bf16.vlgmr.msrb.gmra.mxu2 %v11254_v51  ;;  %6248 = vmatmul.bf16.vlgmr.msrb.gmra.mxu3 %v11406_v4 }
 0x373   : > { %6282 = vmatpush.bf16.msra.mxu2 %v9583_v34  ;;  %6296 = vmatpush.bf16.msra.mxu3 %v9075_v7  ;;  %v9360_v34 = vld [vmem:[#allocation8 + $0x438] sm:$0xf0]  ;;  %v9359_v7 = vor.u32 %v10294_v21, %v9358_v62 }
 0x374   : > { %6324 = vmatpush.bf16.msrb.mxu1 %v9587_v31  ;;  %6318 = vmatmul.bf16.vlgmr.msrb.gmra.mxu0 %v11254_v51  ;;  %v9363_v31 = vor.u32 %v10290_v50, %v9360_v34 }
 0x375   : > { %6276 = vmatmul.bf16.vlgmr.msra.gmra.mxu1 %v11254_v51  ;;  %v10318_v51 = vld [vmem:[#allocation8 + $0x4f4] sm:$0xf0] }
 0x376   : > { %v9455_v46 = vor.u32 %v10318_v51, %v9454_v0 }
 0x377   : > { %6283 = vmatpush.bf16.msra.mxu2 %v9551_v3  ;;  %6297 = vmatpush.bf16.msra.mxu3 %v9043_v60 }
 0x378   : > { %6325 = vmatpush.bf16.msrb.mxu1 %v9555_v15  ;;  %v6041_v15 = vpop.f32.mrf.mxu0 }
 0x37b   : > { %6284 = vmatpush.bf16.msra.mxu2 %v9519_v49  ;;  %6298 = vmatpush.bf16.msra.mxu3 %v9011_v59 }
 0x37c   : > { %6326 = vmatpush.bf16.msrb.mxu1 %v9523_v25 }
 0x37f   : > { %6285 = vmatpush.bf16.msra.mxu2 %v9487_v23  ;;  %6299 = vmatpush.bf16.msra.mxu3 %v8979_v8 }
 0x380   : > { %6327 = vmatpush.bf16.msrb.mxu1 %v9491_v40 }
 0x383   : > { %6286 = vmatpush.bf16.msra.mxu2 %v9455_v46  ;;  %6300 = vmatpush.bf16.msra.mxu3 %v8947_v9 }
 0x384   : > { %6328 = vmatpush.bf16.msrb.mxu1 %v9459_v44 }
 0x387   : > { %6287 = vmatpush.bf16.msra.mxu2 %v9423_v32  ;;  %6301 = vmatpush.bf16.msra.mxu3 %v8915_v48 }
 0x388   : > { %6329 = vmatpush.bf16.msrb.mxu1 %v9427_v2 }
 0x38b   : > { %6288 = vmatpush.bf16.msra.mxu2 %v9391_v13  ;;  %6302 = vmatpush.bf16.msra.mxu3 %v8883_v45 }
 0x38c   : > { %6330 = vmatpush.bf16.msrb.mxu1 %v9395_v41 }
 0x38f   : > { %6289 = vmatpush.bf16.msra.mxu2 %v9359_v7  ;;  %6303 = vmatpush.bf16.msra.mxu3 %v8851_v30  ;;  %v6053_v53 = vpop.f32.mrf.mxu1  ;;  %v6095_v18 = vpop.f32.mrf.mxu0 }
 0x390   : > { %6331 = vmatpush.bf16.msrb.mxu1 %v9363_v31 }
 0x392   : > { %6290 = vmatmul.bf16.vlgmr.msra.gmra.mxu2 %v11406_v4  ;;  %6304 = vmatmul.bf16.vlgmr.msra.gmra.mxu3 %v11252_v39 }
 0x393   : > { %6332 = vmatmul.bf16.vlgmr.msrb.gmra.mxu1 %v11406_v4 }
 0x394   : > { %v6011_v24 = vpop.f32.mrf.mxu2  ;;  %v6025_v63 = vpop.f32.mrf.mxu3 }
 0x395   : > { %v6026_v22 = vadd.f32 %v6025_v63, %v6011_v24 }
 0x397   : > { %v11279_v57 = vadd.f32 %v6039_v47, %v6026_v22  ;;  %v6055_v19 = vpop.f32.mrf.mxu1  ;;  %v6097_v59 = vpop.f32.mrf.mxu0 }
 0x39c   : > { %v6013_v3 = vpop.f32.mrf.mxu2  ;;  %v6027_v60 = vpop.f32.mrf.mxu3 }
 0x39d   : > { %v6028_v35 = vadd.f32 %v6027_v60, %v6013_v3 }
 0x39f   : > { %v11281_v33 = vadd.f32 %v6041_v15, %v6028_v35  ;;  %v6109_v17 = vpop.f32.mrf.mxu1  ;;  %v6151_v16 = vpop.f32.mrf.mxu0  ;;  %v6352_v35 = vperm.slane %v6350_v52, 0  ;;  %v6353_v15 = vperm.slane %v6350_v52, 1 }
 0x3a0   : > { %v6110_v54 = vadd.f32 %v6109_v17, %v6095_v18 }
 0x3a4   : > { %v6067_v49 = vpop.f32.mrf.mxu2  ;;  %v6081_v39 = vpop.f32.mrf.mxu3 }
 0x3a5   : > { %v6068_v6 = vadd.f32 %v6067_v49, %v6053_v53 }
 0x3a7   : > { %v6111_v4 = vpop.f32.mrf.mxu1  ;;  %v6153_v43 = vpop.f32.mrf.mxu0  ;;  %v6082_v45 = vadd.f32 %v6081_v39, %v6068_v6 }
 0x3a8   : > { %v6112_v50 = vadd.f32 %v6111_v4, %v6097_v59 }
 0x3ac   : > { %v6069_v5 = vpop.f32.mrf.mxu2  ;;  %v6083_v25 = vpop.f32.mrf.mxu3 }
 0x3ad   : > { %v6070_v3 = vadd.f32 %v6069_v5, %v6055_v19 }
 0x3af   : > { %v6084_v59 = vadd.f32 %v6083_v25, %v6070_v3 }
 0x3b2   : > { %v6165_v11 = vpop.f32.mrf.mxu1  ;;  %v6207_v40 = vpop.f32.mrf.mxu0 }
 0x3b5   : > { %v6123_v56 = vpop.f32.mrf.mxu2  ;;  %v6137_v55 = vpop.f32.mrf.mxu3 }
 0x3b6   : > { %v6152_v61 = vadd.f32 %v6151_v16, %v6137_v55  ;;  %v6124_v14 = vadd.f32 %v6123_v56, %v6110_v54 }
 0x3b8   : > { %v6166_v38 = vadd.f32 %v6165_v11, %v6152_v61  ;;  %v6338_v62 = vmax.f32 %v11279_v57, %v6124_v14 }
 0x3ba   : > { %v6167_v23 = vpop.f32.mrf.mxu1  ;;  %v6209_v28 = vpop.f32.mrf.mxu0  ;;  %v6339_v7 = vmax.f32 %v6082_v45, %v6166_v38 }
 0x3bd   : > { %v6125_v8 = vpop.f32.mrf.mxu2  ;;  %v6139_v0 = vpop.f32.mrf.mxu3 }
 0x3be   : > { %v6154_v34 = vadd.f32 %v6153_v43, %v6139_v0  ;;  %v6126_v60 = vadd.f32 %v6125_v8, %v6112_v50 }
 0x3c0   : > { %v6168_v49 = vadd.f32 %v6167_v23, %v6154_v34  ;;  %v6340_v4 = vmax.f32 %v11281_v33, %v6126_v60 }
 0x3d2   : > { %v6221_v51 = vpop.f32.mrf.mxu1  ;;  %v6263_v58 = vpop.f32.mrf.mxu0 }
 0x3d5   : > { %v6179_v37 = vpop.f32.mrf.mxu2  ;;  %v6193_v1 = vpop.f32.mrf.mxu3 }
 0x3d6   : > { %v6194_v2 = vadd.f32 %v6193_v1, %v6179_v37 }
 0x3d8   : > { %v6208_v12 = vadd.f32 %v6207_v40, %v6194_v2  ;;  %v6341_v40 = vmax.f32 %v6084_v59, %v6168_v49 }
 0x3da   : > { %v6223_v26 = vpop.f32.mrf.mxu1  ;;  %v6265_v29 = vpop.f32.mrf.mxu0  ;;  %v6342_v63 = vmax.f32 %v6338_v62, %v6208_v12 }
 0x3dd   : > { %v6181_v46 = vpop.f32.mrf.mxu2  ;;  %v6195_v9 = vpop.f32.mrf.mxu3 }
 0x3de   : > { %v6196_v47 = vadd.f32 %v6195_v9, %v6181_v46 }
 0x3e0   : > { %v6210_v39 = vadd.f32 %v6209_v28, %v6196_v47 }
 0x3f1   : > { %v6319_v13 = vpop.f32.mrf.mxu0 }
 0x3f2   : > { %v6277_v44 = vpop.f32.mrf.mxu1 }
 0x3f3   : > { %v6278_v41 = vadd.f32 %v6277_v44, %v6263_v58  ;;  %v10443_v44 = vld [vmem:[#allocation2] ss:$0 sm:$0xff] }
 0x3f5   : > { %v6235_v20 = vpop.f32.mrf.mxu2  ;;  %v6249_v42 = vpop.f32.mrf.mxu3 }
 0x3f6   : > { %v6236_v36 = vadd.f32 %v6235_v20, %v6221_v51  ;;  %v6344_v51 = vmax.f32 %v6340_v4, %v6210_v39 }
 0x3f8   : > { %v6250_v21 = vadd.f32 %v6249_v42, %v6236_v36 }
 0x3f9   : > { %v6321_v56 = vpop.f32.mrf.mxu0 }
 0x3fa   : > { %v6279_v10 = vpop.f32.mrf.mxu1  ;;  %v6343_v53 = vmax.f32 %v6339_v7, %v6250_v21 }
 0x3fb   : > { %v6280_v11 = vadd.f32 %v6279_v10, %v6265_v29 }
 0x3fd   : > { %v6237_v32 = vpop.f32.mrf.mxu2  ;;  %v6251_v48 = vpop.f32.mrf.mxu3 }
 0x3fe   : > { %v6238_v18 = vadd.f32 %v6237_v32, %v6223_v26 }
 0x400   : > { %v6252_v55 = vadd.f32 %v6251_v48, %v6238_v18 }
 0x402   : > { %v6345_v46 = vmax.f32 %v6341_v40, %v6252_v55 }
 0x410   : > { %v6333_v27 = vpop.f32.mrf.mxu1 }
 0x415   : > { %v6291_v30 = vpop.f32.mrf.mxu2  ;;  %v6305_v31 = vpop.f32.mrf.mxu3 }
 0x416   : > { %v6292_v24 = vadd.f32 %v6291_v30, %v6278_v41  ;;  %v6320_v22 = vadd.f32 %v6319_v13, %v6305_v31 }
 0x418   : > { %v6346_v57 = vmax.f32 %v6342_v63, %v6292_v24  ;;  %v6334_v17 = vadd.f32 %v6333_v27, %v6320_v22  ;;  %v6335_v26 = vpop.f32.mrf.mxu1 }
 0x41a   : > { %v6347_v16 = vmax.f32 %v6343_v53, %v6334_v17  ;;  %v6356_v43 = vmul.f32 %v6352_v35, %v6346_v57 }
 0x41c   : > { %v6357_v0 = vmul.f32 %v6353_v15, %v6347_v16 }
 0x41d   : > { %v6293_v19 = vpop.f32.mrf.mxu2  ;;  %v6307_v5 = vpop.f32.mrf.mxu3 }
 0x41e   : > { %v6294_v8 = vadd.f32 %v6293_v19, %v6280_v11  ;;  %v6322_v37 = vadd.f32 %v6321_v56, %v6307_v5  ;;  %v6360_v1 = vadd.f32 %v6357_v0, %v6356_v43 }
 0x420   : > { %v6348_v23 = vmax.f32 %v6344_v51, %v6294_v8  ;;  %v6336_v28 = vadd.f32 %v6335_v26, %v6322_v37  ;;  %6361 = vadd.xlane.f32.xlu1 %v6360_v1 }
 0x422   : > { %v6349_v25 = vmax.f32 %v6345_v46, %v6336_v28  ;;  %v6358_v9 = vmul.f32 %v6352_v35, %v6348_v23 }
 0x424   : > { %v6359_v33 = vmul.f32 %v6353_v15, %v6349_v25 }
 0x426   : > { %v6363_v58 = vadd.f32 %v6359_v33, %v6358_v9 }
 0x428   : > { %6364 = vadd.xlane.f32.xlu1 %v6363_v58 }
 0x493   : > { %v6362_v20 = vpop.xlane.xlu1 %6361 }
 0x494   : > { %v6370_v42 = vadd.f32 %v10443_v44, %v6362_v20 }
 0x496   : > { %v9588_v29 = vmul.f32 -1.442695, %v6370_v42 }
 0x498   : > { %10444 = vpow2.f32 %v9588_v29 }
 0x49b   : > { %v6365_v10 = vpop.xlane.xlu1 %6364 }
 0x49c   : > { %v6371_v61 = vadd.f32 %v10443_v44, %v6365_v10 }
 0x49e   : > { %v10445_v32 = vpop.eup %10444  ;;  %v9589_v48 = vmul.f32 -1.442695, %v6371_v61 }
 0x49f   : > { %v6378_v54 = vadd.f32 1.0, %v10445_v32 }
 0x4a0   : > { %10446 = vpow2.f32 %v9589_v48 }
 0x4a1   : > { %10448 = vrcp.f32 %v6378_v54  ;;  %v6391_v12 = vand.u32 2147483648, %v6378_v54  ;;  %v6389_v45 = vand.u32 2147483647, %v6378_v54  ;;  %vm6385_vm3 = vweird.f32 %v6378_v54 }
 0x4a3   : > { %v6392_v21 = vor.u32 1.1754944e-38, %v6391_v12  ;;  %vm6390_vm6 = vcmp.eq.f32.partialorder %v6389_v45, 8.507059e+37 }
 0x4a6   : > { %v10447_v2 = vpop.eup %10446 }
 0x4a7   : > { %v10449_v6 = vpop.eup %10448  ;;  %v6379_v14 = vadd.f32 1.0, %v10447_v2 }
 0x4a8   : > { %v6381_v36 = vmul.f32 %v10449_v6, %v6378_v54  ;;  %vm6386_vm2 = vweird.f32 %v10449_v6 }
 0x4a9   : > { %10450 = vrcp.f32 %v6379_v14  ;;  %vm6387_vm5 = vmor %vm6385_vm3, %vm6386_vm2  ;;  %v6406_v7 = vand.u32 2147483648, %v6379_v14  ;;  %v6404_v31 = vand.u32 2147483647, %v6379_v14  ;;  %vm6400_vm8 = vweird.f32 %v6379_v14 }
 0x4aa   : > { %v6382_v38 = vsub.f32 1.0, %v6381_v36 }
 0x4ab   : > { %v6407_v24 = vor.u32 1.1754944e-38, %v6406_v7  ;;  %vm6405_vm10 = vcmp.eq.f32.partialorder %v6404_v31, 8.507059e+37 }
 0x4ac   : > { %v6383_v13 = vmul.f32 %v10449_v6, %v6382_v38 }
 0x4ae   : > { %v6384_v62 = vadd.f32 %v10449_v6, %v6383_v13 }
 0x4af   : > { %v10451_v41 = vpop.eup %10450 }
 0x4b0   : > { %v6388_v27 = vsel %vm6387_vm5, %v10449_v6, %v6384_v62  ;;  %v6396_v52 = vmul.f32 %v10451_v41, %v6379_v14  ;;  %vm6401_vm7 = vweird.f32 %v10451_v41 }
 0x4b1   : > { %v6393_v50 = vsel %vm6390_vm6, %v6392_v21, %v6388_v27  ;;  %vm6402_vm9 = vmor %vm6400_vm8, %vm6401_vm7 }
 0x4b2   : > { %6411 = vst.msk [vmem:[%s388_s14] sm:$0xff] %vm6410_vm4, %v6393_v50  ;;  %v6397_v34 = vsub.f32 1.0, %v6396_v52 }
 0x4b4   : > { %v6398_v30 = vmul.f32 %v10451_v41, %v6397_v34 }
 0x4b6   : > { %v6399_v47 = vadd.f32 %v10451_v41, %v6398_v30 }
 0x4b8   : > { %v6403_v63 = vsel %vm6402_vm9, %v10451_v41, %v6399_v47 }
 0x4b9   : > { %v6408_v22 = vsel %vm6405_vm10, %v6407_v24, %v6403_v63 }
 0x4ba   : > { %6412 = vst.msk [vmem:[%s388_s14 + $0x8] sm:$0xff] %vm6410_vm4, %v6408_v22 }
 0x4bb PF: > { %p21_p4 = scmp.ge.s32.totalorder %s10770_s19, 4   ;;  %s11407_s26 = smov %s10638_s27 }
 0x4bc   : > { %s11408_s27 = smov %s10642_s28  ;;  %s11409_s28 = smov %s10781_s23 }
 0x4bd   : > { %s11410_s29 = smov %s10770_s19  ;;  %23 = sbr.rel (!%p21_p4) target bundleno = 8 (0x8), region = 107 }
 0x4c2   :  { %6435 = vsyncpa [#allocation4], 1 }
 0x4c3   :  { %6437 = vsyncpa [#allocation4 + $0x1], 1 }
 0x4c4   :  { %6438 = vsyncpa [#allocation6], 1 }
 0x4c5   :  { %6439 = vsyncpa [#allocation9], 1 }

</bundles_post_ra>
